<compile_context>
chip_gen: v7x
topology: tpu7x:2x2x1
jax: 0.10.0
libtpu: 0.0.40
codegen_flags: <defaults>
</compile_context>

<pallas_src>
import functools

import numpy as np
import jax
import jax.numpy as jnp
from jax import lax
from jax.experimental import pallas as pl
from jax.experimental.pallas import tpu as pltpu

LANE = 128   # lane width: all kernel-output channel dims are multiples of this
TCO = 256    # Cout tile for the 3x3 convs (fills the 256x256 MXU on v6e/v7x)


def _round_up(x, m):
    return (x + m - 1) // m * m


def _pad_axis(a, axis, new_size):
    if a.shape[axis] == new_size:
        return a
    cfg = [(0, 0)] * a.ndim
    cfg[axis] = (0, new_size - a.shape[axis])
    return jnp.pad(a, cfg)


# ----------------------------------------------------------------------------
# Small constant spatial matrices (numpy, built at trace time).
# ----------------------------------------------------------------------------
def adaptive_pool_matrix(in_size, out_size):
    """(out, in) matrix of 1-D AdaptiveAvgPool (PyTorch region rule)."""
    m = np.zeros((out_size, in_size), np.float32)
    for i in range(out_size):
        s = (i * in_size) // out_size
        e = -((-(i + 1) * in_size) // out_size)     # ceil((i+1)*in/out)
        m[i, s:e] = 1.0 / (e - s)
    return m


def bilinear_matrix(in_size, out_size):
    """(out, in) matrix of 1-D bilinear resize with align_corners=True."""
    m = np.zeros((out_size, in_size), np.float32)
    if in_size == 1 or out_size == 1:
        m[:, 0] = 1.0
        return m
    scale = (in_size - 1) / (out_size - 1)
    for i in range(out_size):
        src = i * scale
        i0 = min(int(np.floor(src)), in_size - 1)
        i1 = min(i0 + 1, in_size - 1)
        w = src - i0
        m[i, i0] += 1.0 - w
        m[i, i1] += w
    return m


def branch_pool_operator(Hf, Wf, size, s2max):
    """(s2max, Hf*Wf): 2-D adaptive-avg-pool operator, zero-padded to s2max rows."""
    P = np.kron(adaptive_pool_matrix(Hf, size), adaptive_pool_matrix(Wf, size))
    out = np.zeros((s2max, Hf * Wf), np.float32)
    out[:size * size] = P
    return out


def branch_up_operator(Hf, Wf, size, s2max):
    """(Hp*Wp, s2max): bilinear upsample s*s -> Hf*Wf, written onto the
    zero-padded (Hf+2, Wf+2) grid the 3x3 conv consumes (halo rows stay 0)."""
    U = np.kron(bilinear_matrix(size, Hf), bilinear_matrix(size, Wf))   # (Hf*Wf, s*s)
    Wp = Wf + 2
    out = np.zeros(((Hf + 2) * Wp, s2max), np.float32)
    for h in range(Hf):
        for w in range(Wf):
            out[(h + 1) * Wp + (w + 1), :size * size] = U[h * Wf + w]
    return out


def w_upsample_operator(Wf, Wp, W, THf):
    """(THf*W, THf*Wp): block-diagonal width-upsample operator, reused for every
    row tile and batch element (junk columns w in [Wf, Wp) get zero weight)."""
    Bw = bilinear_matrix(Wf, W)                       # (W, Wf)
    Bw_pad = np.zeros((W, Wp), np.float32)
    Bw_pad[:, :Wf] = Bw
    return np.kron(np.eye(THf, dtype=np.float32), Bw_pad)


# ----------------------------------------------------------------------------
# Pallas kernels
# ----------------------------------------------------------------------------
def _psp_branch_kernel(f_ref, pool_ref, w_ref, up_ref, o_ref):
    # f: (1, Hf*Wf, C) bf16 | pool: (1, s2max, Hf*Wf) bf16 | w: (1, C, Kt) bf16
    # up: (1, Hp*Wp, s2max) bf16 | o: (1, 1, Hp*Wp, Kt) bf16
    pooled = jnp.dot(pool_ref[0], f_ref[0], preferred_element_type=jnp.float32)
    g = jnp.dot(pooled.astype(jnp.bfloat16), w_ref[0],
                preferred_element_type=jnp.float32)                 # 1x1 conv (tiny map)
    up = jnp.dot(up_ref[0], g.astype(jnp.bfloat16),
                 preferred_element_type=jnp.float32)                # bilinear upsample
    o_ref[0, 0] = up.astype(o_ref.dtype)


def _accum_taps(x_ref, idx, w_ref, Kt, Wp, L, tco):
    """Sum the 9 taps of a 3x3 conv for one Kt-wide channel group.

    x_ref[idx] is the zero-padded, flattened (Hp*Wp, Kt) bf16 input; each tap is
    a contiguous row window (offset kh*Wp+kw, length L): no im2col, no casts.
    """
    acc = jnp.zeros((L, tco), jnp.float32)
    for t in range(9):
        kh, kw = divmod(t, 3)
        r0 = kh * Wp + kw
        x = x_ref[idx + (slice(r0, r0 + L), slice(None))]
        w = w_ref[0, t * Kt:(t + 1) * Kt, :]
        acc = acc + jnp.dot(x, w, preferred_element_type=jnp.float32)
    return acc


def _final_conv3x3_kernel(f_ref, br_ref, w_ref, scale_ref, shift_ref,
                          o_ref, acc_ref, *, Wp, L, nb):
    # Grid: (N, Cout tiles, K groups).  K groups = nb priors + psp-channel chunks.
    k = pl.program_id(2)

    @pl.when(k == 0)
    def _():
        acc_ref[...] = jnp.zeros_like(acc_ref)

    Kt = f_ref.shape[-1]
    tco = o_ref.shape[-1]

    @pl.when(k < nb)          # one pyramid-prior group
    def _():
        acc_ref[...] += _accum_taps(br_ref, (0, 0), w_ref, Kt, Wp, L, tco)

    @pl.when(k >= nb)         # one Kt-wide chunk of the f (psp) channels
    def _():
        acc_ref[...] += _accum_taps(f_ref, (0,), w_ref, Kt, Wp, L, tco)

    @pl.when(k == pl.num_programs(2) - 1)
    def _():
        y = jnp.maximum(acc_ref[...] * scale_ref[...] + shift_ref[...], 0.0)
        o_ref[0] = y.astype(o_ref.dtype)


def _conv3x3_bn_relu_kernel(x_ref, w_ref, scale_ref, shift_ref, o_ref, acc_ref,
                            *, Wp, L):
    k = pl.program_id(2)

    @pl.when(k == 0)
    def _():
        acc_ref[...] = jnp.zeros_like(acc_ref)

    Kt = x_ref.shape[-1]
    acc_ref[...] += _accum_taps(x_ref, (0,), w_ref, Kt, Wp, L, o_ref.shape[-1])

    @pl.when(k == pl.num_programs(2) - 1)
    def _():
        y = jnp.maximum(acc_ref[...] * scale_ref[...] + shift_ref[...], 0.0)
        o_ref[0] = y.astype(o_ref.dtype)


def _cls_wup_kernel(x_ref, w_ref, b_ref, bw_ref, o_ref):
    # x: (1, THf*Wp, Cm) bf16 | w: (Cm, Cn) bf16 | b: (1, Cn) f32
    # bw: (THf*W, THf*Wp) bf16 | o: (1, THf*W, Cn) bf16
    y = jnp.dot(x_ref[0], w_ref[...], preferred_element_type=jnp.float32) + b_ref[...]
    o_ref[0] = jnp.dot(bw_ref[...], y.astype(jnp.bfloat16),
                       preferred_element_type=jnp.float32).astype(o_ref.dtype)


def _hup_kernel(t_ref, bh_ref, o_ref):
    # t: (1, Hf, W*Cn) bf16 | bh: (TH, Hf) bf16 | o: (1, TH, W*Cn) bf16
    o_ref[0] = jnp.dot(bh_ref[...], t_ref[0],
                       preferred_element_type=jnp.float32).astype(o_ref.dtype)


# ----------------------------------------------------------------------------
# pallas_call wrappers
# ----------------------------------------------------------------------------
def psp_branches(f2, pool_ops, stage_w, up_ops):
    """All PSP branches: pool-first -> 1x1 conv -> upsample onto padded grid."""
    N, HW, C = f2.shape
    nb, s2max, _ = pool_ops.shape
    Kt = stage_w.shape[-1]
    HpWp = up_ops.shape[1]
    return pl.pallas_call(
        _psp_branch_kernel,
        out_shape=jax.ShapeDtypeStruct((N, nb, HpWp, Kt), jnp.bfloat16),
        grid=(N, nb),
        in_specs=[
            pl.BlockSpec((1, HW, C), lambda n, g: (n, 0, 0)),        # f resident over g
            pl.BlockSpec((1, s2max, HW), lambda n, g: (g, 0, 0)),
            pl.BlockSpec((1, C, Kt), lambda n, g: (g, 0, 0)),
            pl.BlockSpec((1, HpWp, s2max), lambda n, g: (g, 0, 0)),
        ],
        out_specs=pl.BlockSpec((1, 1, HpWp, Kt), lambda n, g: (n, g, 0, 0)),
        compiler_params=pltpu.CompilerParams(
            dimension_semantics=("parallel", "parallel")),
    )(f2, pool_ops, stage_w, up_ops)


def final_conv3x3_bn_relu(f_pad2, br, w_all, scale, shift, *, Hf, Wf, nb, tco=TCO):
    N, HpWp, Cfp = f_pad2.shape
    Kt = br.shape[-1]
    n_k, nine_kt, Cop = w_all.shape
    assert nine_kt == 9 * Kt and Cfp == (n_k - nb) * Kt and Cop % tco == 0
    Wp = Wf + 2
    L = (Hf - 1) * Wp + Wf
    n_co = Cop // tco
    kern = functools.partial(_final_conv3x3_kernel, Wp=Wp, L=L, nb=nb)
    return pl.pallas_call(
        kern,
        out_shape=jax.ShapeDtypeStruct((N, L, Cop), jnp.bfloat16),
        grid=(N, n_co, n_k),
        in_specs=[
            pl.BlockSpec((1, HpWp, Kt),
                         lambda n, j, k: (n, 0, jnp.maximum(k - nb, 0))),
            pl.BlockSpec((1, 1, HpWp, Kt),
                         lambda n, j, k: (n, jnp.minimum(k, nb - 1), 0, 0)),
            pl.BlockSpec((1, 9 * Kt, tco), lambda n, j, k: (k, 0, j)),
            pl.BlockSpec((1, tco), lambda n, j, k: (0, j)),
            pl.BlockSpec((1, tco), lambda n, j, k: (0, j)),
        ],
        out_specs=pl.BlockSpec((1, L, tco), lambda n, j, k: (n, 0, j)),
        scratch_shapes=[pltpu.VMEM((L, tco), jnp.float32)],
        compiler_params=pltpu.CompilerParams(
            dimension_semantics=("parallel", "parallel", "arbitrary")),
    )(f_pad2, br, w_all, scale, shift)


def conv3x3_bn_relu(x_pad2, w_all, scale, shift, *, Hf, Wf, tco=TCO):
    N, HpWp, Cinp = x_pad2.shape
    n_k, nine_kt, Cop = w_all.shape
    Kt = nine_kt // 9
    assert Cinp == n_k * Kt and Cop % tco == 0
    Wp = Wf + 2
    L = (Hf - 1) * Wp + Wf
    n_co = Cop // tco
    kern = functools.partial(_conv3x3_bn_relu_kernel, Wp=Wp, L=L)
    return pl.pallas_call(
        kern,
        out_shape=jax.ShapeDtypeStruct((N, L, Cop), jnp.bfloat16),
        grid=(N, n_co, n_k),
        in_specs=[
            pl.BlockSpec((1, HpWp, Kt), lambda n, j, k: (n, 0, k)),
            pl.BlockSpec((1, 9 * Kt, tco), lambda n, j, k: (k, 0, j)),
            pl.BlockSpec((1, tco), lambda n, j, k: (0, j)),
            pl.BlockSpec((1, tco), lambda n, j, k: (0, j)),
        ],
        out_specs=pl.BlockSpec((1, L, tco), lambda n, j, k: (n, 0, j)),
        scratch_shapes=[pltpu.VMEM((L, tco), jnp.float32)],
        compiler_params=pltpu.CompilerParams(
            dimension_semantics=("parallel", "parallel", "arbitrary")),
    )(x_pad2, w_all, scale, shift)


def classify_and_upsample(mid, w2, b2, bw_op, bh, *, Hf, Wf, THf, TH):
    """1x1 conv (+bias) fused with separable bilinear upsample to (H, W)."""
    N, L, Cm = mid.shape
    Wp = Wf + 2
    Lf = Hf * Wp
    Cn = w2.shape[-1]
    W_out = bw_op.shape[0] // THf
    H_out = bh.shape[0]

    # pad the conv3x3 output rows up to Hf*Wp (2 junk rows; zeroed by Bw weights)
    mid_p = jnp.pad(mid, ((0, 0), (0, Lf - L), (0, 0)))

    # stage 1: 1x1 conv + width-upsample, tiled over THf-row slabs
    t = pl.pallas_call(
        _cls_wup_kernel,
        out_shape=jax.ShapeDtypeStruct((N, Hf * W_out, Cn), jnp.bfloat16),
        grid=(N, Hf // THf),
        in_specs=[
            pl.BlockSpec((1, THf * Wp, Cm), lambda n, h: (n, h, 0)),
            pl.BlockSpec((Cm, Cn), lambda n, h: (0, 0)),
            pl.BlockSpec((1, Cn), lambda n, h: (0, 0)),
            pl.BlockSpec((THf * W_out, THf * Wp), lambda n, h: (0, 0)),
        ],
        out_specs=pl.BlockSpec((1, THf * W_out, Cn), lambda n, h: (n, h, 0)),
        compiler_params=pltpu.CompilerParams(
            dimension_semantics=("parallel", "parallel")),
    )(mid_p, w2, b2, bw_op)

    # stage 2: height-upsample = plain 2-D matmul on the (Hf, W*Cn) view,
    # tiled over TH output rows (free, row-major HBM reshapes only).
    t3 = t.reshape(N, Hf, W_out * Cn)
    out = pl.pallas_call(
        _hup_kernel,
        out_shape=jax.ShapeDtypeStruct((N, H_out, W_out * Cn), jnp.bfloat16),
        grid=(N, H_out // TH),
        in_specs=[
            pl.BlockSpec((1, Hf, W_out * Cn), lambda n, h: (n, 0, 0)),
            pl.BlockSpec((TH, Hf), lambda n, h: (h, 0)),
        ],
        out_specs=pl.BlockSpec((1, TH, W_out * Cn), lambda n, h: (n, h, 0)),
        compiler_params=pltpu.CompilerParams(
            dimension_semantics=("parallel", "parallel")),
    )(t3, bh)
    return out.reshape(N, H_out, W_out, Cn)


# ----------------------------------------------------------------------------
# PSPNet head forward (post-backbone)
# ----------------------------------------------------------------------------
def pspnet_forward(f, class_f, kp, *, out_hw, n_classes, sizes=(1, 2, 3, 6)):
    """Returns (p, aux), both (N, H, W, n_classes) f32, matching eval-mode PyTorch."""
    N, Hf, Wf, C = f.shape
    assert class_f.shape[1:3] == (Hf, Wf)
    H, W = out_hw
    Hp, Wp = Hf + 2, Wf + 2
    nb = len(sizes)
    s2max = max(sizes) ** 2

    # derived padded channel widths from the prepared weights
    Kt = kp["stage_w"].shape[-1]
    Cfp = (kp["final_w1"].shape[0] - nb) * Kt
    Kta = kp["aux_w1"].shape[1] // 9
    Cap = kp["aux_w1"].shape[0] * Kta

    # upsample row tiles
    THf = Hf if Hf <= 8 else 8
    assert Hf % THf == 0
    TH = 8 if H % 8 == 0 else H

    # tiny constant spatial operators (bf16 MXU operands)
    pool_ops = jnp.asarray(
        np.stack([branch_pool_operator(Hf, Wf, s, s2max) for s in sizes]),
        jnp.bfloat16)
    up_ops = jnp.asarray(
        np.stack([branch_up_operator(Hf, Wf, s, s2max) for s in sizes]),
        jnp.bfloat16)
    bw_op = jnp.asarray(w_upsample_operator(Wf, Wp, W, THf), jnp.bfloat16)
    bh = jnp.asarray(bilinear_matrix(Hf, H), jnp.bfloat16)

    # 1) PSP branches (pool-first), output already on the zero-padded grid (bf16)
    f_b = f.astype(jnp.bfloat16)
    f2 = f_b.reshape(N, Hf * Wf, C)
    br = psp_branches(f2, pool_ops, kp["stage_w"], up_ops)     # (N, nb, Hp*Wp, Kt)

    # f itself is the last concat group: zero halo, pad channels to Kt chunks, bf16
    f_pad2 = jnp.pad(f_b, ((0, 0), (1, 1), (1, 1), (0, Cfp - C))).reshape(
        N, Hp * Wp, Cfp)

    # 2) final 3x3 conv (taps + concat groups fused, K-group tiled) + BN + ReLU
    mid = final_conv3x3_bn_relu(f_pad2, br, kp["final_w1"],
                                kp["final_bn_scale"], kp["final_bn_shift"],
                                Hf=Hf, Wf=Wf, nb=nb)
    # 3) final 1x1 conv (+bias) + separable bilinear upsample to (H, W)
    p4 = classify_and_upsample(mid, kp["final_w2"], kp["final_b2"], bw_op, bh,
                               Hf=Hf, Wf=Wf, THf=THf, TH=TH)
    p = p4[..., :n_classes].astype(jnp.float32)

    # 4) aux 3x3 conv + BN + ReLU  (Dropout2d is identity in eval mode)
    cf_b = class_f.astype(jnp.bfloat16)
    cf_pad2 = jnp.pad(cf_b, ((0, 0), (1, 1), (1, 1),
                             (0, Cap - class_f.shape[-1]))).reshape(N, Hp * Wp, Cap)
    amid = conv3x3_bn_relu(cf_pad2, kp["aux_w1"], kp["aux_bn_scale"],
                           kp["aux_bn_shift"], Hf=Hf, Wf=Wf)
    # 5) aux 1x1 conv (+bias) + separable bilinear upsample
    a4 = classify_and_upsample(amid, kp["aux_w2"], kp["aux_b2"], bw_op, bh,
                               Hf=Hf, Wf=Wf, THf=THf, TH=TH)
    a = a4[..., :n_classes].astype(jnp.float32)
    return p, a


# ----------------------------------------------------------------------------
# Parameters: torch-layout init + kernel-ready (padded / bf16 / folded) prep
# ----------------------------------------------------------------------------
def init_params(key, psp_size, stage_out, final_mid, n_classes, aux_in, aux_mid):
    keys = jax.random.split(key, 18)

    def nrm(k, shape, scale=0.05):
        return scale * jax.random.normal(k, shape, jnp.float32)

    p = {}
    p["stage_w"] = [nrm(keys[i], (stage_out, psp_size)) for i in range(4)]
    cat_ch = psp_size + 4 * stage_out
    p["final_w1"] = nrm(keys[4], (final_mid, cat_ch, 3, 3))
    p["final_bn_gamma"] = 1.0 + nrm(keys[5], (final_mid,))
    p["final_bn_beta"] = nrm(keys[6], (final_mid,))
    p["final_bn_mean"] = nrm(keys[7], (final_mid,))
    p["final_bn_var"] = jnp.abs(nrm(keys[8], (final_mid,))) + 1.0
    p["final_w2"] = nrm(keys[9], (n_classes, final_mid))
    p["final_b2"] = nrm(keys[10], (n_classes,))
    p["aux_w1"] = nrm(keys[11], (aux_mid, aux_in, 3, 3))
    p["aux_bn_gamma"] = 1.0 + nrm(keys[12], (aux_mid,))
    p["aux_bn_beta"] = nrm(keys[13], (aux_mid,))
    p["aux_bn_mean"] = nrm(keys[14], (aux_mid,))
    p["aux_bn_var"] = jnp.abs(nrm(keys[15], (aux_mid,))) + 1.0
    p["aux_w2"] = nrm(keys[16], (n_classes, aux_mid))
    p["aux_b2"] = nrm(keys[17], (n_classes,))
    return p


def prepare_params(raw, *, tco=TCO):
    stage_out, psp_size = raw["stage_w"][0].shape
    mid = raw["final_w1"].shape[0]
    aux_mid, aux_in = raw["aux_w1"].shape[:2]
    n_classes = raw["final_w2"].shape[0]
    nb = len(raw["stage_w"])

    Kt = _round_up(stage_out, LANE)              # prior / psp channel-chunk width
    Cfp = _round_up(psp_size, Kt)
    n_cf = Cfp // Kt
    Kta = min(_round_up(aux_in, LANE), 512)      # aux input-channel chunk width
    Cap = _round_up(aux_in, Kta)
    n_ca = Cap // Kta
    Cop = _round_up(mid, tco)
    Copa = _round_up(aux_mid, tco)
    Cnp = _round_up(n_classes, LANE)

    kp = {}
    # PSP stage 1x1 convs -> (nb, psp_size, Kt) bf16 (zero-padded out channels)
    sw = jnp.stack([w.T for w in raw["stage_w"]])
    kp["stage_w"] = _pad_axis(sw, 2, Kt).astype(jnp.bfloat16)

    # final 3x3 conv: (nb + n_cf) K-groups, taps stacked along rows, Cout padded
    w1 = raw["final_w1"]                                    # (mid, cat_ch, 3, 3)
    f_lo = nb * stage_out
    groups = []
    for g in range(nb):                                     # prior groups (concat order)
        blocks = [_pad_axis(w1[:, g * stage_out:(g + 1) * stage_out, kh, kw].T, 0, Kt)
                  for kh in range(3) for kw in range(3)]
        groups.append(jnp.concatenate(blocks, axis=0))      # (9*Kt, mid)
    for c in range(n_cf):                                   # psp channel chunks
        lo = f_lo + c * Kt
        hi = min(f_lo + (c + 1) * Kt, f_lo + psp_size)
        blocks = [_pad_axis(w1[:, lo:hi, kh, kw].T, 0, Kt)
                  for kh in range(3) for kw in range(3)]
        groups.append(jnp.concatenate(blocks, axis=0))
    kp["final_w1"] = _pad_axis(jnp.stack(groups), 2, Cop).astype(jnp.bfloat16)

    def bn_fold(gamma, beta, mean, var, cp):
        scale = gamma / jnp.sqrt(var + 1e-5)
        shift = beta - mean * scale
        return (_pad_axis(scale, 0, cp).reshape(1, cp).astype(jnp.float32),
                _pad_axis(shift, 0, cp).reshape(1, cp).astype(jnp.float32))

    kp["final_bn_scale"], kp["final_bn_shift"] = bn_fold(
        raw["final_bn_gamma"], raw["final_bn_beta"],
        raw["final_bn_mean"], raw["final_bn_var"], Cop)
    kp["final_w2"] = _pad_axis(_pad_axis(raw["final_w2"].T, 0, Cop), 1, Cnp
                               ).astype(jnp.bfloat16)
    kp["final_b2"] = _pad_axis(raw["final_b2"], 0, Cnp).reshape(1, Cnp
                               ).astype(jnp.float32)

    # aux 3x3 conv
    wa = raw["aux_w1"]                                      # (aux_mid, aux_in, 3, 3)
    agroups = []
    for c in range(n_ca):
        lo, hi = c * Kta, min((c + 1) * Kta, aux_in)
        blocks = [_pad_axis(wa[:, lo:hi, kh, kw].T, 0, Kta)
                  for kh in range(3) for kw in range(3)]
        agroups.append(jnp.concatenate(blocks, axis=0))
    kp["aux_w1"] = _pad_axis(jnp.stack(agroups), 2, Copa).astype(jnp.bfloat16)
    kp["aux_bn_scale"], kp["aux_bn_shift"] = bn_fold(
        raw["aux_bn_gamma"], raw["aux_bn_beta"],
        raw["aux_bn_mean"], raw["aux_bn_var"], Copa)
    kp["aux_w2"] = _pad_axis(_pad_axis(raw["aux_w2"].T, 0, Copa), 1, Cnp
                             ).astype(jnp.bfloat16)
    kp["aux_b2"] = _pad_axis(raw["aux_b2"], 0, Cnp).reshape(1, Cnp
                             ).astype(jnp.float32)
    return kp


# ----------------------------------------------------------------------------
# Pure-JAX f32 reference of the same eval-mode head (for checking the kernels)
# ----------------------------------------------------------------------------
def _reference_forward(f, class_f, raw, out_hw, sizes):
    N, Hf, Wf, C = f.shape
    H, W = out_hw
    priors = []
    for s, w in zip(sizes, raw["stage_w"]):
        Ph = jnp.asarray(adaptive_pool_matrix(Hf, s))
        Pw = jnp.asarray(adaptive_pool_matrix(Wf, s))
        Uh = jnp.asarray(bilinear_matrix(s, Hf))
        Uw = jnp.asarray(bilinear_matrix(s, Wf))
        pooled = jnp.einsum('ih,jw,nhwc->nijc', Ph, Pw, f)
        conv = jnp.einsum('nijc,oc->nijo', pooled, w)
        priors.append(jnp.einsum('hi,wj,nijo->nhwo', Uh, Uw, conv))
    priors.append(f)
    cat = jnp.concatenate(priors, axis=-1)

    def conv3x3(x, w):
        return lax.conv_general_dilated(
            x, jnp.transpose(w, (2, 3, 1, 0)), (1, 1), ((1, 1), (1, 1)),
            dimension_numbers=('NHWC', 'HWIO', 'NHWC'))

    def bn(x, g, b, m, v):
        return (x - m) / jnp.sqrt(v + 1e-5) * g + b

    def up_to(x):
        hf, wf = x.shape[1:3]
        Bh = jnp.asarray(bilinear_matrix(hf, H))
        Bw = jnp.asarray(bilinear_matrix(wf, W))
        return jnp.einsum('hi,wj,nijc->nhwc', Bh, Bw, x)

    p = conv3x3(cat, raw["final_w1"])
    p = jax.nn.relu(bn(p, raw["final_bn_gamma"], raw["final_bn_beta"],
                       raw["final_bn_mean"], raw["final_bn_var"]))
    p = jnp.einsum('nhwc,oc->nhwo', p, raw["final_w2"]) + raw["final_b2"]
    p = up_to(p)

    a = conv3x3(class_f, raw["aux_w1"])
    a = jax.nn.relu(bn(a, raw["aux_bn_gamma"], raw["aux_bn_beta"],
                       raw["aux_bn_mean"], raw["aux_bn_var"]))
    a = jnp.einsum('nhwc,oc->nhwo', a, raw["aux_w2"]) + raw["aux_b2"]
    a = up_to(a)
    return p, a


# ----------------------------------------------------------------------------
if __name__ == "__main__":
    key = jax.random.PRNGKey(0)
    k_f, k_cf, k_p = jax.random.split(key, 3)

    # Small shapes consistent with the module structure (channel widths scaled
    # down: psp_size 2048->64, final mid 512->64, aux in/mid 1024/256->32/16,
    # n_classes 18->6).  Backbone features are 4x4, full image is 16x16.
    N, H, W = 2, 16, 16
    Hf = Wf = 4
    psp_size = 64
    stage_out = psp_size // 4            # int(psp_size / len(sizes))
    final_mid = 64
    n_classes = 6
    aux_in, aux_mid = 32, 16
    sizes = (1, 2, 3, 6)

    f = jax.random.normal(k_f, (N, Hf, Wf, psp_size), jnp.float32)       # backbone f
    class_f = jax.random.normal(k_cf, (N, Hf, Wf, aux_in), jnp.float32)  # backbone class_f
    raw = init_params(k_p, psp_size, stage_out, final_mid, n_classes, aux_in, aux_mid)
    kparams = prepare_params(raw)

    fwd = jax.jit(functools.partial(pspnet_forward, out_hw=(H, W),
                                    n_classes=n_classes, sizes=sizes))
    p, aux = fwd(f, class_f, kparams)
    jax.block_until_ready((p, aux))

    assert p.shape == (N, H, W, n_classes), p.shape
    assert aux.shape == (N, H, W, n_classes), aux.shape
    assert bool(jnp.all(jnp.isfinite(p))) and bool(jnp.all(jnp.isfinite(aux)))

    # correctness against a plain-JAX f32 reference (bf16 MXU operands -> loose tol)
    p_ref, aux_ref = _reference_forward(f, class_f, raw, (H, W), sizes)
    np.testing.assert_allclose(np.asarray(p), np.asarray(p_ref), rtol=1e-1, atol=1e-1)
    np.testing.assert_allclose(np.asarray(aux), np.asarray(aux_ref), rtol=1e-1, atol=1e-1)

    print("KERNEL_OK")
</pallas_src>

<mosaic_0001>
module attributes {stable_mosaic.version = 11 : i64} {
  func.func @_cls_wup_kernel(%arg0: i32, %arg1: i32, %arg2: memref<1x24x256xbf16, #tpu.memory_space<vmem>>, %arg3: memref<256x128xbf16, #tpu.memory_space<vmem>>, %arg4: memref<1x128xf32, #tpu.memory_space<vmem>>, %arg5: memref<64x24xbf16, #tpu.memory_space<vmem>>, %arg6: memref<1x64x128xbf16, #tpu.memory_space<vmem>>) attributes {dimension_semantics = [#tpu.dimension_semantics<parallel>, #tpu.dimension_semantics<parallel>], iteration_bounds = array<i64: 2, 1>, scalar_prefetch = 0 : i64, scratch_operands = 0 : i64, tpu.core_type = #tpu.core_type<tc>, window_params = [{transform_indices = @transform_0, window_bounds = array<i64: 1, 24, 256>}, {pipeline_mode = #tpu.pipeline_mode<synchronous>, transform_indices = @transform_1, window_bounds = array<i64: 256, 128>}, {pipeline_mode = #tpu.pipeline_mode<synchronous>, transform_indices = @transform_2, window_bounds = array<i64: 1, 128>}, {pipeline_mode = #tpu.pipeline_mode<synchronous>, transform_indices = @transform_3, window_bounds = array<i64: 64, 24>}, {transform_indices = @transform_4, window_bounds = array<i64: 1, 64, 128>}]} {
    %c0 = arith.constant 0 : index
    %c0_0 = arith.constant 0 : index
    %c0_1 = arith.constant 0 : index
    %0 = vector.load %arg2[%c0, %c0_0, %c0_1] : memref<1x24x256xbf16, #tpu.memory_space<vmem>>, vector<1x24x256xbf16>
    %1 = vector.shape_cast %0 : vector<1x24x256xbf16> to vector<24x256xbf16>
    %c0_2 = arith.constant 0 : index
    %c0_3 = arith.constant 0 : index
    %2 = vector.load %arg3[%c0_2, %c0_3] : memref<256x128xbf16, #tpu.memory_space<vmem>>, vector<256x128xbf16>
    %cst = arith.constant dense<0.000000e+00> : vector<24x128xf32>
    %3 = tpu.matmul %1, %2, %cst {dimension_numbers = #tpu.dot_dimension_numbers<[1], [0], [0], [1], [0, 0, 1, 1], [], []>} : vector<24x256xbf16>, vector<256x128xbf16>, vector<24x128xf32> -> vector<24x128xf32>
    %c0_4 = arith.constant 0 : index
    %c0_5 = arith.constant 0 : index
    %4 = vector.load %arg4[%c0_4, %c0_5] : memref<1x128xf32, #tpu.memory_space<vmem>>, vector<1x128xf32>
    %5 = vector.broadcast %4 : vector<1x128xf32> to vector<24x128xf32>
    %6 = arith.addf %3, %5 : vector<24x128xf32>
    %c0_6 = arith.constant 0 : index
    %c0_7 = arith.constant 0 : index
    %7 = vector.load %arg5[%c0_6, %c0_7] : memref<64x24xbf16, #tpu.memory_space<vmem>>, vector<64x24xbf16>
    %8 = arith.truncf %6 : vector<24x128xf32> to vector<24x128xbf16>
    %cst_8 = arith.constant dense<0.000000e+00> : vector<64x128xf32>
    %9 = tpu.matmul %7, %8, %cst_8 {dimension_numbers = #tpu.dot_dimension_numbers<[1], [0], [0], [1], [0, 0, 1, 1], [], []>} : vector<64x24xbf16>, vector<24x128xbf16>, vector<64x128xf32> -> vector<64x128xf32>
    %10 = arith.truncf %9 : vector<64x128xf32> to vector<64x128xbf16>
    %c0_9 = arith.constant 0 : index
    %c0_10 = arith.constant 0 : index
    %c0_11 = arith.constant 0 : index
    %11 = vector.load %arg6[%c0_9, %c0_10, %c0_11] : memref<1x64x128xbf16, #tpu.memory_space<vmem>>, vector<1x64x128xbf16>
    %12 = vector.shape_cast %11 : vector<1x64x128xbf16> to vector<64x128xbf16>
    %13 = vector.shape_cast %10 : vector<64x128xbf16> to vector<1x64x128xbf16>
    tpu.vector_store %arg6[%c0_9, %c0_10, %c0_11], %13 {strides = array<i32>} : memref<1x64x128xbf16, #tpu.memory_space<vmem>>, vector<1x64x128xbf16>,
    return
  }
  func.func @transform_0(%arg0: i32, %arg1: i32) -> (i32, i32, i32) {
    %c0_i32 = arith.constant 0 : i32
    %c0_i32_0 = arith.constant 0 : i32
    return %arg0, %arg1, %c0_i32 : i32, i32, i32
  }
  func.func @transform_1(%arg0: i32, %arg1: i32) -> (i32, i32) {
    %c0_i32 = arith.constant 0 : i32
    %c0_i32_0 = arith.constant 0 : i32
    %c0_i32_1 = arith.constant 0 : i32
    return %c0_i32, %c0_i32_0 : i32, i32
  }
  func.func @transform_2(%arg0: i32, %arg1: i32) -> (i32, i32) {
    %c0_i32 = arith.constant 0 : i32
    %c0_i32_0 = arith.constant 0 : i32
    %c0_i32_1 = arith.constant 0 : i32
    return %c0_i32, %c0_i32_0 : i32, i32
  }
  func.func @transform_3(%arg0: i32, %arg1: i32) -> (i32, i32) {
    %c0_i32 = arith.constant 0 : i32
    %c0_i32_0 = arith.constant 0 : i32
    %c0_i32_1 = arith.constant 0 : i32
    return %c0_i32, %c0_i32_0 : i32, i32
  }
  func.func @transform_4(%arg0: i32, %arg1: i32) -> (i32, i32, i32) {
    %c0_i32 = arith.constant 0 : i32
    %c0_i32_0 = arith.constant 0 : i32
    return %arg0, %arg1, %c0_i32 : i32, i32, i32
  }
}

module attributes {stable_mosaic.version = 11 : i64} {
  func.func @_conv3x3_bn_relu_kernel(%arg0: i32, %arg1: i32, %arg2: i32, %arg3: memref<1x36x128xbf16, #tpu.memory_space<vmem>>, %arg4: memref<1x1152x256xbf16, #tpu.memory_space<vmem>>, %arg5: memref<1x256xf32, #tpu.memory_space<vmem>>, %arg6: memref<1x256xf32, #tpu.memory_space<vmem>>, %arg7: memref<1x22x256xbf16, #tpu.memory_space<vmem>>, %arg8: memref<22x256xf32, #tpu.memory_space<vmem>>) attributes {dimension_semantics = [#tpu.dimension_semantics<parallel>, #tpu.dimension_semantics<parallel>, #tpu.dimension_semantics<arbitrary>], iteration_bounds = array<i64: 2, 1, 1>, scalar_prefetch = 0 : i64, scratch_operands = 1 : i64, tpu.core_type = #tpu.core_type<tc>, window_params = [{transform_indices = @transform_0, window_bounds = array<i64: 1, 36, 128>}, {transform_indices = @transform_1, window_bounds = array<i64: 1, 1152, 256>}, {transform_indices = @transform_2, window_bounds = array<i64: 1, 256>}, {transform_indices = @transform_3, window_bounds = array<i64: 1, 256>}, {transform_indices = @transform_4, window_bounds = array<i64: 1, 22, 256>}]} {
    %c0_i32 = arith.constant 0 : i32
    %0 = arith.cmpi eq, %arg2, %c0_i32 : i32
    %1 = arith.extui %0 : i1 to i32
    %c0_i32_0 = arith.constant 0 : i32
    %2 = arith.cmpi ne, %1, %c0_i32_0 : i32
    scf.if %2 {
      %cst_53 = arith.constant 0.000000e+00 : f32
      %64 = vector.broadcast %cst_53 : f32 to vector<22x256xf32>
      %c0_54 = arith.constant 0 : index
      %c0_55 = arith.constant 0 : index
      %65 = vector.load %arg8[%c0_54, %c0_55] : memref<22x256xf32, #tpu.memory_space<vmem>>, vector<22x256xf32>
      tpu.vector_store %arg8[%c0_54, %c0_55], %64 {strides = array<i32>} : memref<22x256xf32, #tpu.memory_space<vmem>>, vector<22x256xf32>,
    } else {
    }
    %c0 = arith.constant 0 : index
    %c0_1 = arith.constant 0 : index
    %3 = vector.load %arg8[%c0, %c0_1] : memref<22x256xf32, #tpu.memory_space<vmem>>, vector<22x256xf32>
    %cst = arith.constant 0.000000e+00 : f32
    %4 = vector.broadcast %cst : f32 to vector<22x256xf32>
    %c0_2 = arith.constant 0 : index
    %c0_3 = arith.constant 0 : index
    %c0_4 = arith.constant 0 : index
    %5 = vector.load %arg3[%c0_2, %c0_3, %c0_4] : memref<1x36x128xbf16, #tpu.memory_space<vmem>>, vector<1x22x128xbf16>
    %6 = vector.shape_cast %5 : vector<1x22x128xbf16> to vector<22x128xbf16>
    %c0_5 = arith.constant 0 : index
    %c0_6 = arith.constant 0 : index
    %c0_7 = arith.constant 0 : index
    %7 = vector.load %arg4[%c0_5, %c0_6, %c0_7] : memref<1x1152x256xbf16, #tpu.memory_space<vmem>>, vector<1x128x256xbf16>
    %8 = vector.shape_cast %7 : vector<1x128x256xbf16> to vector<128x256xbf16>
    %cst_8 = arith.constant dense<0.000000e+00> : vector<22x256xf32>
    %9 = tpu.matmul %6, %8, %cst_8 {dimension_numbers = #tpu.dot_dimension_numbers<[1], [0], [0], [1], [0, 0, 1, 1], [], []>} : vector<22x128xbf16>, vector<128x256xbf16>, vector<22x256xf32> -> vector<22x256xf32>
    %10 = arith.addf %4, %9 : vector<22x256xf32>
    %c0_9 = arith.constant 0 : index
    %c1 = arith.constant 1 : index
    %c0_10 = arith.constant 0 : index
    %11 = vector.load %arg3[%c0_9, %c1, %c0_10] : memref<1x36x128xbf16, #tpu.memory_space<vmem>>, vector<1x22x128xbf16>
    %12 = vector.shape_cast %11 : vector<1x22x128xbf16> to vector<22x128xbf16>
    %c0_11 = arith.constant 0 : index
    %c128 = arith.constant 128 : index
    %c0_12 = arith.constant 0 : index
    %13 = vector.load %arg4[%c0_11, %c128, %c0_12] : memref<1x1152x256xbf16, #tpu.memory_space<vmem>>, vector<1x128x256xbf16>
    %14 = vector.shape_cast %13 : vector<1x128x256xbf16> to vector<128x256xbf16>
    %cst_13 = arith.constant dense<0.000000e+00> : vector<22x256xf32>
    %15 = tpu.matmul %12, %14, %cst_13 {dimension_numbers = #tpu.dot_dimension_numbers<[1], [0], [0], [1], [0, 0, 1, 1], [], []>} : vector<22x128xbf16>, vector<128x256xbf16>, vector<22x256xf32> -> vector<22x256xf32>
    %16 = arith.addf %10, %15 : vector<22x256xf32>
    %c0_14 = arith.constant 0 : index
    %c2 = arith.constant 2 : index
    %c0_15 = arith.constant 0 : index
    %17 = vector.load %arg3[%c0_14, %c2, %c0_15] : memref<1x36x128xbf16, #tpu.memory_space<vmem>>, vector<1x22x128xbf16>
    %18 = vector.shape_cast %17 : vector<1x22x128xbf16> to vector<22x128xbf16>
    %c0_16 = arith.constant 0 : index
    %c256 = arith.constant 256 : index
    %c0_17 = arith.constant 0 : index
    %19 = vector.load %arg4[%c0_16, %c256, %c0_17] : memref<1x1152x256xbf16, #tpu.memory_space<vmem>>, vector<1x128x256xbf16>
    %20 = vector.shape_cast %19 : vector<1x128x256xbf16> to vector<128x256xbf16>
    %cst_18 = arith.constant dense<0.000000e+00> : vector<22x256xf32>
    %21 = tpu.matmul %18, %20, %cst_18 {dimension_numbers = #tpu.dot_dimension_numbers<[1], [0], [0], [1], [0, 0, 1, 1], [], []>} : vector<22x128xbf16>, vector<128x256xbf16>, vector<22x256xf32> -> vector<22x256xf32>
    %22 = arith.addf %16, %21 : vector<22x256xf32>
    %c0_19 = arith.constant 0 : index
    %c6 = arith.constant 6 : index
    %c0_20 = arith.constant 0 : index
    %23 = vector.load %arg3[%c0_19, %c6, %c0_20] : memref<1x36x128xbf16, #tpu.memory_space<vmem>>, vector<1x22x128xbf16>
    %24 = vector.shape_cast %23 : vector<1x22x128xbf16> to vector<22x128xbf16>
    %c0_21 = arith.constant 0 : index
    %c384 = arith.constant 384 : index
    %c0_22 = arith.constant 0 : index
    %25 = vector.load %arg4[%c0_21, %c384, %c0_22] : memref<1x1152x256xbf16, #tpu.memory_space<vmem>>, vector<1x128x256xbf16>
    %26 = vector.shape_cast %25 : vector<1x128x256xbf16> to vector<128x256xbf16>
    %cst_23 = arith.constant dense<0.000000e+00> : vector<22x256xf32>
    %27 = tpu.matmul %24, %26, %cst_23 {dimension_numbers = #tpu.dot_dimension_numbers<[1], [0], [0], [1], [0, 0, 1, 1], [], []>} : vector<22x128xbf16>, vector<128x256xbf16>, vector<22x256xf32> -> vector<22x256xf32>
    %28 = arith.addf %22, %27 : vector<22x256xf32>
    %c0_24 = arith.constant 0 : index
    %c7 = arith.constant 7 : index
    %c0_25 = arith.constant 0 : index
    %29 = vector.load %arg3[%c0_24, %c7, %c0_25] : memref<1x36x128xbf16, #tpu.memory_space<vmem>>, vector<1x22x128xbf16>
    %30 = vector.shape_cast %29 : vector<1x22x128xbf16> to vector<22x128xbf16>
    %c0_26 = arith.constant 0 : index
    %c512 = arith.constant 512 : index
    %c0_27 = arith.constant 0 : index
    %31 = vector.load %arg4[%c0_26, %c512, %c0_27] : memref<1x1152x256xbf16, #tpu.memory_space<vmem>>, vector<1x128x256xbf16>
    %32 = vector.shape_cast %31 : vector<1x128x256xbf16> to vector<128x256xbf16>
    %cst_28 = arith.constant dense<0.000000e+00> : vector<22x256xf32>
    %33 = tpu.matmul %30, %32, %cst_28 {dimension_numbers = #tpu.dot_dimension_numbers<[1], [0], [0], [1], [0, 0, 1, 1], [], []>} : vector<22x128xbf16>, vector<128x256xbf16>, vector<22x256xf32> -> vector<22x256xf32>
    %34 = arith.addf %28, %33 : vector<22x256xf32>
    %c0_29 = arith.constant 0 : index
    %c8 = arith.constant 8 : index
    %c0_30 = arith.constant 0 : index
    %35 = vector.load %arg3[%c0_29, %c8, %c0_30] : memref<1x36x128xbf16, #tpu.memory_space<vmem>>, vector<1x22x128xbf16>
    %36 = vector.shape_cast %35 : vector<1x22x128xbf16> to vector<22x128xbf16>
    %c0_31 = arith.constant 0 : index
    %c640 = arith.constant 640 : index
    %c0_32 = arith.constant 0 : index
    %37 = vector.load %arg4[%c0_31, %c640, %c0_32] : memref<1x1152x256xbf16, #tpu.memory_space<vmem>>, vector<1x128x256xbf16>
    %38 = vector.shape_cast %37 : vector<1x128x256xbf16> to vector<128x256xbf16>
    %cst_33 = arith.constant dense<0.000000e+00> : vector<22x256xf32>
    %39 = tpu.matmul %36, %38, %cst_33 {dimension_numbers = #tpu.dot_dimension_numbers<[1], [0], [0], [1], [0, 0, 1, 1], [], []>} : vector<22x128xbf16>, vector<128x256xbf16>, vector<22x256xf32> -> vector<22x256xf32>
    %40 = arith.addf %34, %39 : vector<22x256xf32>
    %c0_34 = arith.constant 0 : index
    %c12 = arith.constant 12 : index
    %c0_35 = arith.constant 0 : index
    %41 = vector.load %arg3[%c0_34, %c12, %c0_35] : memref<1x36x128xbf16, #tpu.memory_space<vmem>>, vector<1x22x128xbf16>
    %42 = vector.shape_cast %41 : vector<1x22x128xbf16> to vector<22x128xbf16>
    %c0_36 = arith.constant 0 : index
    %c768 = arith.constant 768 : index
    %c0_37 = arith.constant 0 : index
    %43 = vector.load %arg4[%c0_36, %c768, %c0_37] : memref<1x1152x256xbf16, #tpu.memory_space<vmem>>, vector<1x128x256xbf16>
    %44 = vector.shape_cast %43 : vector<1x128x256xbf16> to vector<128x256xbf16>
    %cst_38 = arith.constant dense<0.000000e+00> : vector<22x256xf32>
    %45 = tpu.matmul %42, %44, %cst_38 {dimension_numbers = #tpu.dot_dimension_numbers<[1], [0], [0], [1], [0, 0, 1, 1], [], []>} : vector<22x128xbf16>, vector<128x256xbf16>, vector<22x256xf32> -> vector<22x256xf32>
    %46 = arith.addf %40, %45 : vector<22x256xf32>
    %c0_39 = arith.constant 0 : index
    %c13 = arith.constant 13 : index
    %c0_40 = arith.constant 0 : index
    %47 = vector.load %arg3[%c0_39, %c13, %c0_40] : memref<1x36x128xbf16, #tpu.memory_space<vmem>>, vector<1x22x128xbf16>
    %48 = vector.shape_cast %47 : vector<1x22x128xbf16> to vector<22x128xbf16>
    %c0_41 = arith.constant 0 : index
    %c896 = arith.constant 896 : index
    %c0_42 = arith.constant 0 : index
    %49 = vector.load %arg4[%c0_41, %c896, %c0_42] : memref<1x1152x256xbf16, #tpu.memory_space<vmem>>, vector<1x128x256xbf16>
    %50 = vector.shape_cast %49 : vector<1x128x256xbf16> to vector<128x256xbf16>
    %cst_43 = arith.constant dense<0.000000e+00> : vector<22x256xf32>
    %51 = tpu.matmul %48, %50, %cst_43 {dimension_numbers = #tpu.dot_dimension_numbers<[1], [0], [0], [1], [0, 0, 1, 1], [], []>} : vector<22x128xbf16>, vector<128x256xbf16>, vector<22x256xf32> -> vector<22x256xf32>
    %52 = arith.addf %46, %51 : vector<22x256xf32>
    %c0_44 = arith.constant 0 : index
    %c14 = arith.constant 14 : index
    %c0_45 = arith.constant 0 : index
    %53 = vector.load %arg3[%c0_44, %c14, %c0_45] : memref<1x36x128xbf16, #tpu.memory_space<vmem>>, vector<1x22x128xbf16>
    %54 = vector.shape_cast %53 : vector<1x22x128xbf16> to vector<22x128xbf16>
    %c0_46 = arith.constant 0 : index
    %c1024 = arith.constant 1024 : index
    %c0_47 = arith.constant 0 : index
    %55 = vector.load %arg4[%c0_46, %c1024, %c0_47] : memref<1x1152x256xbf16, #tpu.memory_space<vmem>>, vector<1x128x256xbf16>
    %56 = vector.shape_cast %55 : vector<1x128x256xbf16> to vector<128x256xbf16>
    %cst_48 = arith.constant dense<0.000000e+00> : vector<22x256xf32>
    %57 = tpu.matmul %54, %56, %cst_48 {dimension_numbers = #tpu.dot_dimension_numbers<[1], [0], [0], [1], [0, 0, 1, 1], [], []>} : vector<22x128xbf16>, vector<128x256xbf16>, vector<22x256xf32> -> vector<22x256xf32>
    %58 = arith.addf %52, %57 : vector<22x256xf32>
    %59 = arith.addf %3, %58 : vector<22x256xf32>
    %c0_49 = arith.constant 0 : index
    %c0_50 = arith.constant 0 : index
    %60 = vector.load %arg8[%c0_49, %c0_50] : memref<22x256xf32, #tpu.memory_space<vmem>>, vector<22x256xf32>
    tpu.vector_store %arg8[%c0_49, %c0_50], %59 {strides = array<i32>} : memref<22x256xf32, #tpu.memory_space<vmem>>, vector<22x256xf32>,
    %c0_i32_51 = arith.constant 0 : i32
    %61 = arith.cmpi eq, %arg2, %c0_i32_51 : i32
    %62 = arith.extui %61 : i1 to i32
    %c0_i32_52 = arith.constant 0 : i32
    %63 = arith.cmpi ne, %62, %c0_i32_52 : i32
    scf.if %63 {
      %c0_53 = arith.constant 0 : index
      %c0_54 = arith.constant 0 : index
      %64 = vector.load %arg8[%c0_53, %c0_54] : memref<22x256xf32, #tpu.memory_space<vmem>>, vector<22x256xf32>
      %c0_55 = arith.constant 0 : index
      %c0_56 = arith.constant 0 : index
      %65 = vector.load %arg5[%c0_55, %c0_56] : memref<1x256xf32, #tpu.memory_space<vmem>>, vector<1x256xf32>
      %66 = vector.broadcast %65 : vector<1x256xf32> to vector<22x256xf32>
      %67 = arith.mulf %64, %66 : vector<22x256xf32>
      %c0_57 = arith.constant 0 : index
      %c0_58 = arith.constant 0 : index
      %68 = vector.load %arg6[%c0_57, %c0_58] : memref<1x256xf32, #tpu.memory_space<vmem>>, vector<1x256xf32>
      %69 = vector.broadcast %68 : vector<1x256xf32> to vector<22x256xf32>
      %70 = arith.addf %67, %69 : vector<22x256xf32>
      %cst_59 = arith.constant 0.000000e+00 : f32
      %71 = vector.broadcast %cst_59 : f32 to vector<22x256xf32>
      %72 = arith.maximumf %70, %71 : vector<22x256xf32>
      %73 = arith.truncf %72 : vector<22x256xf32> to vector<22x256xbf16>
      %c0_60 = arith.constant 0 : index
      %c0_61 = arith.constant 0 : index
      %c0_62 = arith.constant 0 : index
      %74 = vector.load %arg7[%c0_60, %c0_61, %c0_62] : memref<1x22x256xbf16, #tpu.memory_space<vmem>>, vector<1x22x256xbf16>
      %75 = vector.shape_cast %74 : vector<1x22x256xbf16> to vector<22x256xbf16>
      %76 = vector.shape_cast %73 : vector<22x256xbf16> to vector<1x22x256xbf16>
      tpu.vector_store %arg7[%c0_60, %c0_61, %c0_62], %76 {strides = array<i32>} : memref<1x22x256xbf16, #tpu.memory_space<vmem>>, vector<1x22x256xbf16>,
    } else {
    }
    return
  }
  func.func @transform_0(%arg0: i32, %arg1: i32, %arg2: i32) -> (i32, i32, i32) {
    %c0_i32 = arith.constant 0 : i32
    %c0_i32_0 = arith.constant 0 : i32
    return %arg0, %c0_i32, %arg2 : i32, i32, i32
  }
  func.func @transform_1(%arg0: i32, %arg1: i32, %arg2: i32) -> (i32, i32, i32) {
    %c0_i32 = arith.constant 0 : i32
    %c0_i32_0 = arith.constant 0 : i32
    return %arg2, %c0_i32, %arg1 : i32, i32, i32
  }
  func.func @transform_2(%arg0: i32, %arg1: i32, %arg2: i32) -> (i32, i32) {
    %c0_i32 = arith.constant 0 : i32
    %c0_i32_0 = arith.constant 0 : i32
    return %c0_i32, %arg1 : i32, i32
  }
  func.func @transform_3(%arg0: i32, %arg1: i32, %arg2: i32) -> (i32, i32) {
    %c0_i32 = arith.constant 0 : i32
    %c0_i32_0 = arith.constant 0 : i32
    return %c0_i32, %arg1 : i32, i32
  }
  func.func @transform_4(%arg0: i32, %arg1: i32, %arg2: i32) -> (i32, i32, i32) {
    %c0_i32 = arith.constant 0 : i32
    %c0_i32_0 = arith.constant 0 : i32
    return %arg0, %c0_i32, %arg1 : i32, i32, i32
  }
}

module attributes {stable_mosaic.version = 11 : i64} {
  func.func @_psp_branch_kernel(%arg0: i32, %arg1: i32, %arg2: memref<1x16x64xbf16, #tpu.memory_space<vmem>>, %arg3: memref<1x36x16xbf16, #tpu.memory_space<vmem>>, %arg4: memref<1x64x128xbf16, #tpu.memory_space<vmem>>, %arg5: memref<1x36x36xbf16, #tpu.memory_space<vmem>>, %arg6: memref<1x1x36x128xbf16, #tpu.memory_space<vmem>>) attributes {dimension_semantics = [#tpu.dimension_semantics<parallel>, #tpu.dimension_semantics<parallel>], iteration_bounds = array<i64: 2, 4>, scalar_prefetch = 0 : i64, scratch_operands = 0 : i64, tpu.core_type = #tpu.core_type<tc>, window_params = [{transform_indices = @transform_0, window_bounds = array<i64: 1, 16, 64>}, {transform_indices = @transform_1, window_bounds = array<i64: 1, 36, 16>}, {transform_indices = @transform_2, window_bounds = array<i64: 1, 64, 128>}, {transform_indices = @transform_3, window_bounds = array<i64: 1, 36, 36>}, {transform_indices = @transform_4, window_bounds = array<i64: 1, 1, 36, 128>}]} {
    %c0 = arith.constant 0 : index
    %c0_0 = arith.constant 0 : index
    %c0_1 = arith.constant 0 : index
    %0 = vector.load %arg3[%c0, %c0_0, %c0_1] : memref<1x36x16xbf16, #tpu.memory_space<vmem>>, vector<1x36x16xbf16>
    %1 = vector.shape_cast %0 : vector<1x36x16xbf16> to vector<36x16xbf16>
    %c0_2 = arith.constant 0 : index
    %c0_3 = arith.constant 0 : index
    %c0_4 = arith.constant 0 : index
    %2 = vector.load %arg2[%c0_2, %c0_3, %c0_4] : memref<1x16x64xbf16, #tpu.memory_space<vmem>>, vector<1x16x64xbf16>
    %3 = vector.shape_cast %2 : vector<1x16x64xbf16> to vector<16x64xbf16>
    %cst = arith.constant dense<0.000000e+00> : vector<36x64xf32>
    %4 = tpu.matmul %1, %3, %cst {dimension_numbers = #tpu.dot_dimension_numbers<[1], [0], [0], [1], [0, 0, 1, 1], [], []>} : vector<36x16xbf16>, vector<16x64xbf16>, vector<36x64xf32> -> vector<36x64xf32>
    %5 = arith.truncf %4 : vector<36x64xf32> to vector<36x64xbf16>
    %c0_5 = arith.constant 0 : index
    %c0_6 = arith.constant 0 : index
    %c0_7 = arith.constant 0 : index
    %6 = vector.load %arg4[%c0_5, %c0_6, %c0_7] : memref<1x64x128xbf16, #tpu.memory_space<vmem>>, vector<1x64x128xbf16>
    %7 = vector.shape_cast %6 : vector<1x64x128xbf16> to vector<64x128xbf16>
    %cst_8 = arith.constant dense<0.000000e+00> : vector<36x128xf32>
    %8 = tpu.matmul %5, %7, %cst_8 {dimension_numbers = #tpu.dot_dimension_numbers<[1], [0], [0], [1], [0, 0, 1, 1], [], []>} : vector<36x64xbf16>, vector<64x128xbf16>, vector<36x128xf32> -> vector<36x128xf32>
    %c0_9 = arith.constant 0 : index
    %c0_10 = arith.constant 0 : index
    %c0_11 = arith.constant 0 : index
    %9 = vector.load %arg5[%c0_9, %c0_10, %c0_11] : memref<1x36x36xbf16, #tpu.memory_space<vmem>>, vector<1x36x36xbf16>
    %10 = vector.shape_cast %9 : vector<1x36x36xbf16> to vector<36x36xbf16>
    %11 = arith.truncf %8 : vector<36x128xf32> to vector<36x128xbf16>
    %cst_12 = arith.constant dense<0.000000e+00> : vector<36x128xf32>
    %12 = tpu.matmul %10, %11, %cst_12 {dimension_numbers = #tpu.dot_dimension_numbers<[1], [0], [0], [1], [0, 0, 1, 1], [], []>} : vector<36x36xbf16>, vector<36x128xbf16>, vector<36x128xf32> -> vector<36x128xf32>
    %13 = arith.truncf %12 : vector<36x128xf32> to vector<36x128xbf16>
    %c0_13 = arith.constant 0 : index
    %c0_14 = arith.constant 0 : index
    %c0_15 = arith.constant 0 : index
    %c0_16 = arith.constant 0 : index
    %14 = vector.load %arg6[%c0_13, %c0_14, %c0_15, %c0_16] : memref<1x1x36x128xbf16, #tpu.memory_space<vmem>>, vector<1x1x36x128xbf16>
    %15 = vector.shape_cast %14 : vector<1x1x36x128xbf16> to vector<36x128xbf16>
    %16 = vector.shape_cast %13 : vector<36x128xbf16> to vector<1x1x36x128xbf16>
    tpu.vector_store %arg6[%c0_13, %c0_14, %c0_15, %c0_16], %16 {strides = array<i32>} : memref<1x1x36x128xbf16, #tpu.memory_space<vmem>>, vector<1x1x36x128xbf16>,
    return
  }
  func.func @transform_0(%arg0: i32, %arg1: i32) -> (i32, i32, i32) {
    %c0_i32 = arith.constant 0 : i32
    %c0_i32_0 = arith.constant 0 : i32
    %c0_i32_1 = arith.constant 0 : i32
    return %arg0, %c0_i32, %c0_i32_0 : i32, i32, i32
  }
  func.func @transform_1(%arg0: i32, %arg1: i32) -> (i32, i32, i32) {
    %c0_i32 = arith.constant 0 : i32
    %c0_i32_0 = arith.constant 0 : i32
    %c0_i32_1 = arith.constant 0 : i32
    return %arg1, %c0_i32, %c0_i32_0 : i32, i32, i32
  }
  func.func @transform_2(%arg0: i32, %arg1: i32) -> (i32, i32, i32) {
    %c0_i32 = arith.constant 0 : i32
    %c0_i32_0 = arith.constant 0 : i32
    %c0_i32_1 = arith.constant 0 : i32
    return %arg1, %c0_i32, %c0_i32_0 : i32, i32, i32
  }
  func.func @transform_3(%arg0: i32, %arg1: i32) -> (i32, i32, i32) {
    %c0_i32 = arith.constant 0 : i32
    %c0_i32_0 = arith.constant 0 : i32
    %c0_i32_1 = arith.constant 0 : i32
    return %arg1, %c0_i32, %c0_i32_0 : i32, i32, i32
  }
  func.func @transform_4(%arg0: i32, %arg1: i32) -> (i32, i32, i32, i32) {
    %c0_i32 = arith.constant 0 : i32
    %c0_i32_0 = arith.constant 0 : i32
    %c0_i32_1 = arith.constant 0 : i32
    return %arg0, %arg1, %c0_i32, %c0_i32_0 : i32, i32, i32, i32
  }
}

module attributes {stable_mosaic.version = 11 : i64} {
  func.func @_final_conv3x3_kernel(%arg0: i32, %arg1: i32, %arg2: i32, %arg3: memref<1x36x128xbf16, #tpu.memory_space<vmem>>, %arg4: memref<1x1x36x128xbf16, #tpu.memory_space<vmem>>, %arg5: memref<1x1152x256xbf16, #tpu.memory_space<vmem>>, %arg6: memref<1x256xf32, #tpu.memory_space<vmem>>, %arg7: memref<1x256xf32, #tpu.memory_space<vmem>>, %arg8: memref<1x22x256xbf16, #tpu.memory_space<vmem>>, %arg9: memref<22x256xf32, #tpu.memory_space<vmem>>) attributes {dimension_semantics = [#tpu.dimension_semantics<parallel>, #tpu.dimension_semantics<parallel>, #tpu.dimension_semantics<arbitrary>], iteration_bounds = array<i64: 2, 1, 5>, scalar_prefetch = 0 : i64, scratch_operands = 1 : i64, tpu.core_type = #tpu.core_type<tc>, window_params = [{transform_indices = @transform_0, window_bounds = array<i64: 1, 36, 128>}, {transform_indices = @transform_1, window_bounds = array<i64: 1, 1, 36, 128>}, {transform_indices = @transform_2, window_bounds = array<i64: 1, 1152, 256>}, {transform_indices = @transform_3, window_bounds = array<i64: 1, 256>}, {transform_indices = @transform_4, window_bounds = array<i64: 1, 256>}, {transform_indices = @transform_5, window_bounds = array<i64: 1, 22, 256>}]} {
    %c0_i32 = arith.constant 0 : i32
    %0 = arith.cmpi eq, %arg2, %c0_i32 : i32
    %1 = arith.extui %0 : i1 to i32
    %c0_i32_0 = arith.constant 0 : i32
    %2 = arith.cmpi ne, %1, %c0_i32_0 : i32
    scf.if %2 {
      %cst = arith.constant 0.000000e+00 : f32
      %12 = vector.broadcast %cst : f32 to vector<22x256xf32>
      %c0 = arith.constant 0 : index
      %c0_6 = arith.constant 0 : index
      %13 = vector.load %arg9[%c0, %c0_6] : memref<22x256xf32, #tpu.memory_space<vmem>>, vector<22x256xf32>
      tpu.vector_store %arg9[%c0, %c0_6], %12 {strides = array<i32>} : memref<22x256xf32, #tpu.memory_space<vmem>>, vector<22x256xf32>,
    } else {
    }
    %c4_i32 = arith.constant 4 : i32
    %3 = arith.cmpi slt, %arg2, %c4_i32 : i32
    %4 = arith.extui %3 : i1 to i32
    %c0_i32_1 = arith.constant 0 : i32
    %5 = arith.cmpi ne, %4, %c0_i32_1 : i32
    scf.if %5 {
      %c0 = arith.constant 0 : index
      %c0_6 = arith.constant 0 : index
      %12 = vector.load %arg9[%c0, %c0_6] : memref<22x256xf32, #tpu.memory_space<vmem>>, vector<22x256xf32>
      %cst = arith.constant 0.000000e+00 : f32
      %13 = vector.broadcast %cst : f32 to vector<22x256xf32>
      %c0_7 = arith.constant 0 : index
      %c0_8 = arith.constant 0 : index
      %c0_9 = arith.constant 0 : index
      %c0_10 = arith.constant 0 : index
      %14 = vector.load %arg4[%c0_7, %c0_8, %c0_9, %c0_10] : memref<1x1x36x128xbf16, #tpu.memory_space<vmem>>, vector<1x1x22x128xbf16>
      %15 = vector.shape_cast %14 : vector<1x1x22x128xbf16> to vector<22x128xbf16>
      %c0_11 = arith.constant 0 : index
      %c0_12 = arith.constant 0 : index
      %c0_13 = arith.constant 0 : index
      %16 = vector.load %arg5[%c0_11, %c0_12, %c0_13] : memref<1x1152x256xbf16, #tpu.memory_space<vmem>>, vector<1x128x256xbf16>
      %17 = vector.shape_cast %16 : vector<1x128x256xbf16> to vector<128x256xbf16>
      %cst_14 = arith.constant dense<0.000000e+00> : vector<22x256xf32>
      %18 = tpu.matmul %15, %17, %cst_14 {dimension_numbers = #tpu.dot_dimension_numbers<[1], [0], [0], [1], [0, 0, 1, 1], [], []>} : vector<22x128xbf16>, vector<128x256xbf16>, vector<22x256xf32> -> vector<22x256xf32>
      %19 = arith.addf %13, %18 : vector<22x256xf32>
      %c0_15 = arith.constant 0 : index
      %c0_16 = arith.constant 0 : index
      %c1 = arith.constant 1 : index
      %c0_17 = arith.constant 0 : index
      %20 = vector.load %arg4[%c0_15, %c0_16, %c1, %c0_17] : memref<1x1x36x128xbf16, #tpu.memory_space<vmem>>, vector<1x1x22x128xbf16>
      %21 = vector.shape_cast %20 : vector<1x1x22x128xbf16> to vector<22x128xbf16>
      %c0_18 = arith.constant 0 : index
      %c128 = arith.constant 128 : index
      %c0_19 = arith.constant 0 : index
      %22 = vector.load %arg5[%c0_18, %c128, %c0_19] : memref<1x1152x256xbf16, #tpu.memory_space<vmem>>, vector<1x128x256xbf16>
      %23 = vector.shape_cast %22 : vector<1x128x256xbf16> to vector<128x256xbf16>
      %cst_20 = arith.constant dense<0.000000e+00> : vector<22x256xf32>
      %24 = tpu.matmul %21, %23, %cst_20 {dimension_numbers = #tpu.dot_dimension_numbers<[1], [0], [0], [1], [0, 0, 1, 1], [], []>} : vector<22x128xbf16>, vector<128x256xbf16>, vector<22x256xf32> -> vector<22x256xf32>
      %25 = arith.addf %19, %24 : vector<22x256xf32>
      %c0_21 = arith.constant 0 : index
      %c0_22 = arith.constant 0 : index
      %c2 = arith.constant 2 : index
      %c0_23 = arith.constant 0 : index
      %26 = vector.load %arg4[%c0_21, %c0_22, %c2, %c0_23] : memref<1x1x36x128xbf16, #tpu.memory_space<vmem>>, vector<1x1x22x128xbf16>
      %27 = vector.shape_cast %26 : vector<1x1x22x128xbf16> to vector<22x128xbf16>
      %c0_24 = arith.constant 0 : index
      %c256 = arith.constant 256 : index
      %c0_25 = arith.constant 0 : index
      %28 = vector.load %arg5[%c0_24, %c256, %c0_25] : memref<1x1152x256xbf16, #tpu.memory_space<vmem>>, vector<1x128x256xbf16>
      %29 = vector.shape_cast %28 : vector<1x128x256xbf16> to vector<128x256xbf16>
      %cst_26 = arith.constant dense<0.000000e+00> : vector<22x256xf32>
      %30 = tpu.matmul %27, %29, %cst_26 {dimension_numbers = #tpu.dot_dimension_numbers<[1], [0], [0], [1], [0, 0, 1, 1], [], []>} : vector<22x128xbf16>, vector<128x256xbf16>, vector<22x256xf32> -> vector<22x256xf32>
      %31 = arith.addf %25, %30 : vector<22x256xf32>
      %c0_27 = arith.constant 0 : index
      %c0_28 = arith.constant 0 : index
      %c6 = arith.constant 6 : index
      %c0_29 = arith.constant 0 : index
      %32 = vector.load %arg4[%c0_27, %c0_28, %c6, %c0_29] : memref<1x1x36x128xbf16, #tpu.memory_space<vmem>>, vector<1x1x22x128xbf16>
      %33 = vector.shape_cast %32 : vector<1x1x22x128xbf16> to vector<22x128xbf16>
      %c0_30 = arith.constant 0 : index
      %c384 = arith.constant 384 : index
      %c0_31 = arith.constant 0 : index
      %34 = vector.load %arg5[%c0_30, %c384, %c0_31] : memref<1x1152x256xbf16, #tpu.memory_space<vmem>>, vector<1x128x256xbf16>
      %35 = vector.shape_cast %34 : vector<1x128x256xbf16> to vector<128x256xbf16>
      %cst_32 = arith.constant dense<0.000000e+00> : vector<22x256xf32>
      %36 = tpu.matmul %33, %35, %cst_32 {dimension_numbers = #tpu.dot_dimension_numbers<[1], [0], [0], [1], [0, 0, 1, 1], [], []>} : vector<22x128xbf16>, vector<128x256xbf16>, vector<22x256xf32> -> vector<22x256xf32>
      %37 = arith.addf %31, %36 : vector<22x256xf32>
      %c0_33 = arith.constant 0 : index
      %c0_34 = arith.constant 0 : index
      %c7 = arith.constant 7 : index
      %c0_35 = arith.constant 0 : index
      %38 = vector.load %arg4[%c0_33, %c0_34, %c7, %c0_35] : memref<1x1x36x128xbf16, #tpu.memory_space<vmem>>, vector<1x1x22x128xbf16>
      %39 = vector.shape_cast %38 : vector<1x1x22x128xbf16> to vector<22x128xbf16>
      %c0_36 = arith.constant 0 : index
      %c512 = arith.constant 512 : index
      %c0_37 = arith.constant 0 : index
      %40 = vector.load %arg5[%c0_36, %c512, %c0_37] : memref<1x1152x256xbf16, #tpu.memory_space<vmem>>, vector<1x128x256xbf16>
      %41 = vector.shape_cast %40 : vector<1x128x256xbf16> to vector<128x256xbf16>
      %cst_38 = arith.constant dense<0.000000e+00> : vector<22x256xf32>
      %42 = tpu.matmul %39, %41, %cst_38 {dimension_numbers = #tpu.dot_dimension_numbers<[1], [0], [0], [1], [0, 0, 1, 1], [], []>} : vector<22x128xbf16>, vector<128x256xbf16>, vector<22x256xf32> -> vector<22x256xf32>
      %43 = arith.addf %37, %42 : vector<22x256xf32>
      %c0_39 = arith.constant 0 : index
      %c0_40 = arith.constant 0 : index
      %c8 = arith.constant 8 : index
      %c0_41 = arith.constant 0 : index
      %44 = vector.load %arg4[%c0_39, %c0_40, %c8, %c0_41] : memref<1x1x36x128xbf16, #tpu.memory_space<vmem>>, vector<1x1x22x128xbf16>
      %45 = vector.shape_cast %44 : vector<1x1x22x128xbf16> to vector<22x128xbf16>
      %c0_42 = arith.constant 0 : index
      %c640 = arith.constant 640 : index
      %c0_43 = arith.constant 0 : index
      %46 = vector.load %arg5[%c0_42, %c640, %c0_43] : memref<1x1152x256xbf16, #tpu.memory_space<vmem>>, vector<1x128x256xbf16>
      %47 = vector.shape_cast %46 : vector<1x128x256xbf16> to vector<128x256xbf16>
      %cst_44 = arith.constant dense<0.000000e+00> : vector<22x256xf32>
      %48 = tpu.matmul %45, %47, %cst_44 {dimension_numbers = #tpu.dot_dimension_numbers<[1], [0], [0], [1], [0, 0, 1, 1], [], []>} : vector<22x128xbf16>, vector<128x256xbf16>, vector<22x256xf32> -> vector<22x256xf32>
      %49 = arith.addf %43, %48 : vector<22x256xf32>
      %c0_45 = arith.constant 0 : index
      %c0_46 = arith.constant 0 : index
      %c12 = arith.constant 12 : index
      %c0_47 = arith.constant 0 : index
      %50 = vector.load %arg4[%c0_45, %c0_46, %c12, %c0_47] : memref<1x1x36x128xbf16, #tpu.memory_space<vmem>>, vector<1x1x22x128xbf16>
      %51 = vector.shape_cast %50 : vector<1x1x22x128xbf16> to vector<22x128xbf16>
      %c0_48 = arith.constant 0 : index
      %c768 = arith.constant 768 : index
      %c0_49 = arith.constant 0 : index
      %52 = vector.load %arg5[%c0_48, %c768, %c0_49] : memref<1x1152x256xbf16, #tpu.memory_space<vmem>>, vector<1x128x256xbf16>
      %53 = vector.shape_cast %52 : vector<1x128x256xbf16> to vector<128x256xbf16>
      %cst_50 = arith.constant dense<0.000000e+00> : vector<22x256xf32>
      %54 = tpu.matmul %51, %53, %cst_50 {dimension_numbers = #tpu.dot_dimension_numbers<[1], [0], [0], [1], [0, 0, 1, 1], [], []>} : vector<22x128xbf16>, vector<128x256xbf16>, vector<22x256xf32> -> vector<22x256xf32>
      %55 = arith.addf %49, %54 : vector<22x256xf32>
      %c0_51 = arith.constant 0 : index
      %c0_52 = arith.constant 0 : index
      %c13 = arith.constant 13 : index
      %c0_53 = arith.constant 0 : index
      %56 = vector.load %arg4[%c0_51, %c0_52, %c13, %c0_53] : memref<1x1x36x128xbf16, #tpu.memory_space<vmem>>, vector<1x1x22x128xbf16>
      %57 = vector.shape_cast %56 : vector<1x1x22x128xbf16> to vector<22x128xbf16>
      %c0_54 = arith.constant 0 : index
      %c896 = arith.constant 896 : index
      %c0_55 = arith.constant 0 : index
      %58 = vector.load %arg5[%c0_54, %c896, %c0_55] : memref<1x1152x256xbf16, #tpu.memory_space<vmem>>, vector<1x128x256xbf16>
      %59 = vector.shape_cast %58 : vector<1x128x256xbf16> to vector<128x256xbf16>
      %cst_56 = arith.constant dense<0.000000e+00> : vector<22x256xf32>
      %60 = tpu.matmul %57, %59, %cst_56 {dimension_numbers = #tpu.dot_dimension_numbers<[1], [0], [0], [1], [0, 0, 1, 1], [], []>} : vector<22x128xbf16>, vector<128x256xbf16>, vector<22x256xf32> -> vector<22x256xf32>
      %61 = arith.addf %55, %60 : vector<22x256xf32>
      %c0_57 = arith.constant 0 : index
      %c0_58 = arith.constant 0 : index
      %c14 = arith.constant 14 : index
      %c0_59 = arith.constant 0 : index
      %62 = vector.load %arg4[%c0_57, %c0_58, %c14, %c0_59] : memref<1x1x36x128xbf16, #tpu.memory_space<vmem>>, vector<1x1x22x128xbf16>
      %63 = vector.shape_cast %62 : vector<1x1x22x128xbf16> to vector<22x128xbf16>
      %c0_60 = arith.constant 0 : index
      %c1024 = arith.constant 1024 : index
      %c0_61 = arith.constant 0 : index
      %64 = vector.load %arg5[%c0_60, %c1024, %c0_61] : memref<1x1152x256xbf16, #tpu.memory_space<vmem>>, vector<1x128x256xbf16>
      %65 = vector.shape_cast %64 : vector<1x128x256xbf16> to vector<128x256xbf16>
      %cst_62 = arith.constant dense<0.000000e+00> : vector<22x256xf32>
      %66 = tpu.matmul %63, %65, %cst_62 {dimension_numbers = #tpu.dot_dimension_numbers<[1], [0], [0], [1], [0, 0, 1, 1], [], []>} : vector<22x128xbf16>, vector<128x256xbf16>, vector<22x256xf32> -> vector<22x256xf32>
      %67 = arith.addf %61, %66 : vector<22x256xf32>
      %68 = arith.addf %12, %67 : vector<22x256xf32>
      %c0_63 = arith.constant 0 : index
      %c0_64 = arith.constant 0 : index
      %69 = vector.load %arg9[%c0_63, %c0_64] : memref<22x256xf32, #tpu.memory_space<vmem>>, vector<22x256xf32>
      tpu.vector_store %arg9[%c0_63, %c0_64], %68 {strides = array<i32>} : memref<22x256xf32, #tpu.memory_space<vmem>>, vector<22x256xf32>,
    } else {
    }
    %c4_i32_2 = arith.constant 4 : i32
    %6 = arith.cmpi sge, %arg2, %c4_i32_2 : i32
    %7 = arith.extui %6 : i1 to i32
    %c0_i32_3 = arith.constant 0 : i32
    %8 = arith.cmpi ne, %7, %c0_i32_3 : i32
    scf.if %8 {
      %c0 = arith.constant 0 : index
      %c0_6 = arith.constant 0 : index
      %12 = vector.load %arg9[%c0, %c0_6] : memref<22x256xf32, #tpu.memory_space<vmem>>, vector<22x256xf32>
      %cst = arith.constant 0.000000e+00 : f32
      %13 = vector.broadcast %cst : f32 to vector<22x256xf32>
      %c0_7 = arith.constant 0 : index
      %c0_8 = arith.constant 0 : index
      %c0_9 = arith.constant 0 : index
      %14 = vector.load %arg3[%c0_7, %c0_8, %c0_9] : memref<1x36x128xbf16, #tpu.memory_space<vmem>>, vector<1x22x128xbf16>
      %15 = vector.shape_cast %14 : vector<1x22x128xbf16> to vector<22x128xbf16>
      %c0_10 = arith.constant 0 : index
      %c0_11 = arith.constant 0 : index
      %c0_12 = arith.constant 0 : index
      %16 = vector.load %arg5[%c0_10, %c0_11, %c0_12] : memref<1x1152x256xbf16, #tpu.memory_space<vmem>>, vector<1x128x256xbf16>
      %17 = vector.shape_cast %16 : vector<1x128x256xbf16> to vector<128x256xbf16>
      %cst_13 = arith.constant dense<0.000000e+00> : vector<22x256xf32>
      %18 = tpu.matmul %15, %17, %cst_13 {dimension_numbers = #tpu.dot_dimension_numbers<[1], [0], [0], [1], [0, 0, 1, 1], [], []>} : vector<22x128xbf16>, vector<128x256xbf16>, vector<22x256xf32> -> vector<22x256xf32>
      %19 = arith.addf %13, %18 : vector<22x256xf32>
      %c0_14 = arith.constant 0 : index
      %c1 = arith.constant 1 : index
      %c0_15 = arith.constant 0 : index
      %20 = vector.load %arg3[%c0_14, %c1, %c0_15] : memref<1x36x128xbf16, #tpu.memory_space<vmem>>, vector<1x22x128xbf16>
      %21 = vector.shape_cast %20 : vector<1x22x128xbf16> to vector<22x128xbf16>
      %c0_16 = arith.constant 0 : index
      %c128 = arith.constant 128 : index
      %c0_17 = arith.constant 0 : index
      %22 = vector.load %arg5[%c0_16, %c128, %c0_17] : memref<1x1152x256xbf16, #tpu.memory_space<vmem>>, vector<1x128x256xbf16>
      %23 = vector.shape_cast %22 : vector<1x128x256xbf16> to vector<128x256xbf16>
      %cst_18 = arith.constant dense<0.000000e+00> : vector<22x256xf32>
      %24 = tpu.matmul %21, %23, %cst_18 {dimension_numbers = #tpu.dot_dimension_numbers<[1], [0], [0], [1], [0, 0, 1, 1], [], []>} : vector<22x128xbf16>, vector<128x256xbf16>, vector<22x256xf32> -> vector<22x256xf32>
      %25 = arith.addf %19, %24 : vector<22x256xf32>
      %c0_19 = arith.constant 0 : index
      %c2 = arith.constant 2 : index
      %c0_20 = arith.constant 0 : index
      %26 = vector.load %arg3[%c0_19, %c2, %c0_20] : memref<1x36x128xbf16, #tpu.memory_space<vmem>>, vector<1x22x128xbf16>
      %27 = vector.shape_cast %26 : vector<1x22x128xbf16> to vector<22x128xbf16>
      %c0_21 = arith.constant 0 : index
      %c256 = arith.constant 256 : index
      %c0_22 = arith.constant 0 : index
      %28 = vector.load %arg5[%c0_21, %c256, %c0_22] : memref<1x1152x256xbf16, #tpu.memory_space<vmem>>, vector<1x128x256xbf16>
      %29 = vector.shape_cast %28 : vector<1x128x256xbf16> to vector<128x256xbf16>
      %cst_23 = arith.constant dense<0.000000e+00> : vector<22x256xf32>
      %30 = tpu.matmul %27, %29, %cst_23 {dimension_numbers = #tpu.dot_dimension_numbers<[1], [0], [0], [1], [0, 0, 1, 1], [], []>} : vector<22x128xbf16>, vector<128x256xbf16>, vector<22x256xf32> -> vector<22x256xf32>
      %31 = arith.addf %25, %30 : vector<22x256xf32>
      %c0_24 = arith.constant 0 : index
      %c6 = arith.constant 6 : index
      %c0_25 = arith.constant 0 : index
      %32 = vector.load %arg3[%c0_24, %c6, %c0_25] : memref<1x36x128xbf16, #tpu.memory_space<vmem>>, vector<1x22x128xbf16>
      %33 = vector.shape_cast %32 : vector<1x22x128xbf16> to vector<22x128xbf16>
      %c0_26 = arith.constant 0 : index
      %c384 = arith.constant 384 : index
      %c0_27 = arith.constant 0 : index
      %34 = vector.load %arg5[%c0_26, %c384, %c0_27] : memref<1x1152x256xbf16, #tpu.memory_space<vmem>>, vector<1x128x256xbf16>
      %35 = vector.shape_cast %34 : vector<1x128x256xbf16> to vector<128x256xbf16>
      %cst_28 = arith.constant dense<0.000000e+00> : vector<22x256xf32>
      %36 = tpu.matmul %33, %35, %cst_28 {dimension_numbers = #tpu.dot_dimension_numbers<[1], [0], [0], [1], [0, 0, 1, 1], [], []>} : vector<22x128xbf16>, vector<128x256xbf16>, vector<22x256xf32> -> vector<22x256xf32>
      %37 = arith.addf %31, %36 : vector<22x256xf32>
      %c0_29 = arith.constant 0 : index
      %c7 = arith.constant 7 : index
      %c0_30 = arith.constant 0 : index
      %38 = vector.load %arg3[%c0_29, %c7, %c0_30] : memref<1x36x128xbf16, #tpu.memory_space<vmem>>, vector<1x22x128xbf16>
      %39 = vector.shape_cast %38 : vector<1x22x128xbf16> to vector<22x128xbf16>
      %c0_31 = arith.constant 0 : index
      %c512 = arith.constant 512 : index
      %c0_32 = arith.constant 0 : index
      %40 = vector.load %arg5[%c0_31, %c512, %c0_32] : memref<1x1152x256xbf16, #tpu.memory_space<vmem>>, vector<1x128x256xbf16>
      %41 = vector.shape_cast %40 : vector<1x128x256xbf16> to vector<128x256xbf16>
      %cst_33 = arith.constant dense<0.000000e+00> : vector<22x256xf32>
      %42 = tpu.matmul %39, %41, %cst_33 {dimension_numbers = #tpu.dot_dimension_numbers<[1], [0], [0], [1], [0, 0, 1, 1], [], []>} : vector<22x128xbf16>, vector<128x256xbf16>, vector<22x256xf32> -> vector<22x256xf32>
      %43 = arith.addf %37, %42 : vector<22x256xf32>
      %c0_34 = arith.constant 0 : index
      %c8 = arith.constant 8 : index
      %c0_35 = arith.constant 0 : index
      %44 = vector.load %arg3[%c0_34, %c8, %c0_35] : memref<1x36x128xbf16, #tpu.memory_space<vmem>>, vector<1x22x128xbf16>
      %45 = vector.shape_cast %44 : vector<1x22x128xbf16> to vector<22x128xbf16>
      %c0_36 = arith.constant 0 : index
      %c640 = arith.constant 640 : index
      %c0_37 = arith.constant 0 : index
      %46 = vector.load %arg5[%c0_36, %c640, %c0_37] : memref<1x1152x256xbf16, #tpu.memory_space<vmem>>, vector<1x128x256xbf16>
      %47 = vector.shape_cast %46 : vector<1x128x256xbf16> to vector<128x256xbf16>
      %cst_38 = arith.constant dense<0.000000e+00> : vector<22x256xf32>
      %48 = tpu.matmul %45, %47, %cst_38 {dimension_numbers = #tpu.dot_dimension_numbers<[1], [0], [0], [1], [0, 0, 1, 1], [], []>} : vector<22x128xbf16>, vector<128x256xbf16>, vector<22x256xf32> -> vector<22x256xf32>
      %49 = arith.addf %43, %48 : vector<22x256xf32>
      %c0_39 = arith.constant 0 : index
      %c12 = arith.constant 12 : index
      %c0_40 = arith.constant 0 : index
      %50 = vector.load %arg3[%c0_39, %c12, %c0_40] : memref<1x36x128xbf16, #tpu.memory_space<vmem>>, vector<1x22x128xbf16>
      %51 = vector.shape_cast %50 : vector<1x22x128xbf16> to vector<22x128xbf16>
      %c0_41 = arith.constant 0 : index
      %c768 = arith.constant 768 : index
      %c0_42 = arith.constant 0 : index
      %52 = vector.load %arg5[%c0_41, %c768, %c0_42] : memref<1x1152x256xbf16, #tpu.memory_space<vmem>>, vector<1x128x256xbf16>
      %53 = vector.shape_cast %52 : vector<1x128x256xbf16> to vector<128x256xbf16>
      %cst_43 = arith.constant dense<0.000000e+00> : vector<22x256xf32>
      %54 = tpu.matmul %51, %53, %cst_43 {dimension_numbers = #tpu.dot_dimension_numbers<[1], [0], [0], [1], [0, 0, 1, 1], [], []>} : vector<22x128xbf16>, vector<128x256xbf16>, vector<22x256xf32> -> vector<22x256xf32>
      %55 = arith.addf %49, %54 : vector<22x256xf32>
      %c0_44 = arith.constant 0 : index
      %c13 = arith.constant 13 : index
      %c0_45 = arith.constant 0 : index
      %56 = vector.load %arg3[%c0_44, %c13, %c0_45] : memref<1x36x128xbf16, #tpu.memory_space<vmem>>, vector<1x22x128xbf16>
      %57 = vector.shape_cast %56 : vector<1x22x128xbf16> to vector<22x128xbf16>
      %c0_46 = arith.constant 0 : index
      %c896 = arith.constant 896 : index
      %c0_47 = arith.constant 0 : index
      %58 = vector.load %arg5[%c0_46, %c896, %c0_47] : memref<1x1152x256xbf16, #tpu.memory_space<vmem>>, vector<1x128x256xbf16>
      %59 = vector.shape_cast %58 : vector<1x128x256xbf16> to vector<128x256xbf16>
      %cst_48 = arith.constant dense<0.000000e+00> : vector<22x256xf32>
      %60 = tpu.matmul %57, %59, %cst_48 {dimension_numbers = #tpu.dot_dimension_numbers<[1], [0], [0], [1], [0, 0, 1, 1], [], []>} : vector<22x128xbf16>, vector<128x256xbf16>, vector<22x256xf32> -> vector<22x256xf32>
      %61 = arith.addf %55, %60 : vector<22x256xf32>
      %c0_49 = arith.constant 0 : index
      %c14 = arith.constant 14 : index
      %c0_50 = arith.constant 0 : index
      %62 = vector.load %arg3[%c0_49, %c14, %c0_50] : memref<1x36x128xbf16, #tpu.memory_space<vmem>>, vector<1x22x128xbf16>
      %63 = vector.shape_cast %62 : vector<1x22x128xbf16> to vector<22x128xbf16>
      %c0_51 = arith.constant 0 : index
      %c1024 = arith.constant 1024 : index
      %c0_52 = arith.constant 0 : index
      %64 = vector.load %arg5[%c0_51, %c1024, %c0_52] : memref<1x1152x256xbf16, #tpu.memory_space<vmem>>, vector<1x128x256xbf16>
      %65 = vector.shape_cast %64 : vector<1x128x256xbf16> to vector<128x256xbf16>
      %cst_53 = arith.constant dense<0.000000e+00> : vector<22x256xf32>
      %66 = tpu.matmul %63, %65, %cst_53 {dimension_numbers = #tpu.dot_dimension_numbers<[1], [0], [0], [1], [0, 0, 1, 1], [], []>} : vector<22x128xbf16>, vector<128x256xbf16>, vector<22x256xf32> -> vector<22x256xf32>
      %67 = arith.addf %61, %66 : vector<22x256xf32>
      %68 = arith.addf %12, %67 : vector<22x256xf32>
      %c0_54 = arith.constant 0 : index
      %c0_55 = arith.constant 0 : index
      %69 = vector.load %arg9[%c0_54, %c0_55] : memref<22x256xf32, #tpu.memory_space<vmem>>, vector<22x256xf32>
      tpu.vector_store %arg9[%c0_54, %c0_55], %68 {strides = array<i32>} : memref<22x256xf32, #tpu.memory_space<vmem>>, vector<22x256xf32>,
    } else {
    }
    %c4_i32_4 = arith.constant 4 : i32
    %9 = arith.cmpi eq, %arg2, %c4_i32_4 : i32
    %10 = arith.extui %9 : i1 to i32
    %c0_i32_5 = arith.constant 0 : i32
    %11 = arith.cmpi ne, %10, %c0_i32_5 : i32
    scf.if %11 {
      %c0 = arith.constant 0 : index
      %c0_6 = arith.constant 0 : index
      %12 = vector.load %arg9[%c0, %c0_6] : memref<22x256xf32, #tpu.memory_space<vmem>>, vector<22x256xf32>
      %c0_7 = arith.constant 0 : index
      %c0_8 = arith.constant 0 : index
      %13 = vector.load %arg6[%c0_7, %c0_8] : memref<1x256xf32, #tpu.memory_space<vmem>>, vector<1x256xf32>
      %14 = vector.broadcast %13 : vector<1x256xf32> to vector<22x256xf32>
      %15 = arith.mulf %12, %14 : vector<22x256xf32>
      %c0_9 = arith.constant 0 : index
      %c0_10 = arith.constant 0 : index
      %16 = vector.load %arg7[%c0_9, %c0_10] : memref<1x256xf32, #tpu.memory_space<vmem>>, vector<1x256xf32>
      %17 = vector.broadcast %16 : vector<1x256xf32> to vector<22x256xf32>
      %18 = arith.addf %15, %17 : vector<22x256xf32>
      %cst = arith.constant 0.000000e+00 : f32
      %19 = vector.broadcast %cst : f32 to vector<22x256xf32>
      %20 = arith.maximumf %18, %19 : vector<22x256xf32>
      %21 = arith.truncf %20 : vector<22x256xf32> to vector<22x256xbf16>
      %c0_11 = arith.constant 0 : index
      %c0_12 = arith.constant 0 : index
      %c0_13 = arith.constant 0 : index
      %22 = vector.load %arg8[%c0_11, %c0_12, %c0_13] : memref<1x22x256xbf16, #tpu.memory_space<vmem>>, vector<1x22x256xbf16>
      %23 = vector.shape_cast %22 : vector<1x22x256xbf16> to vector<22x256xbf16>
      %24 = vector.shape_cast %21 : vector<22x256xbf16> to vector<1x22x256xbf16>
      tpu.vector_store %arg8[%c0_11, %c0_12, %c0_13], %24 {strides = array<i32>} : memref<1x22x256xbf16, #tpu.memory_space<vmem>>, vector<1x22x256xbf16>,
    } else {
    }
    return
  }
  func.func @transform_0(%arg0: i32, %arg1: i32, %arg2: i32) -> (i32, i32, i32) {
    %c4_i32 = arith.constant 4 : i32
    %0 = arith.subi %arg2, %c4_i32 : i32
    %c0_i32 = arith.constant 0 : i32
    %1 = arith.maxsi %0, %c0_i32 : i32
    %c0_i32_0 = arith.constant 0 : i32
    %c0_i32_1 = arith.constant 0 : i32
    return %arg0, %c0_i32_0, %1 : i32, i32, i32
  }
  func.func @transform_1(%arg0: i32, %arg1: i32, %arg2: i32) -> (i32, i32, i32, i32) {
    %c3_i32 = arith.constant 3 : i32
    %0 = arith.minsi %arg2, %c3_i32 : i32
    %c0_i32 = arith.constant 0 : i32
    %c0_i32_0 = arith.constant 0 : i32
    %c0_i32_1 = arith.constant 0 : i32
    return %arg0, %0, %c0_i32, %c0_i32_0 : i32, i32, i32, i32
  }
  func.func @transform_2(%arg0: i32, %arg1: i32, %arg2: i32) -> (i32, i32, i32) {
    %c0_i32 = arith.constant 0 : i32
    %c0_i32_0 = arith.constant 0 : i32
    return %arg2, %c0_i32, %arg1 : i32, i32, i32
  }
  func.func @transform_3(%arg0: i32, %arg1: i32, %arg2: i32) -> (i32, i32) {
    %c0_i32 = arith.constant 0 : i32
    %c0_i32_0 = arith.constant 0 : i32
    return %c0_i32, %arg1 : i32, i32
  }
  func.func @transform_4(%arg0: i32, %arg1: i32, %arg2: i32) -> (i32, i32) {
    %c0_i32 = arith.constant 0 : i32
    %c0_i32_0 = arith.constant 0 : i32
    return %c0_i32, %arg1 : i32, i32
  }
  func.func @transform_5(%arg0: i32, %arg1: i32, %arg2: i32) -> (i32, i32, i32) {
    %c0_i32 = arith.constant 0 : i32
    %c0_i32_0 = arith.constant 0 : i32
    return %arg0, %c0_i32, %arg1 : i32, i32, i32
  }
}

module attributes {stable_mosaic.version = 11 : i64} {
  func.func @_cls_wup_kernel(%arg0: i32, %arg1: i32, %arg2: memref<1x24x256xbf16, #tpu.memory_space<vmem>>, %arg3: memref<256x128xbf16, #tpu.memory_space<vmem>>, %arg4: memref<1x128xf32, #tpu.memory_space<vmem>>, %arg5: memref<64x24xbf16, #tpu.memory_space<vmem>>, %arg6: memref<1x64x128xbf16, #tpu.memory_space<vmem>>) attributes {dimension_semantics = [#tpu.dimension_semantics<parallel>, #tpu.dimension_semantics<parallel>], iteration_bounds = array<i64: 2, 1>, scalar_prefetch = 0 : i64, scratch_operands = 0 : i64, tpu.core_type = #tpu.core_type<tc>, window_params = [{transform_indices = @transform_0, window_bounds = array<i64: 1, 24, 256>}, {pipeline_mode = #tpu.pipeline_mode<synchronous>, transform_indices = @transform_1, window_bounds = array<i64: 256, 128>}, {pipeline_mode = #tpu.pipeline_mode<synchronous>, transform_indices = @transform_2, window_bounds = array<i64: 1, 128>}, {pipeline_mode = #tpu.pipeline_mode<synchronous>, transform_indices = @transform_3, window_bounds = array<i64: 64, 24>}, {transform_indices = @transform_4, window_bounds = array<i64: 1, 64, 128>}]} {
    %c0 = arith.constant 0 : index
    %c0_0 = arith.constant 0 : index
    %c0_1 = arith.constant 0 : index
    %0 = vector.load %arg2[%c0, %c0_0, %c0_1] : memref<1x24x256xbf16, #tpu.memory_space<vmem>>, vector<1x24x256xbf16>
    %1 = vector.shape_cast %0 : vector<1x24x256xbf16> to vector<24x256xbf16>
    %c0_2 = arith.constant 0 : index
    %c0_3 = arith.constant 0 : index
    %2 = vector.load %arg3[%c0_2, %c0_3] : memref<256x128xbf16, #tpu.memory_space<vmem>>, vector<256x128xbf16>
    %cst = arith.constant dense<0.000000e+00> : vector<24x128xf32>
    %3 = tpu.matmul %1, %2, %cst {dimension_numbers = #tpu.dot_dimension_numbers<[1], [0], [0], [1], [0, 0, 1, 1], [], []>} : vector<24x256xbf16>, vector<256x128xbf16>, vector<24x128xf32> -> vector<24x128xf32>
    %c0_4 = arith.constant 0 : index
    %c0_5 = arith.constant 0 : index
    %4 = vector.load %arg4[%c0_4, %c0_5] : memref<1x128xf32, #tpu.memory_space<vmem>>, vector<1x128xf32>
    %5 = vector.broadcast %4 : vector<1x128xf32> to vector<24x128xf32>
    %6 = arith.addf %3, %5 : vector<24x128xf32>
    %c0_6 = arith.constant 0 : index
    %c0_7 = arith.constant 0 : index
    %7 = vector.load %arg5[%c0_6, %c0_7] : memref<64x24xbf16, #tpu.memory_space<vmem>>, vector<64x24xbf16>
    %8 = arith.truncf %6 : vector<24x128xf32> to vector<24x128xbf16>
    %cst_8 = arith.constant dense<0.000000e+00> : vector<64x128xf32>
    %9 = tpu.matmul %7, %8, %cst_8 {dimension_numbers = #tpu.dot_dimension_numbers<[1], [0], [0], [1], [0, 0, 1, 1], [], []>} : vector<64x24xbf16>, vector<24x128xbf16>, vector<64x128xf32> -> vector<64x128xf32>
    %10 = arith.truncf %9 : vector<64x128xf32> to vector<64x128xbf16>
    %c0_9 = arith.constant 0 : index
    %c0_10 = arith.constant 0 : index
    %c0_11 = arith.constant 0 : index
    %11 = vector.load %arg6[%c0_9, %c0_10, %c0_11] : memref<1x64x128xbf16, #tpu.memory_space<vmem>>, vector<1x64x128xbf16>
    %12 = vector.shape_cast %11 : vector<1x64x128xbf16> to vector<64x128xbf16>
    %13 = vector.shape_cast %10 : vector<64x128xbf16> to vector<1x64x128xbf16>
    tpu.vector_store %arg6[%c0_9, %c0_10, %c0_11], %13 {strides = array<i32>} : memref<1x64x128xbf16, #tpu.memory_space<vmem>>, vector<1x64x128xbf16>,
    return
  }
  func.func @transform_0(%arg0: i32, %arg1: i32) -> (i32, i32, i32) {
    %c0_i32 = arith.constant 0 : i32
    %c0_i32_0 = arith.constant 0 : i32
    return %arg0, %arg1, %c0_i32 : i32, i32, i32
  }
  func.func @transform_1(%arg0: i32, %arg1: i32) -> (i32, i32) {
    %c0_i32 = arith.constant 0 : i32
    %c0_i32_0 = arith.constant 0 : i32
    %c0_i32_1 = arith.constant 0 : i32
    return %c0_i32, %c0_i32_0 : i32, i32
  }
  func.func @transform_2(%arg0: i32, %arg1: i32) -> (i32, i32) {
    %c0_i32 = arith.constant 0 : i32
    %c0_i32_0 = arith.constant 0 : i32
    %c0_i32_1 = arith.constant 0 : i32
    return %c0_i32, %c0_i32_0 : i32, i32
  }
  func.func @transform_3(%arg0: i32, %arg1: i32) -> (i32, i32) {
    %c0_i32 = arith.constant 0 : i32
    %c0_i32_0 = arith.constant 0 : i32
    %c0_i32_1 = arith.constant 0 : i32
    return %c0_i32, %c0_i32_0 : i32, i32
  }
  func.func @transform_4(%arg0: i32, %arg1: i32) -> (i32, i32, i32) {
    %c0_i32 = arith.constant 0 : i32
    %c0_i32_0 = arith.constant 0 : i32
    return %arg0, %arg1, %c0_i32 : i32, i32, i32
  }
}

module attributes {stable_mosaic.version = 11 : i64} {
  func.func @_hup_kernel(%arg0: i32, %arg1: i32, %arg2: memref<1x4x2048xbf16, #tpu.memory_space<vmem>>, %arg3: memref<8x4xbf16, #tpu.memory_space<vmem>>, %arg4: memref<1x8x2048xbf16, #tpu.memory_space<vmem>>) attributes {dimension_semantics = [#tpu.dimension_semantics<parallel>, #tpu.dimension_semantics<parallel>], iteration_bounds = array<i64: 2, 2>, scalar_prefetch = 0 : i64, scratch_operands = 0 : i64, tpu.core_type = #tpu.core_type<tc>, window_params = [{transform_indices = @transform_0, window_bounds = array<i64: 1, 4, 2048>}, {transform_indices = @transform_1, window_bounds = array<i64: 8, 4>}, {transform_indices = @transform_2, window_bounds = array<i64: 1, 8, 2048>}]} {
    %c0 = arith.constant 0 : index
    %c0_0 = arith.constant 0 : index
    %0 = vector.load %arg3[%c0, %c0_0] : memref<8x4xbf16, #tpu.memory_space<vmem>>, vector<8x4xbf16>
    %c0_1 = arith.constant 0 : index
    %c0_2 = arith.constant 0 : index
    %c0_3 = arith.constant 0 : index
    %1 = vector.load %arg2[%c0_1, %c0_2, %c0_3] : memref<1x4x2048xbf16, #tpu.memory_space<vmem>>, vector<1x4x2048xbf16>
    %2 = vector.shape_cast %1 : vector<1x4x2048xbf16> to vector<4x2048xbf16>
    %cst = arith.constant dense<0.000000e+00> : vector<8x2048xf32>
    %3 = tpu.matmul %0, %2, %cst {dimension_numbers = #tpu.dot_dimension_numbers<[1], [0], [0], [1], [0, 0, 1, 1], [], []>} : vector<8x4xbf16>, vector<4x2048xbf16>, vector<8x2048xf32> -> vector<8x2048xf32>
    %4 = arith.truncf %3 : vector<8x2048xf32> to vector<8x2048xbf16>
    %c0_4 = arith.constant 0 : index
    %c0_5 = arith.constant 0 : index
    %c0_6 = arith.constant 0 : index
    %5 = vector.load %arg4[%c0_4, %c0_5, %c0_6] : memref<1x8x2048xbf16, #tpu.memory_space<vmem>>, vector<1x8x2048xbf16>
    %6 = vector.shape_cast %5 : vector<1x8x2048xbf16> to vector<8x2048xbf16>
    %7 = vector.shape_cast %4 : vector<8x2048xbf16> to vector<1x8x2048xbf16>
    tpu.vector_store %arg4[%c0_4, %c0_5, %c0_6], %7 {strides = array<i32>} : memref<1x8x2048xbf16, #tpu.memory_space<vmem>>, vector<1x8x2048xbf16>,
    return
  }
  func.func @transform_0(%arg0: i32, %arg1: i32) -> (i32, i32, i32) {
    %c0_i32 = arith.constant 0 : i32
    %c0_i32_0 = arith.constant 0 : i32
    %c0_i32_1 = arith.constant 0 : i32
    return %arg0, %c0_i32, %c0_i32_0 : i32, i32, i32
  }
  func.func @transform_1(%arg0: i32, %arg1: i32) -> (i32, i32) {
    %c0_i32 = arith.constant 0 : i32
    %c0_i32_0 = arith.constant 0 : i32
    return %arg1, %c0_i32 : i32, i32
  }
  func.func @transform_2(%arg0: i32, %arg1: i32) -> (i32, i32, i32) {
    %c0_i32 = arith.constant 0 : i32
    %c0_i32_0 = arith.constant 0 : i32
    return %arg0, %arg1, %c0_i32 : i32, i32, i32
  }
}

</mosaic_0001>

<bundles_post_ra>
// kernel: pspnet_forward.12
= control target key start
LH: loop header
LB: loop body
LE: loop exit
PB: predicated region body
PF: predicated region fallthrough
CT: control target
= control target key end

     0   :  { %9 = vsyncpa [#allocation3], 0  ;;  %s1265_s0 = inlined_call_operand.vmem [shape: bf16[2,24,256], index: 0, kind: input, shape index: {}]   ;;  %s1266_s1 = inlined_call_operand.hbm [shape: bf16[256,128], index: 1, kind: input, shape index: {}]   ;;  %s1267_s2 = inlined_call_operand.hbm [shape: f32[1,128], index: 2, kind: input, shape index: {}]   ;;  %s1268_s3 = inlined_call_operand.hbm [shape: bf16[64,24], index: 3, kind: input, shape index: {}]   ;;  %s1269_s4 = inlined_call_operand.vmem [shape: bf16[2,64,128], index: 4, kind: output, shape index: {}]  }
   0x1   :  { %10 = vsyncpa [#allocation5], 0  ;;  %s1120_s15 = smov 0   ;;  %s1122_s16 = smov 0  }
   0x2   :  { %s1124_s17 = smov 0  }
   0x3 LB: > { %s1090_s18 = smov [#allocation4]   ;;  %s759_s20 = sadd.s32 4294967295, %s1088_s17   ;;  %s1088_s17 = sphi %s1124_s17, %s16_s17   ;;  %s1084_s16 = sphi %s1122_s16, %s1282_s16   ;;  %s1080_s15 = sphi %s1120_s15, %s1281_s15  }
   0x4   : > { %s178_s19 = sshll.u32 %s1090_s18, 4  ;;  %p761_p0 = scmp.ge.s32.totalorder %s1088_s17, 1  ;;  %s179_s19 = int_to_ptr.vmem [resolvable:$true] %s178_s19 }
   0x5   : > { %p152_p1 = scmp.lt.s32.totalorder %s1088_s17, 3  ;;  %p1138_p2 = scmp.eq.s32.totalorder %s759_s20, 0 }
   0x6   : > { %s28_s23 = sadd.s32 1, %s1084_s16  ;;  %s1091_s26 = smov [#allocation2]  }
   0x7   : > { %s1273_s21 = scalar_select %p1138_p2, 1, 0 }
   0x8   : > { %p1142_p3 = pnand %p761_p0, %p152_p1  ;;  %p1155_p6 = scmp.ge.s32.totalorder %s28_s23, 2 }
   0x9   : > { %s164_s27 = sshll.u32 %s1091_s26, 4  ;;  %s974_s30 = scalar_lea.hbm %s1267_s2, 16  ;;  %s1159_s27 = int_to_ptr.vmem [resolvable:$true] %s164_s27 }
   0xa   : > { %s1274_s22 = scalar_select %p1142_p3, 1, 0 }
   0xb   : > { %p904_p4 = pneg %p1142_p3  ;;  %p975_p7 = scmp.ne.s32.totalorder %s1267_s2, %s974_s30 }
   0xc   : > { %s1276_s25 = scalar_select %p1155_p6, 1, 0 }
   0xd   : > { %p1151_p5 = pnand %p1138_p2, %p904_p4  ;;  %p981_p11 = scmp.lt.u32.totalorder %s974_s30, %s1267_s2 }
   0xf   : > { %p1169_p8 = pneg %p1151_p5 }
  0x11   : > { %p977_p9 = pnand %p1169_p8, %p975_p7 }
  0x13   : > { %p978_p10 = pneg %p977_p9 }
  0x15   : > { %p983_p12 = pnand %p981_p11, %p978_p10 }
  0x17   : > { %986 = shalt.err (!%p983_p12)
}
  0x18   : > { %s987_s10 = scalar_lea.vmem %s179_s19, 16  ;;  %s994_s11 = scalar_lea.vmem %s179_s19, 32 }
  0x19   : > { %p988_p13 = scmp.ne.s32.totalorder %s179_s19, %s987_s10  ;;  %p995_p4 = scmp.lt.s32.totalorder %s179_s19, %s179_s19 }
  0x1a   : > { %p996_p2 = scmp.lt.s32.totalorder %s994_s11, %s987_s10 }
  0x1b   : > { %p990_p0 = pnand %p988_p13, %p1169_p8 }
  0x1c   : > { %p997_p3 = por %p996_p2, %p995_p4 }
  0x1d   : > { %p991_p1 = pneg %p990_p0 }
  0x1f   : > { %p998_p6 = pnand %p997_p3, %p991_p1 }
  0x21   : > { %1001 = shalt.err (!%p998_p6)
}
  0x22   : > { %910 = dma.hbm_to_vmem [thread:$0]  (!%p1151_p5), %s1267_s2, 16, %s179_s19, [#allocation5]  }
  0x23   : > { %p1278_p7 = scmp.ne.s32.totalorder %s1276_s25, 0  ;;  %s1002_s20 = scalar_lea.hbm %s1266_s1, 2048 }
  0x24   : > { %p1003_p2 = scmp.ne.s32.totalorder %s1266_s1, %s1002_s20  ;;  %p1009_p9 = scmp.lt.u32.totalorder %s1002_s20, %s1266_s1 }
  0x25   : > { %s1284_s23 = smov (%p1278_p7, %s28_s23), 0 }
  0x26   : > { %p1005_p3 = pnand %p1003_p2, %p1169_p8 }
  0x28   : > { %p1006_p6 = pneg %p1005_p3 }
  0x2a   : > { %p1011_p10 = pnand %p1009_p9, %p1006_p6 }
  0x2c   : > { %1014 = shalt.err (!%p1011_p10)
}
  0x2d   : > { %s1015_s19 = scalar_lea.vmem %s1159_s27, 2048  ;;  %p1023_p0 = scmp.lt.s32.totalorder %s1159_s27, %s1159_s27 }
  0x2e   : > { %p1016_p11 = scmp.ne.s32.totalorder %s1159_s27, %s1015_s19  ;;  %p1024_p1 = scmp.lt.s32.totalorder %s1015_s19, %s1015_s19 }
  0x30   : > { %p1018_p12 = pnand %p1016_p11, %p1169_p8  ;;  %p1025_p4 = por %p1024_p1, %p1023_p0 }
  0x32   : > { %p1019_p13 = pneg %p1018_p12 }
  0x34   : > { %p1026_p7 = pnand %p1025_p4, %p1019_p13 }
  0x36   : > { %1029 = shalt.err (!%p1026_p7)
}
  0x37   : > { %s1092_s25 = smov 64   ;;  %s1093_s5 = smov 4  }
  0x38   : > { %907 = dma.hbm_to_vmem [thread:$0]  (!%p1151_p5), %s1266_s1, 2048, %s1159_s27, [#allocation3], %s1092_s25, %s1092_s25, %s1093_s5  }
  0x39   : > { %s1094_s9 = smov [#allocation6]   ;;  %s1030_s13 = scalar_lea.hbm %s1268_s3, 512 }
  0x3a   : > { %s188_s10 = sshll.u32 %s1094_s9, 4  ;;  %p1031_p2 = scmp.ne.s32.totalorder %s1268_s3, %s1030_s13  ;;  %s189_s10 = int_to_ptr.vmem [resolvable:$true] %s188_s10 }
  0x3b   : > { %p1037_p9 = scmp.lt.u32.totalorder %s1030_s13, %s1268_s3 }
  0x3c   : > { %p1033_p3 = pnand %p1031_p2, %p1169_p8 }
  0x3e   : > { %p1034_p6 = pneg %p1033_p3 }
  0x40   : > { %p1039_p10 = pnand %p1037_p9, %p1034_p6 }
  0x42   : > { %1042 = shalt.err (!%p1039_p10)
}
  0x43   : > { %s1043_s27 = scalar_lea.vmem %s189_s10, 512  ;;  %p1051_p0 = scmp.lt.s32.totalorder %s189_s10, %s189_s10 }
  0x44   : > { %p1044_p11 = scmp.ne.s32.totalorder %s189_s10, %s1043_s27  ;;  %p1052_p1 = scmp.lt.s32.totalorder %s1043_s27, %s1043_s27 }
  0x46   : > { %p1046_p12 = pnand %p1044_p11, %p1169_p8  ;;  %p1053_p4 = por %p1052_p1, %p1051_p0 }
  0x48   : > { %p1047_p13 = pneg %p1046_p12 }
  0x4a   : > { %p1054_p7 = pnand %p1053_p4, %p1047_p13 }
  0x4c   : > { %1057 = shalt.err (!%p1054_p7)
}
  0x4d   : > { %913 = dma.hbm_to_vmem [thread:$0]  (!%p1151_p5), %s1268_s3, 512, %s189_s10, [#allocation5], %s1092_s25, %s1092_s25, %s1093_s5  }
  0x4e   : > { %p1279_p2 = scmp.ne.s32.totalorder %s1274_s22, 0 }
  0x4f   : > { %p1280_p3 = scmp.ne.s32.totalorder (!%p1279_p2), %s1273_s21, 0 }
  0x50   : > { %218 = sbr.rel (%p1279_p2) target bundleno = 580 (0x244), region = 36 }
  0x57   : > { %1071 = dma.done.wait (%p1280_p3), [#allocation3], 2048  }
  0x58   : > { %1073 = vsyncadd (%p1280_p3), [#allocation3], 4294965248 }
  0x59   : > { %1075 = dma.done.wait (%p1280_p3), [#allocation5], 528  }
  0x5a   : > { %1077 = vsyncadd (%p1280_p3), [#allocation5], 4294966768  ;;  %v949_v0 = vld [vmem:[#allocation2 + $0x40] sm:$0xff]   ;;  %v951_v2 = vld [vmem:[#allocation2 + $0x48] sm:$0xff]   ;;  %p262_p5 = scmp.lt.s32.totalorder %s1080_s15, 1  ;;  %vm516_vm0 = vcmask 195584  }
  0x5b   : > { %v950_v1 = vld [vmem:[#allocation2] sm:$0xff]   ;;  %844 = vmatprep.subr.bf16.mxu0 %v949_v0  ;;  %v952_v3 = vld [vmem:[#allocation2 + $0x8] sm:$0xff]   ;;  %v953_v4 = vld [vmem:[#allocation2 + $0x50] sm:$0xff]   ;;  %vm529_vm1 = vcmask 1043456  }
  0x5c   : > { %845 = vmatpush3.bf16.msra.mxu0 %v950_v1  ;;  %s1286_s15 = smov (!%p262_p5, %s1080_s15), 1  ;;  %v954_v5 = vld [vmem:[#allocation2 + $0x10] sm:$0xff]   ;;  %v955_v6 = vld [vmem:[#allocation2 + $0x58] sm:$0xff]   ;;  %v957_v8 = vld [vmem:[#allocation2 + $0x60] sm:$0xff]  }
  0x5d   : > { %846 = vmatprep.subr.bf16.mxu0 %v951_v2  ;;  %s891_s21 = smul.u32 24, %s1286_s15  ;;  %v956_v7 = vld [vmem:[#allocation2 + $0x18] sm:$0xff]   ;;  %v958_v9 = vld [vmem:[#allocation2 + $0x20] sm:$0xff]   ;;  %v959_v10 = vld [vmem:[#allocation2 + $0x68] sm:$0xff]   ;;  %s812_s30 = sshll.u32 %s1286_s15, 5 }
  0x5e   : > { %v960_v11 = vld [vmem:[#allocation2 + $0x28] sm:$0xff]   ;;  %v961_v13 = vld [vmem:[#allocation2 + $0x70] sm:$0xff]   ;;  %v963_v15 = vld [vmem:[#allocation2 + $0x78] sm:$0xff]   ;;  %s280_s5 = scalar_lea.vmem %s1269_s4, %s812_s30 }
  0x5f   : > { %s270_s7 = scalar_lea.vmem %s1265_s0, %s891_s21  ;;  %v962_v14 = vld [vmem:[#allocation2 + $0x30] sm:$0xff]   ;;  %v964_v16 = vld [vmem:[#allocation2 + $0x38] sm:$0xff]   ;;  %v970_v21 = vld [vmem:[#allocation6] sm:$0xff]  }
  0x60   : > { %847 = vmatpush3.bf16.msra.mxu0 %v952_v3  ;;  %v967_v12 = vld [vmem:[%s270_s7 + $0x4] ss:$8 sps:$4 sm:$0xff]   ;;  %v285_v17 = vld [vmem:[%s270_s7 + $0x10] sm:$0xff]  ;;  %v965_v18 = vld [vmem:[%s270_s7] ss:$8 sps:$4 sm:$0xff]   ;;  %882 = vmatprep.mubr.msk.bf16.mxu1 %vm516_vm0, %v970_v21 }
  0x61   : > { %848 = vmatprep.subr.bf16.mxu0 %v953_v4  ;;  %470 = vmatprep.mubr.bf16.mxu0 %v967_v12  ;;  %v777_v19 = vcombine.high %v285_v17, %v285_v17  ;;  %v776_v20 = vcombine.low %v285_v17, %v285_v17  ;;  %v773_v26 = vld [vmem:[#allocation4] ss:$0 sm:$0xff]  ;;  %v971_v40 = vld [vmem:[#allocation6 + $0x8] sm:$0xff]   ;;  %v972_v41 = vld [vmem:[#allocation6 + $0x10] sm:$0xff]  }
  0x62   : > { %v973_v42 = vld [vmem:[#allocation6 + $0x18] sm:$0xff]  }
  0x64   : > { %849 = vmatpush3.bf16.msra.mxu0 %v954_v5 }
  0x65   : > { %850 = vmatprep.subr.bf16.mxu0 %v955_v6 }
  0x68   : > { %851 = vmatpush3.bf16.msra.mxu0 %v956_v7 }
  0x69   : > { %852 = vmatprep.subr.bf16.mxu0 %v957_v8 }
  0x6c   : > { %853 = vmatpush3.bf16.msra.mxu0 %v958_v9 }
  0x6d   : > { %854 = vmatprep.subr.bf16.mxu0 %v959_v10 }
  0x70   : > { %855 = vmatpush3.bf16.msra.mxu0 %v960_v11 }
  0x71   : > { %856 = vmatprep.subr.bf16.mxu0 %v961_v13 }
  0x74   : > { %857 = vmatpush3.bf16.msra.mxu0 %v962_v14 }
  0x75   : > { %858 = vmatprep.subr.bf16.mxu0 %v963_v15 }
  0x78   : > { %859 = vmatpush3.bf16.msra.mxu0 %v964_v16 }
  0x7b   : > { %471 = vmatmul.mubr.bf16.vlgmr.msra.gmra.mrb[0].mxu0 %v965_v18 }
  0x7c   : > { %478 = vmatprep.mubr.bf16.mxu0 %v777_v19 }
  0x83   : > { %479 = vmatmul.mubr.bf16.gmra.mrb[4].mxu0 %v776_v20 }
 0x14e   : > { %v860_v22 = vpop.f32.mrb[0].mxu0 }
 0x14f   : > { %v861_v23 = vpop.f32.mrb[1].mxu0 }
 0x150   : > { %v862_v24 = vadd.f32 %v861_v23, %v860_v22  ;;  %v863_v25 = vpop.f32.mrb[2].mxu0 }
 0x151   : > { %v864_v27 = vpop.f32.mrb[3].mxu0 }
 0x152   : > { %v865_v28 = vadd.f32 %v864_v27, %v863_v25  ;;  %v473_v29 = vadd.f32 %v862_v24, %v773_v26 }
 0x154   : > { %v476_v30 = vadd.f32 %v865_v28, %v773_v26 }
 0x156   : > { %v866_v31 = vpop.f32.mrb[4].mxu0  ;;  %v494_v32 = vpack.c.bf16 %v476_v30, %v473_v29 }
 0x157   : > { %v867_v33 = vpop.f32.mrb[5].mxu0 }
 0x158   : > { %v868_v34 = vadd.f32 %v867_v33, %v866_v31  ;;  %v869_v35 = vpop.f32.mrb[6].mxu0  ;;  %878 = vmatprep.subr.bf16.mxu1 %v494_v32 }
 0x159   : > { %v870_v36 = vpop.f32.mrb[7].mxu0  ;;  %879 = vmatpush3.bf16.msra.mxu1 %v494_v32 }
 0x15a   : > { %v481_v37 = vadd.f32 %v868_v34, %v773_v26 }
 0x15c   : > { %v495_v38 = vpack.c.bf16 %v481_v37, %v481_v37 }
 0x15e   : > { %890 = vmatprep.subr.msk.bf16.mxu1 %vm529_vm1, %v495_v38  ;;  %v531_v39 = vsel %vm529_vm1, %v495_v38, 0 }
 0x15f   : > { %881 = vmatpush3.bf16.msra.mxu1 %v531_v39 }
 0x162   : > { %883 = vmatmul.mubr.msk.bf16.vlgmr.msra.gmra.mrb[0].mxu1 %vm516_vm0, %v971_v40 }
 0x163   : > { %886 = vmatprep.mubr.msk.bf16.mxu1 %vm516_vm0, %v972_v41 }
 0x16a   : > { %887 = vmatmul.mubr.msk.bf16.gmra.mrb[4].mxu1 %vm516_vm0, %v973_v42 }
 0x235   : > { %v884_v43 = vpop.f32.mrb[0].mxu1 }
 0x236   : > { %v567_v44 = vpop.f32.mrb[1].mxu1 }
 0x237   : > { %v885_v45 = vpop.f32.mrb[2].mxu1 }
 0x238   : > { %v829_v46 = vpack.c.bf16 %v885_v45, %v884_v43  ;;  %v570_v47 = vpop.f32.mrb[3].mxu1 }
 0x239   : > { %v824_v48 = vpack.c.bf16 %v570_v47, %v567_v44 }
 0x23a   : > { %841 = vst [vmem:[%s280_s5 + $0x8] sm:$0xff] %v829_v46  }
 0x23b   : > { %825 = vst [vmem:[%s280_s5] sm:$0xff] %v824_v48  }
 0x23d   : > { %v888_v49 = vpop.f32.mrb[4].mxu1 }
 0x23e   : > { %v583_v50 = vpop.f32.mrb[5].mxu1 }
 0x23f   : > { %v889_v51 = vpop.f32.mrb[6].mxu1 }
 0x240   : > { %v839_v52 = vpack.c.bf16 %v889_v51, %v888_v49  ;;  %v586_v53 = vpop.f32.mrb[7].mxu1 }
 0x241   : > { %v834_v54 = vpack.c.bf16 %v586_v53, %v583_v50 }
 0x242   : > { %843 = vst [vmem:[%s280_s5 + $0x18] sm:$0xff] %v839_v52  }
 0x243   : > { %842 = vst [vmem:[%s280_s5 + $0x10] sm:$0xff] %v834_v54  }
 0x244 PF: > { %s16_s17 = sadd.s32 1, %s1088_s17   ;;  %s1281_s15 = smov %s1084_s16 }
 0x245   : > { %p13_p8 = scmp.ge.s32.totalorder %s16_s17, 4   ;;  %s1282_s16 = smov %s1284_s23 }
 0x247   :  { %15 = sbr.rel (!%p13_p8) target bundleno = 3 (0x3), region = 79 }
 0x24e   :  { %668 = vsyncpa [#allocation3], 1 }
 0x24f   :  { %670 = vsyncpa [#allocation3 + $0x1], 1 }
 0x250   :  { %671 = vsyncpa [#allocation5], 1 }

// kernel: pspnet_forward.7
= control target key start
LH: loop header
LB: loop body
LE: loop exit
PB: predicated region body
PF: predicated region fallthrough
CT: control target
= control target key end

     0   :  { %s1522_s0 = inlined_call_operand.vmem [shape: bf16[2,16,64], index: 0, kind: input, shape index: {}]   ;;  %s1523_s1 = inlined_call_operand.hbm [shape: bf16[4,36,16], index: 1, kind: input, shape index: {}]   ;;  %s1524_s2 = inlined_call_operand.hbm [shape: bf16[4,64,128], index: 2, kind: input, shape index: {}]   ;;  %s1525_s3 = inlined_call_operand.hbm [shape: bf16[4,36,36], index: 3, kind: input, shape index: {}]   ;;  %s1526_s4 = inlined_call_operand.vmem [shape: bf16[2,4,36,128], index: 4, kind: output, shape index: {}]  }
   0x1   :  { %1536 = sst [smem:[#allocation12_spill]] %s1523_s1 }
   0x2   :  { %1537 = sst [smem:[#allocation13_spill]] %s1524_s2 }
   0x3   :  { %9 = vsyncpa [#allocation3], 0 }
   0x4   :  { %11 = vsyncpa [#allocation3 + $0x1], 0 }
   0x5   :  { %12 = vsyncpa [#allocation5], 0 }
   0x6   :  { %14 = vsyncpa [#allocation5 + $0x1], 0  ;;  %s1228_s15 = smov 0   ;;  %s1230_s16 = smov 0  }
   0x7   :  { %s1232_s17 = smov 0   ;;  %s1234_s18 = smov 0  }
   0x8   :  { %s1236_s19 = smov 0   ;;  %s1238_s20 = smov 0  }
   0x9   :  { %s1240_s21 = smov 0   ;;  %s1242_s22 = smov 0  }
   0xa LB: > { %1538 = sst [smem:[#allocation9_spill]] %s1190_s21  ;;  %s1528_s23 = sadd.s32 4294967295, %s1194_s22   ;;  %s1194_s22 = sphi %s1242_s22, %s20_s22   ;;  %s1190_s21 = sphi %s1240_s21, %s1556_s21   ;;  %s1186_s20 = sphi %s1238_s20, %s1561_s20   ;;  %s1182_s19 = sphi %s1236_s19, %s1554_s19   ;;  %s1178_s18 = sphi %s1234_s18, %s1560_s18   ;;  %s1174_s17 = sphi %s1232_s17, %s1559_s17   ;;  %s1170_s16 = sphi %s1230_s16, %s1558_s16   ;;  %s1166_s15 = sphi %s1228_s15, %s1557_s15  }
   0xb   : > { %s29_s24 = sadd.s32 1, %s1186_s20  ;;  %s32_s25 = sadd.s32 1, %s1190_s21 }
   0xc   : > { %p30_p0 = scmp.ge.s32.totalorder %s29_s24, 4  ;;  %s65_s26 = sadd.s32 1, %s1174_s17 }
   0xd   : > { %p72_p1 = scmp.ne.s32.totalorder %s1174_s17, %s1170_s16  ;;  %p73_p2 = scmp.eq.s32.totalorder %s1194_s22, 0 }
   0xe   : > { %s1563_s24 = smov (%p30_p0, %s29_s24), 0  ;;  %s1565_s25 = smov (!%p30_p0, %s32_s25), %s1190_s21 }
   0xf   : > { %1539 = sst [smem:[#allocation10_spill]] %s1563_s24  ;;  %s62_s27 = ssub.s32 %s1186_s20, %s1563_s24 }
  0x10   : > { %p34_p3 = scmp.ge.s32.totalorder %s1565_s25, 2  ;;  %p63_p4 = scmp.eq.s32.totalorder %s62_s27, 0 }
  0x11   : > { %p74_p5 = por %p73_p2, %p72_p1  ;;  %p78_p6 = scmp.ne.s32.totalorder %s1170_s16, %s1166_s15 }
  0x12   : > { %s1567_s25 = smov (%p34_p3, %s1565_s25), 0  ;;  %p79_p7 = scmp.eq.s32.totalorder %s1528_s23, 0 }
  0x13   : > { %1540 = sst [smem:[#allocation11_spill]] %s1567_s25  ;;  %p954_p8 = scmp.lt.s32.totalorder %s1194_s22, 8 }
  0x14   : > { %s1282_s28 = scalar_select %p63_p4, %s1174_s17, %s65_s26  }
  0x15   : > { %s1288_s29 = sand.u32 1, %s1174_s17   ;;  %p1290_p9 = por %p79_p7, %p78_p6 }
  0x16   : > { %p1294_p10 = pnand %p954_p8, %p74_p5  ;;  %s211_s6 = sand.u32 1, %s1194_s22  }
  0x17   : > { %s1541_s30 = scalar_select %p1290_p9, 1, 0 }
  0x18   : > { %s806_s7 = sshll.u32 %s1288_s29, 5  ;;  %s842_s8 = sshll.u32 %s1186_s20, 9 }
  0x19   : > { %s1543_s2 = sld [smem:[#allocation13_spill]]  ;;  %s215_s12 = scalar_lea.vmem [#allocation4], %s806_s7 }
  0x1a   : > { %s222_s13 = sshll.u32 %s215_s12, 4  ;;  %s1309_s14 = scalar_lea.sflag [#allocation5], %s211_s6  ;;  %s1306_s13 = int_to_ptr.vmem [resolvable:$true] %s222_s13 }
  0x1b   : > { %p1315_p13 = pneg %p1294_p10 }
  0x1f   : > { %s1304_s11 = scalar_lea.hbm %s1543_s2, %s842_s8  ;;  %s1039_s7 = scalar_lea.hbm %s1543_s2, 2048 }
  0x20   : > { %s1034_s15 = scalar_lea.hbm %s1304_s11, 512  ;;  %p1040_p2 = scmp.lt.u32.totalorder %s1304_s11, %s1543_s2 }
  0x21   : > { %p1035_p12 = scmp.ne.s32.totalorder %s1304_s11, %s1034_s15  ;;  %p1041_p3 = scmp.lt.u32.totalorder %s1039_s7, %s1034_s15 }
  0x22   : > { %p1043_p5 = scmp.lt.u32.totalorder %s1034_s15, %s1304_s11 }
  0x23   : > { %p1037_p0 = pnand %p1315_p13, %p1035_p12  ;;  %p1042_p4 = por %p1041_p3, %p1040_p2 }
  0x25   : > { %p1038_p1 = pneg %p1037_p0  ;;  %p1044_p6 = por %p1043_p5, %p1042_p4 }
  0x27   : > { %p1045_p7 = pnand %p1044_p6, %p1038_p1 }
  0x29   : > { %1048 = shalt.err (!%p1045_p7)
}
  0x2a   : > { %s1049_s6 = scalar_lea.vmem %s1306_s13, 512  ;;  %s1196_s12 = smov [#allocation4]  }
  0x2b   : > { %p1050_p8 = scmp.ne.s32.totalorder %s1306_s13, %s1049_s6  ;;  %s1054_s27 = sshll.u32 %s1196_s12, 4  ;;  %s1055_s27 = int_to_ptr.vmem [resolvable:$false] %s1054_s27 }
  0x2c   : > { %s1056_s8 = scalar_lea.vmem %s1055_s27, 1024  ;;  %p1057_p11 = scmp.lt.s32.totalorder %s1306_s13, %s1055_s27 }
  0x2d   : > { %p1052_p12 = pnand %p1050_p8, %p1315_p13  ;;  %p1058_p9 = scmp.lt.s32.totalorder %s1056_s8, %s1049_s6 }
  0x2f   : > { %p1053_p0 = pneg %p1052_p12  ;;  %p1059_p2 = por %p1058_p9, %p1057_p11 }
  0x31   : > { %p1060_p3 = pnand %p1059_p2, %p1053_p0 }
  0x33   : > { %1063 = shalt.err (!%p1060_p3)
}
  0x34   : > { %s1529_s15 = smov 64   ;;  %s1531_s7 = smov 4  }
  0x35   : > { %950 = dma.hbm_to_vmem [thread:$0]  (!%p1294_p10), %s1304_s11, 512, %s1306_s13, %s1309_s14, %s1529_s15, %s1529_s15, %s1531_s7  }
  0x36   : > { %p251_p9 = scmp.lt.s32.totalorder %s1194_s22, 9  ;;  %p1545_p11 = scmp.ge.s32.totalorder %s1194_s22, 1 }
  0x37   : > { %s1535_s10 = smul.u32 20, %s1288_s29  ;;  %s1547_s1 = sld [smem:[#allocation12_spill]] }
  0x38   : > { %p1345_p1 = pnand %p1545_p11, %p251_p9  ;;  %s932_s6 = smul.u32 320, %s1186_s20 }
  0x39   : > { %s194_s23 = scalar_lea.vmem [#allocation2], %s1535_s10  ;;  %s191_s2 = scalar_lea.sflag [#allocation3], %s1288_s29 }
  0x3a   : > { %s1546_s9 = scalar_select %p1345_p1, 1, 0 }
  0x3b   : > { %s201_s11 = sshll.u32 %s194_s23, 4  ;;  %s1363_s7 = scalar_lea.hbm %s1525_s3, %s932_s6  ;;  %s1358_s11 = int_to_ptr.vmem [resolvable:$true] %s201_s11 }
  0x3d   : > { %s1354_s8 = scalar_lea.hbm %s1547_s1, %s932_s6  ;;  %s1069_s24 = scalar_lea.hbm %s1547_s1, 1280 }
  0x3e   : > { %s1064_s25 = scalar_lea.hbm %s1354_s8, 320  ;;  %p1070_p7 = scmp.lt.u32.totalorder %s1354_s8, %s1547_s1 }
  0x3f   : > { %p1065_p4 = scmp.ne.s32.totalorder %s1354_s8, %s1064_s25  ;;  %p1071_p8 = scmp.lt.u32.totalorder %s1069_s24, %s1064_s25 }
  0x40   : > { %p1073_p0 = scmp.lt.u32.totalorder %s1064_s25, %s1354_s8 }
  0x41   : > { %p1067_p5 = pnand %p1065_p4, %p1315_p13  ;;  %p1072_p12 = por %p1071_p8, %p1070_p7 }
  0x43   : > { %p1068_p6 = pneg %p1067_p5  ;;  %p1074_p2 = por %p1073_p0, %p1072_p12 }
  0x45   : > { %p1075_p3 = pnand %p1074_p2, %p1068_p6 }
  0x47   : > { %1078 = shalt.err (!%p1075_p3)
}
  0x48   : > { %s1079_s23 = scalar_lea.vmem %s1358_s11, 320  ;;  %s1199_s15 = smov [#allocation2]  }
  0x49   : > { %p1080_p9 = scmp.ne.s32.totalorder %s1358_s11, %s1079_s23  ;;  %s1084_s6 = sshll.u32 %s1199_s15, 4  ;;  %s1085_s6 = int_to_ptr.vmem [resolvable:$false] %s1084_s6 }
  0x4a   : > { %s1086_s21 = scalar_lea.vmem %s1085_s6, 640  ;;  %p1087_p5 = scmp.lt.s32.totalorder %s1358_s11, %s1085_s6 }
  0x4b   : > { %p1082_p11 = pnand %p1080_p9, %p1315_p13  ;;  %p1088_p1 = scmp.lt.s32.totalorder %s1086_s21, %s1079_s23 }
  0x4d   : > { %p1083_p4 = pneg %p1082_p11  ;;  %p1089_p7 = por %p1088_p1, %p1087_p5 }
  0x4f   : > { %p1090_p8 = pnand %p1089_p7, %p1083_p4 }
  0x51   : > { %1093 = shalt.err (!%p1090_p8)
}
  0x52   : > { %s1548_s24 = smov 4   ;;  %s1549_s25 = smov 64  }
  0x53   : > { %947 = dma.hbm_to_vmem [thread:$0]  (!%p1294_p10), %s1354_s8, 320, %s1358_s11, %s191_s2, %s1549_s25, %s1549_s25, %s1548_s24  }
  0x54   : > { %s1550_s10 = smul.u32 20, %s1288_s29  ;;  %s1094_s27 = scalar_lea.hbm %s1363_s7, 320 }
  0x55   : > { %p1095_p1 = scmp.ne.s32.totalorder %s1363_s7, %s1094_s27  ;;  %s1099_s6 = scalar_lea.hbm %s1525_s3, 1280 }
  0x56   : > { %s236_s13 = scalar_lea.vmem [#allocation6], %s1550_s10  ;;  %p1100_p0 = scmp.lt.u32.totalorder %s1363_s7, %s1525_s3 }
  0x57   : > { %s243_s12 = sshll.u32 %s236_s13, 4  ;;  %p1097_p6 = pnand %p1095_p1, %p1315_p13  ;;  %s1394_s12 = int_to_ptr.vmem [resolvable:$true] %s243_s12 }
  0x58   : > { %p1101_p2 = scmp.lt.u32.totalorder %s1099_s6, %s1094_s27  ;;  %p1103_p9 = scmp.lt.u32.totalorder %s1094_s27, %s1363_s7 }
  0x59   : > { %p1098_p12 = pneg %p1097_p6 }
  0x5a   : > { %p1102_p3 = por %p1101_p2, %p1100_p0 }
  0x5c   : > { %p1104_p11 = por %p1103_p9, %p1102_p3 }
  0x5e   : > { %p1105_p4 = pnand %p1104_p11, %p1098_p12 }
  0x60   : > { %1108 = shalt.err (!%p1105_p4)
}
  0x61   : > { %s1109_s2 = scalar_lea.vmem %s1394_s12, 320  ;;  %s1200_s29 = smov [#allocation6]  }
  0x62   : > { %p1110_p5 = scmp.ne.s32.totalorder %s1394_s12, %s1109_s2  ;;  %s1114_s8 = sshll.u32 %s1200_s29, 4  ;;  %s1115_s8 = int_to_ptr.vmem [resolvable:$false] %s1114_s8 }
  0x63   : > { %s1116_s1 = scalar_lea.vmem %s1115_s8, 640  ;;  %p1117_p1 = scmp.lt.s32.totalorder %s1394_s12, %s1115_s8 }
  0x64   : > { %p1112_p7 = pnand %p1110_p5, %p1315_p13  ;;  %p1118_p6 = scmp.lt.s32.totalorder %s1116_s1, %s1109_s2 }
  0x66   : > { %p1113_p8 = pneg %p1112_p7  ;;  %p1119_p0 = por %p1118_p6, %p1117_p1 }
  0x68   : > { %p1120_p2 = pnand %p1119_p0, %p1113_p8 }
  0x6a   : > { %1123 = shalt.err (!%p1120_p2)
}
  0x6b   : > { %953 = dma.hbm_to_vmem [thread:$0]  (!%p1294_p10), %s1363_s7, 320, %s1394_s12, %s1309_s14, %s1549_s25, %s1549_s25, %s1548_s24  }
  0x6c   : > { %p1551_p13 = scmp.ne.s32.totalorder %s1546_s9, 0 }
  0x6d   : > { %s1424_s26 = sand.u32 (!%p1551_p13), 1, %s1170_s16   ;;  %p1552_p12 = scmp.ne.s32.totalorder (!%p1551_p13), %s1541_s30, 0 }
  0x6e   : > { %255 = sbr.rel (%p1551_p13) target bundleno = 812 (0x32c), region = 36  ;;  %s258_s10 = scalar_lea.sflag (!%p1551_p13), [#allocation3], %s1424_s26 }
  0x6f   : > { %s935_s11 = smul.u32 (!%p1551_p13), 20, %s1424_s26 }
  0x71   : > { %s1430_s5 = scalar_lea.vmem (!%p1551_p13), [#allocation2], %s935_s11 }
  0x75   : > { %1157 = dma.done.wait (%p1552_p12), %s258_s10, 320  }
  0x76   : > { %1159 = vsyncadd (%p1552_p12), %s258_s10, 4294966976  ;;  %s1553_s14 = sadd.s32 4294967295, %s1194_s22   ;;  %s811_s9 = sshll.u32 %s1424_s26, 5 }
  0x77   : > { %s266_s7 = sand.u32 1, %s1553_s14   ;;  %s1439_s25 = scalar_lea.vmem [#allocation4], %s811_s9 }
  0x78   : > { %s267_s24 = scalar_lea.sflag [#allocation5], %s266_s7 }
  0x79   : > { %1161 = dma.done.wait (%p1552_p12), %s267_s24, 832  }
  0x7a   : > { %1163 = vsyncadd (%p1552_p12), %s267_s24, 4294966464  ;;  %p323_p10 = scmp.lt.s32.totalorder %s1182_s19, 1  ;;  %v1201_v0 = vmov 0.0   ;;  %vm1202_vm0 = vmmov 0   ;;  %v1024_v2 = vld [vmem:[%s1430_s5] sm:$0xff]   ;;  %vm364_vm1 = vcmask 130048  }
  0x7b   : > { %877 = vmatprep.subr.bf16.mxu0 %v1201_v0  ;;  %879 = vmatprep.mubr.msk.bf16.mxu0 %vm1202_vm0, %v1201_v0  ;;  %v1026_v3 = vld [vmem:[%s1430_s5 + $0x10] ss:$0 sps:$4 sm:$0x33]   ;;  %v1027_v4 = vld [vmem:[%s1439_s25] sm:$0xff]   ;;  %v1029_v7 = vld [vmem:[%s1439_s25 + $0x10] sm:$0xff]   ;;  %vm465_vm2 = vcmask 523264  }
  0x7c   : > { %s1569_s19 = smov (!%p323_p10, %s1182_s19), 1  ;;  %929 = vmatprep.subr.bf16.mxu1 %v1201_v0  ;;  %887 = vmatprep.mubr.msk.bf16.mxu1 %vm1202_vm0, %v1201_v0  ;;  %v1028_v5 = vld [vmem:[%s1439_s25 + $0x8] sm:$0xff]   ;;  %v1025_v6 = vld [vmem:[%s1430_s5 + $0x8] sm:$0xff]   ;;  %s279_s23 = scalar_lea.vmem [#allocation6], %s935_s11  ;;  %vm562_vm3 = vcmask 1041408   ;;  %vm552_vm4 = vcmask 293888  }
  0x7d   : > { %s843_s30 = sshll.u32 %s1569_s19, 3  ;;  %v1030_v8 = vld [vmem:[%s1439_s25 + $0x18] sm:$0xff]   ;;  %v1033_v42 = vld [vmem:[%s279_s23 + $0x10] ss:$0 sps:$4 sm:$0x33]   ;;  %p330_p3 = scmp.lt.s32.totalorder %s1178_s18, 3 }
  0x7e   : > { %s327_s27 = scalar_lea.vmem %s1522_s0, %s843_s30  ;;  %v1031_v40 = vld [vmem:[%s279_s23] sm:$0xff]   ;;  %v1032_v41 = vld [vmem:[%s279_s23 + $0x8] sm:$0xff]   ;;  %s937_s15 = smul.u32 20, %s1569_s19 }
  0x7f   : > { %v1023_v1 = vld [vmem:[%s327_s27] sm:$0xff]   ;;  %s1571_s18 = smov (!%p330_p3, %s1178_s18), 3 }
  0x80   : > { %878 = vmatpush3.bf16.msra.mxu0 %v1023_v1  ;;  %930 = vmatpush3.bf16.msra.mxu1 %v1023_v1  ;;  %s936_s6 = smul.u32 5, %s1571_s18 }
  0x81   : > { %891 = vmatprep.subr.bf16.mxu1 %v1201_v0  ;;  %911 = vmatprep.subr.bf16.mxu0 %v1201_v0 }
  0x82   : > { %s334_s21 = sadd.s32 %s937_s15, %s936_s6 }
  0x83   : > { %880 = vmatmul.mubr.msk.bf16.vlgmr.msra.gmra.mrb[0].mxu0 %vm364_vm1, %v1024_v2  ;;  %888 = vmatmul.mubr.msk.bf16.vlgmr.msra.gmra.mrb[0].mxu1 %vm364_vm1, %v1026_v3  ;;  %s814_s2 = sshll.u32 %s334_s21, 2 }
  0x84   : > { %883 = vmatprep.mubr.msk.bf16.mxu0 %vm1202_vm0, %v1201_v0  ;;  %892 = vmatpush3.bf16.msra.mxu1 %v1027_v4  ;;  %s336_s1 = scalar_lea.vmem %s1526_s4, %s814_s2 }
  0x85   : > { %893 = vmatprep.subr.bf16.mxu1 %v1201_v0  ;;  %899 = vmatprep.mubr.msk.bf16.mxu1 %vm1202_vm0, %v1201_v0 }
  0x88   : > { %894 = vmatpush3.bf16.msra.mxu1 %v1028_v5 }
  0x89   : > { %895 = vmatprep.subr.bf16.mxu1 %v1201_v0 }
  0x8b   : > { %884 = vmatmul.mubr.msk.bf16.gmra.mrb[4].mxu0 %vm364_vm1, %v1025_v6 }
  0x8c   : > { %896 = vmatpush3.bf16.msra.mxu1 %v1029_v7  ;;  %917 = vmatprep.mubr.msk.bf16.mxu0 %vm1202_vm0, %v1201_v0 }
  0x8d   : > { %897 = vmatprep.subr.bf16.mxu1 %v1201_v0 }
  0x90   : > { %898 = vmatpush3.bf16.msra.mxu1 %v1030_v8 }
 0x156   : > { %v408_v9 = vpop.f32.mrb[0].mxu0  ;;  %v424_v10 = vpop.f32.mrb[0].mxu1 }
 0x157   : > { %v881_v11 = vpop.f32.mrb[1].mxu0  ;;  %v889_v12 = vpop.f32.mrb[1].mxu1  ;;  %v432_v23 = vpack.c.bf16 %v424_v10, %v424_v10 }
 0x158   : > { %v411_v13 = vpop.f32.mrb[2].mxu0  ;;  %v427_v14 = vpop.f32.mrb[2].mxu1 }
 0x159   : > { %v430_v15 = vpack.c.bf16 %v411_v13, %v408_v9  ;;  %v882_v16 = vpop.f32.mrb[3].mxu0  ;;  %v890_v17 = vpop.f32.mrb[3].mxu1 }
 0x15b   : > { %900 = vmatmul.mubr.msk.bf16.vlgmr.msra.gmra.mrb[4].mxu1 %vm465_vm2, %v430_v15 }
 0x15c   : > { %903 = vmatprep.mubr.msk.bf16.mxu1 %vm1202_vm0, %v1201_v0 }
 0x15e   : > { %v416_v18 = vpop.f32.mrb[4].mxu0 }
 0x15f   : > { %v885_v19 = vpop.f32.mrb[5].mxu0 }
 0x160   : > { %v419_v20 = vpop.f32.mrb[6].mxu0 }
 0x161   : > { %v431_v21 = vpack.c.bf16 %v419_v20, %v416_v18  ;;  %v886_v22 = vpop.f32.mrb[7].mxu0 }
 0x163   : > { %904 = vmatmul.mubr.msk.bf16.gmra.mrb[8].mxu1 %vm465_vm2, %v431_v21 }
 0x164   : > { %907 = vmatprep.mubr.msk.bf16.mxu1 %vm1202_vm0, %v1201_v0 }
 0x16b   : > { %908 = vmatmul.mubr.msk.bf16.gmra.mrb[12].mxu1 %vm465_vm2, %v432_v23 }
 0x22e   : > { %v509_v24 = vpop.f32.mrb[4].mxu1 }
 0x22f   : > { %v901_v25 = vpop.f32.mrb[5].mxu1 }
 0x230   : > { %v512_v26 = vpop.f32.mrb[6].mxu1 }
 0x231   : > { %v536_v27 = vpack.c.bf16 %v512_v26, %v509_v24  ;;  %v902_v28 = vpop.f32.mrb[7].mxu1 }
 0x233   : > { %912 = vmatpush3.bf16.msra.mxu0 %v536_v27 }
 0x234   : > { %913 = vmatprep.subr.bf16.mxu0 %v1201_v0 }
 0x236   : > { %v517_v29 = vpop.f32.mrb[8].mxu1 }
 0x237   : > { %v905_v30 = vpop.f32.mrb[9].mxu1 }
 0x238   : > { %v520_v31 = vpop.f32.mrb[10].mxu1 }
 0x239   : > { %v537_v32 = vpack.c.bf16 %v520_v31, %v517_v29  ;;  %v906_v33 = vpop.f32.mrb[11].mxu1 }
 0x23b   : > { %914 = vmatpush3.bf16.msra.mxu0 %v537_v32 }
 0x23c   : > { %915 = vmatprep.subr.bf16.mxu0 %v1201_v0 }
 0x23e   : > { %v525_v34 = vpop.f32.mrb[12].mxu1 }
 0x23f   : > { %v538_v35 = vpack.c.bf16 %v525_v34, %v525_v34  ;;  %v909_v36 = vpop.f32.mrb[13].mxu1 }
 0x240   : > { %v528_v37 = vpop.f32.mrb[14].mxu1 }
 0x241   : > { %v564_v38 = vsel %vm562_vm3, %v538_v35, 0  ;;  %v910_v39 = vpop.f32.mrb[15].mxu1 }
 0x242   : > { %916 = vmatpush3.bf16.msra.mxu0 %v564_v38 }
 0x245   : > { %918 = vmatmul.mubr.msk.bf16.vlgmr.msra.gmra.mrb[8].mxu0 %vm552_vm4, %v1031_v40 }
 0x246   : > { %921 = vmatprep.mubr.msk.bf16.mxu0 %vm1202_vm0, %v1201_v0 }
 0x24d   : > { %922 = vmatmul.mubr.msk.bf16.gmra.mrb[12].mxu0 %vm552_vm4, %v1032_v41 }
 0x24e   : > { %925 = vmatprep.mubr.msk.bf16.mxu0 %vm1202_vm0, %v1201_v0 }
 0x255   : > { %926 = vmatmul.mubr.msk.bf16.gmra.mrb[16].mxu0 %vm552_vm4, %v1033_v42 }
 0x318   : > { %v600_v43 = vpop.f32.mrb[8].mxu0 }
 0x319   : > { %v919_v44 = vpop.f32.mrb[9].mxu0 }
 0x31a   : > { %v603_v45 = vpop.f32.mrb[10].mxu0 }
 0x31b   : > { %v852_v46 = vpack.c.bf16 %v603_v45, %v600_v43  ;;  %v920_v47 = vpop.f32.mrb[11].mxu0 }
 0x31d   : > { %853 = vst [vmem:[%s336_s1] sm:$0xff] %v852_v46  }
 0x320   : > { %v608_v48 = vpop.f32.mrb[12].mxu0 }
 0x321   : > { %v923_v49 = vpop.f32.mrb[13].mxu0 }
 0x322   : > { %v611_v50 = vpop.f32.mrb[14].mxu0 }
 0x323   : > { %v857_v51 = vpack.c.bf16 %v611_v50, %v608_v48  ;;  %v924_v52 = vpop.f32.mrb[15].mxu0 }
 0x325   : > { %859 = vst [vmem:[%s336_s1 + $0x8] sm:$0xff] %v857_v51  }
 0x328   : > { %v616_v53 = vpop.f32.mrb[16].mxu0 }
 0x329   : > { %v848_v54 = vpack.c.bf16 %v616_v53, %v616_v53  ;;  %v927_v55 = vpop.f32.mrb[17].mxu0 }
 0x32a   : > { %v619_v56 = vpop.f32.mrb[18].mxu0 }
 0x32b   : > { %647 = vst [vmem:[%s336_s1 + $0x10] sm:$0x3] %v848_v54  ;;  %v928_v57 = vpop.f32.mrb[19].mxu0 }
 0x32c PF: > { %s20_s22 = sadd.s32 1, %s1194_s22   ;;  %s1554_s19 = sld [smem:[#allocation9_spill]] }
 0x32d   : > { %p17_p9 = scmp.ge.s32.totalorder %s20_s22, 10   ;;  %s1555_s26 = sld [smem:[#allocation10_spill]] }
 0x32e   : > { %s1556_s21 = sld [smem:[#allocation11_spill]]  ;;  %s1557_s15 = smov %s1170_s16 }
 0x32f   : > { %s1558_s16 = smov %s1174_s17  ;;  %s1559_s17 = smov %s1282_s28 }
 0x330   : > { %s1560_s18 = smov %s1186_s20  ;;  %19 = sbr.rel (!%p17_p9) target bundleno = 10 (0xa), region = 103 }
 0x333   : > { %s1561_s20 = smov %s1555_s26 }
 0x337   :  { %677 = vsyncpa [#allocation3], 1 }
 0x338   :  { %679 = vsyncpa [#allocation3 + $0x1], 1 }
 0x339   :  { %680 = vsyncpa [#allocation5], 1 }
 0x33a   :  { %682 = vsyncpa [#allocation5 + $0x1], 1 }

// kernel: pspnet_forward.11
= control target key start
LH: loop header
LB: loop body
LE: loop exit
PB: predicated region body
PF: predicated region fallthrough
CT: control target
= control target key end

     0   :  { %9 = vsyncpa [#allocation4], 0  ;;  %s2955_s0 = inlined_call_operand.vmem [shape: bf16[2,36,128], index: 0, kind: input, shape index: {}]   ;;  %s2956_s1 = inlined_call_operand.hbm [shape: bf16[1,1152,256], index: 1, kind: input, shape index: {}]   ;;  %s2957_s2 = inlined_call_operand.hbm [shape: f32[1,256], index: 2, kind: input, shape index: {}]   ;;  %s2958_s3 = inlined_call_operand.hbm [shape: f32[1,256], index: 3, kind: input, shape index: {}]   ;;  %s2959_s4 = inlined_call_operand.vmem [shape: bf16[2,22,256], index: 4, kind: output, shape index: {}]  }
   0x1   :  { %10 = vsyncpa [#allocation6], 0  ;;  %s2718_s15 = smov 0   ;;  %s2720_s16 = smov 0  }
   0x2   :  { %s2722_s17 = smov 0  }
   0x3 LB: > { %s2686_s18 = smov [#allocation5]   ;;  %s2054_s20 = sadd.s32 4294967295, %s2684_s17   ;;  %s2684_s17 = sphi %s2722_s17, %s16_s17   ;;  %s2680_s16 = sphi %s2720_s16, %s2972_s16   ;;  %s2676_s15 = sphi %s2718_s15, %s2971_s15  }
   0x4   : > { %s210_s19 = sshll.u32 %s2686_s18, 4  ;;  %p2056_p0 = scmp.ge.s32.totalorder %s2684_s17, 1  ;;  %s211_s19 = int_to_ptr.vmem [resolvable:$true] %s210_s19 }
   0x5   : > { %p176_p1 = scmp.lt.s32.totalorder %s2684_s17, 3  ;;  %p2736_p2 = scmp.eq.s32.totalorder %s2054_s20, 0 }
   0x6   : > { %s35_s23 = sadd.s32 1, %s2680_s16  ;;  %s2687_s26 = smov [#allocation3]  }
   0x7   : > { %s2963_s21 = scalar_select %p2736_p2, 1, 0 }
   0x8   : > { %p2740_p3 = pnand %p2056_p0, %p176_p1  ;;  %p2753_p6 = scmp.ge.s32.totalorder %s35_s23, 2 }
   0x9   : > { %s193_s27 = sshll.u32 %s2687_s26, 4  ;;  %s2570_s30 = scalar_lea.hbm %s2957_s2, 32  ;;  %s2757_s27 = int_to_ptr.vmem [resolvable:$true] %s193_s27 }
   0xa   : > { %s2964_s22 = scalar_select %p2740_p3, 1, 0 }
   0xb   : > { %p2294_p4 = pneg %p2740_p3  ;;  %p2571_p7 = scmp.ne.s32.totalorder %s2957_s2, %s2570_s30 }
   0xc   : > { %s2966_s25 = scalar_select %p2753_p6, 1, 0 }
   0xd   : > { %p2749_p5 = pnand %p2736_p2, %p2294_p4  ;;  %p2577_p11 = scmp.lt.u32.totalorder %s2570_s30, %s2957_s2 }
   0xf   : > { %p2767_p8 = pneg %p2749_p5 }
  0x11   : > { %p2573_p9 = pnand %p2767_p8, %p2571_p7 }
  0x13   : > { %p2574_p10 = pneg %p2573_p9 }
  0x15   : > { %p2579_p12 = pnand %p2577_p11, %p2574_p10 }
  0x17   : > { %2582 = shalt.err (!%p2579_p12)
}
  0x18   : > { %s2583_s10 = scalar_lea.vmem %s211_s19, 32  ;;  %p2591_p4 = scmp.lt.s32.totalorder %s211_s19, %s211_s19 }
  0x19   : > { %p2584_p13 = scmp.ne.s32.totalorder %s211_s19, %s2583_s10  ;;  %p2592_p2 = scmp.lt.s32.totalorder %s2583_s10, %s2583_s10 }
  0x1b   : > { %p2586_p0 = pnand %p2584_p13, %p2767_p8  ;;  %p2593_p3 = por %p2592_p2, %p2591_p4 }
  0x1d   : > { %p2587_p1 = pneg %p2586_p0 }
  0x1f   : > { %p2594_p6 = pnand %p2593_p3, %p2587_p1 }
  0x21   : > { %2597 = shalt.err (!%p2594_p6)
}
  0x22   : > { %2300 = dma.hbm_to_vmem [thread:$0]  (!%p2749_p5), %s2957_s2, 32, %s211_s19, [#allocation6]  }
  0x23   : > { %p2968_p7 = scmp.ne.s32.totalorder %s2966_s25, 0  ;;  %s2598_s18 = scalar_lea.hbm %s2956_s1, 18432 }
  0x24   : > { %p2599_p2 = scmp.ne.s32.totalorder %s2956_s1, %s2598_s18  ;;  %p2605_p9 = scmp.lt.u32.totalorder %s2598_s18, %s2956_s1 }
  0x25   : > { %s2974_s23 = smov (%p2968_p7, %s35_s23), 0 }
  0x26   : > { %p2601_p3 = pnand %p2599_p2, %p2767_p8 }
  0x28   : > { %p2602_p6 = pneg %p2601_p3 }
  0x2a   : > { %p2607_p10 = pnand %p2605_p9, %p2602_p6 }
  0x2c   : > { %2610 = shalt.err (!%p2607_p10)
}
  0x2d   : > { %s2611_s19 = scalar_lea.vmem %s2757_s27, 18432  ;;  %p2619_p0 = scmp.lt.s32.totalorder %s2757_s27, %s2757_s27 }
  0x2e   : > { %p2612_p11 = scmp.ne.s32.totalorder %s2757_s27, %s2611_s19  ;;  %p2620_p1 = scmp.lt.s32.totalorder %s2611_s19, %s2611_s19 }
  0x30   : > { %p2614_p12 = pnand %p2612_p11, %p2767_p8  ;;  %p2621_p4 = por %p2620_p1, %p2619_p0 }
  0x32   : > { %p2615_p13 = pneg %p2614_p12 }
  0x34   : > { %p2622_p7 = pnand %p2621_p4, %p2615_p13 }
  0x36   : > { %2625 = shalt.err (!%p2622_p7)
}
  0x37   : > { %s2688_s25 = smov 128   ;;  %s2689_s30 = smov 8  }
  0x38   : > { %2297 = dma.hbm_to_vmem [thread:$0]  (!%p2749_p5), %s2956_s1, 18432, %s2757_s27, [#allocation4], %s2688_s25, %s2688_s25, %s2689_s30  }
  0x39   : > { %s2690_s8 = smov [#allocation7]   ;;  %s2626_s12 = scalar_lea.hbm %s2958_s3, 32 }
  0x3a   : > { %s224_s9 = sshll.u32 %s2690_s8, 4  ;;  %p2627_p2 = scmp.ne.s32.totalorder %s2958_s3, %s2626_s12  ;;  %s225_s9 = int_to_ptr.vmem [resolvable:$true] %s224_s9 }
  0x3b   : > { %p2633_p9 = scmp.lt.u32.totalorder %s2626_s12, %s2958_s3 }
  0x3c   : > { %p2629_p3 = pnand %p2627_p2, %p2767_p8 }
  0x3e   : > { %p2630_p6 = pneg %p2629_p3 }
  0x40   : > { %p2635_p10 = pnand %p2633_p9, %p2630_p6 }
  0x42   : > { %2638 = shalt.err (!%p2635_p10)
}
  0x43   : > { %s2639_s27 = scalar_lea.vmem %s225_s9, 32  ;;  %p2647_p0 = scmp.lt.s32.totalorder %s225_s9, %s225_s9 }
  0x44   : > { %p2640_p11 = scmp.ne.s32.totalorder %s225_s9, %s2639_s27  ;;  %p2648_p1 = scmp.lt.s32.totalorder %s2639_s27, %s2639_s27 }
  0x46   : > { %p2642_p12 = pnand %p2640_p11, %p2767_p8  ;;  %p2649_p4 = por %p2648_p1, %p2647_p0 }
  0x48   : > { %p2643_p13 = pneg %p2642_p12 }
  0x4a   : > { %p2650_p7 = pnand %p2649_p4, %p2643_p13 }
  0x4c   : > { %2653 = shalt.err (!%p2650_p7)
}
  0x4d   : > { %2303 = dma.hbm_to_vmem [thread:$0]  (!%p2749_p5), %s2958_s3, 32, %s225_s9, [#allocation6]  }
  0x4e   : > { %p2969_p2 = scmp.ne.s32.totalorder %s2964_s22, 0 }
  0x4f   : > { %p2970_p3 = scmp.ne.s32.totalorder (!%p2969_p2), %s2963_s21, 0 }
  0x50   : > { %248 = sbr.rel (%p2969_p2) target bundleno = 486 (0x1e6), region = 36 }
  0x57   : > { %2667 = dma.done.wait (%p2970_p3), [#allocation4], 18432  }
  0x58   : > { %2669 = vsyncadd (%p2970_p3), [#allocation4], 4294948864 }
  0x59   : > { %2671 = dma.done.wait (%p2970_p3), [#allocation6], 64  }
  0x5a   : > { %2673 = vsyncadd (%p2970_p3), [#allocation6], 4294967232  ;;  %v2691_v0 = vmov 0   ;;  %v2341_v1 = vld [vmem:[#allocation3 + $0x84] ss:$8 sps:$4 sm:$0xff]   ;;  %p289_p5 = scmp.lt.s32.totalorder %s2676_s15, 1 }
  0x5b   : > { %501 = vmatprep.mubr.bf16.mxu1 %v2691_v0  ;;  %1144 = vmatprep.mubr.bf16.mxu0 %v2691_v0  ;;  %v2343_v2 = vld [vmem:[#allocation3 + $0x204] ss:$8 sps:$4 sm:$0xff]   ;;  %v2345_v3 = vld [vmem:[#allocation3 + $0x80] ss:$8 sps:$4 sm:$0xff]   ;;  %v2347_v5 = vld [vmem:[#allocation3 + $0x94] ss:$8 sps:$4 sm:$0xff]  }
  0x5c   : > { %469 = vmatprep.subr.bf16.mxu1 %v2341_v1  ;;  %v2346_v4 = vld [vmem:[#allocation3 + $0x200] ss:$8 sps:$4 sm:$0xff]   ;;  %1112 = vmatprep.subr.bf16.mxu0 %v2343_v2  ;;  %v2349_v6 = vld [vmem:[#allocation3 + $0x214] ss:$8 sps:$4 sm:$0xff]   ;;  %v2351_v7 = vld [vmem:[#allocation3 + $0x90] ss:$8 sps:$4 sm:$0xff]  }
  0x5d   : > { %470 = vmatpush1.bf16.msra.mxu1 %v2345_v3  ;;  %1113 = vmatpush1.bf16.msra.mxu0 %v2346_v4  ;;  %v2352_v8 = vld [vmem:[#allocation3 + $0x210] ss:$8 sps:$4 sm:$0xff]   ;;  %v2353_v9 = vld [vmem:[#allocation3 + $0xa4] ss:$8 sps:$4 sm:$0xff]   ;;  %v2357_v11 = vld [vmem:[#allocation3 + $0xa0] ss:$8 sps:$4 sm:$0xff]  }
  0x5e   : > { %471 = vmatprep.subr.bf16.mxu1 %v2347_v5  ;;  %1114 = vmatprep.subr.bf16.mxu0 %v2349_v6  ;;  %v2355_v10 = vld [vmem:[#allocation3 + $0x224] ss:$8 sps:$4 sm:$0xff]   ;;  %v2358_v12 = vld [vmem:[#allocation3 + $0x220] ss:$8 sps:$4 sm:$0xff]   ;;  %v2359_v13 = vld [vmem:[#allocation3 + $0xb4] ss:$8 sps:$4 sm:$0xff]  }
  0x5f   : > { %v2361_v14 = vld [vmem:[#allocation3 + $0x234] ss:$8 sps:$4 sm:$0xff]   ;;  %v2363_v15 = vld [vmem:[#allocation3 + $0xb0] ss:$8 sps:$4 sm:$0xff]   ;;  %v2365_v17 = vld [vmem:[#allocation3 + $0xc4] ss:$8 sps:$4 sm:$0xff]  }
  0x60   : > { %v2364_v16 = vld [vmem:[#allocation3 + $0x230] ss:$8 sps:$4 sm:$0xff]   ;;  %v2367_v18 = vld [vmem:[#allocation3 + $0x244] ss:$8 sps:$4 sm:$0xff]   ;;  %s2976_s15 = smov (!%p289_p5, %s2676_s15), 1  ;;  %vm676_vm2 = vcmask 1046528  }
  0x61   : > { %472 = vmatpush1.bf16.msra.mxu1 %v2351_v7  ;;  %1115 = vmatpush1.bf16.msra.mxu0 %v2352_v8  ;;  %v2369_v19 = vld [vmem:[#allocation3 + $0xc0] ss:$8 sps:$4 sm:$0xff]   ;;  %v2371_v21 = vld [vmem:[#allocation3 + $0xd4] ss:$8 sps:$4 sm:$0xff]   ;;  %s2280_s21 = smul.u32 20, %s2976_s15  ;;  %vm1356_vm3 = vcmask 1045504  }
  0x62   : > { %473 = vmatprep.subr.bf16.mxu1 %v2353_v9  ;;  %1116 = vmatprep.subr.bf16.mxu0 %v2355_v10  ;;  %v2370_v20 = vld [vmem:[#allocation3 + $0x240] ss:$8 sps:$4 sm:$0xff]   ;;  %v2373_v22 = vld [vmem:[#allocation3 + $0x254] ss:$8 sps:$4 sm:$0xff]   ;;  %v2375_v23 = vld [vmem:[#allocation3 + $0xd0] ss:$8 sps:$4 sm:$0xff]  }
  0x63   : > { %v2376_v24 = vld [vmem:[#allocation3 + $0x250] ss:$8 sps:$4 sm:$0xff]   ;;  %v2377_v25 = vld [vmem:[#allocation3 + $0xe4] ss:$8 sps:$4 sm:$0xff]   ;;  %s2848_s7 = scalar_lea.vmem %s2955_s0, %s2280_s21  ;;  %v2381_v27 = vld [vmem:[#allocation3 + $0xe0] ss:$8 sps:$4 sm:$0xff]  }
  0x64   : > { %v2379_v26 = vld [vmem:[#allocation3 + $0x264] ss:$8 sps:$4 sm:$0xff]   ;;  %v2382_v28 = vld [vmem:[#allocation3 + $0x260] ss:$8 sps:$4 sm:$0xff]   ;;  %v2383_v29 = vld [vmem:[#allocation3 + $0xf4] ss:$8 sps:$4 sm:$0xff]  }
  0x65   : > { %474 = vmatpush1.bf16.msra.mxu1 %v2357_v11  ;;  %1117 = vmatpush1.bf16.msra.mxu0 %v2358_v12  ;;  %v2385_v30 = vld [vmem:[#allocation3 + $0x274] ss:$8 sps:$4 sm:$0xff]   ;;  %v327_v31 = vld [vmem:[%s2848_s7] sm:$0xf]  ;;  %v2858_v34 = vld [vmem:[%s2848_s7 + $0x8] ss:$0 sps:$4 sm:$0xff]  }
  0x66   : > { %475 = vmatprep.subr.bf16.mxu1 %v2359_v13  ;;  %1118 = vmatprep.subr.bf16.mxu0 %v2361_v14  ;;  %v2852_v32 = vld [vmem:[%s2848_s7 + $0x4] sm:$0xf]  ;;  %v819_v35 = vld [vmem:[%s2848_s7] sm:$0x8]  ;;  %v2865_v38 = vld [vmem:[%s2848_s7 + $0x8] sm:$0xf] }
  0x67   : > { %v2855_v33 = vcombine.low %v327_v31, %v2852_v32  ;;  %v2862_v36 = vld [vmem:[%s2848_s7 + $0x4] sm:$0xf]  ;;  %v2387_v37 = vld [vmem:[#allocation3 + $0xf0] ss:$8 sps:$4 sm:$0xff]   ;;  %v2871_v40 = vld [vmem:[%s2848_s7 + $0xc] sm:$0x7] }
  0x68   : > { %v2868_v39 = vcombine.low %v819_v35, %v2862_v36  ;;  %v2388_v41 = vld [vmem:[#allocation3 + $0x270] ss:$8 sps:$4 sm:$0xff]   ;;  %v380_v44 = vshll.u32 %v2858_v34, 16  ;;  %v2137_v45 = vcombine.low %v2865_v38, %v2871_v40  ;;  %v2391_v46 = vld [vmem:[#allocation3 + $0x4] ss:$8 sps:$4 sm:$0xff]   ;;  %v384_v5 = vshrl.u32 %v2858_v34, 16 }
  0x69   : > { %476 = vmatpush1.bf16.msra.mxu1 %v2363_v15  ;;  %1119 = vmatpush1.bf16.msra.mxu0 %v2364_v16  ;;  %v373_v42 = vshrl.u32 %v2855_v33, 16  ;;  %v375_v43 = vshll.u32 %v2855_v33, 16  ;;  %v2394_v49 = vld [vmem:[#allocation3 + $0x284] ss:$8 sps:$4 sm:$0xff]   ;;  %vm371_vm0 = vsmask.f32 7424 }
  0x6a   : > { %477 = vmatprep.subr.bf16.mxu1 %v2365_v17  ;;  %1120 = vmatprep.subr.bf16.mxu0 %v2367_v18  ;;  %v1014_v47 = vshrl.u32 %v2868_v39, 16  ;;  %v1017_v48 = vshll.u32 %v2868_v39, 16  ;;  %v382_v51 = vrot.slane %v380_v44, 1  ;;  %v1022_v52 = vshrl.u32 %v2137_v45, 16  ;;  %v2389_v56 = vld [vmem:[#allocation3] ss:$8 sps:$4 sm:$0xff]  }
  0x6b   : > { %v377_v50 = vrot.slane %v375_v43, 1  ;;  %v1025_v53 = vshll.u32 %v2137_v45, 16  ;;  %v2392_v60 = vld [vmem:[#allocation3 + $0x280] ss:$8 sps:$4 sm:$0xff]   ;;  %vm1012_vm1 = vsmask.f32 4352 }
  0x6c   : > { %v1016_v54 = vrot.slane %v1014_v47, 3  ;;  %v1019_v55 = vrot.slane %v1017_v48, 4  ;;  %v1024_v58 = vrot.slane %v1022_v52, 3  ;;  %v2401_v1 = vld [vmem:[#allocation3 + $0x14] ss:$8 sps:$4 sm:$0xff]   ;;  %v386_v10 = vor.u32 %v384_v5, %v382_v51  ;;  %s2281_s29 = smul.u32 24, %s2976_s15 }
  0x6d   : > { %478 = vmatpush1.bf16.msra.mxu1 %v2369_v19  ;;  %1121 = vmatpush1.bf16.msra.mxu0 %v2370_v20  ;;  %v378_v57 = vor.u32 %v377_v50, %v373_v42  ;;  %v1027_v59 = vrot.slane %v1025_v53, 4  ;;  %v2404_v2 = vld [vmem:[#allocation3 + $0x294] ss:$8 sps:$4 sm:$0xff]   ;;  %v2399_v4 = vld [vmem:[#allocation3 + $0x10] ss:$8 sps:$4 sm:$0xff]   ;;  %v2154_v42 = vcombine.low %v2862_v36, %v2865_v38  ;;  %v678_v36 = vrot.slane %v2858_v34, 1 }
  0x6e   : > { %479 = vmatprep.subr.bf16.mxu1 %v2371_v21  ;;  %1122 = vmatprep.subr.bf16.mxu0 %v2373_v22  ;;  %v1020_v61 = vor.u32 %v1019_v55, %v1016_v54  ;;  %v2402_v6 = vld [vmem:[#allocation3 + $0x290] ss:$8 sps:$4 sm:$0xff]   ;;  %v2407_v7 = vld [vmem:[#allocation3 + $0x24] ss:$8 sps:$4 sm:$0xff]   ;;  %v2405_v9 = vld [vmem:[#allocation3 + $0x20] ss:$8 sps:$4 sm:$0xff]   ;;  %v2155_v54 = vcombine.low %v2871_v40, %v2871_v40  ;;  %s308_s30 = scalar_lea.vmem %s2959_s4, %s2281_s29 }
  0x6f   : > { %v383_v62 = vsel %vm371_vm0, %v378_v57, %v382_v51  ;;  %v1028_v63 = vor.u32 %v1027_v59, %v1024_v58  ;;  %v2410_v8 = vld [vmem:[#allocation3 + $0x2a4] ss:$8 sps:$4 sm:$0xff]   ;;  %v2408_v11 = vld [vmem:[#allocation3 + $0x2a0] ss:$8 sps:$4 sm:$0xff]   ;;  %v2413_v12 = vld [vmem:[#allocation3 + $0x34] ss:$8 sps:$4 sm:$0xff]  }
  0x70   : > { %v2416_v13 = vld [vmem:[#allocation3 + $0x2b4] ss:$8 sps:$4 sm:$0xff]   ;;  %v2411_v14 = vld [vmem:[#allocation3 + $0x30] ss:$8 sps:$4 sm:$0xff]   ;;  %v2419_v16 = vld [vmem:[#allocation3 + $0x44] ss:$8 sps:$4 sm:$0xff]  }
  0x71   : > { %480 = vmatpush1.bf16.msra.mxu1 %v2375_v23  ;;  %1123 = vmatpush1.bf16.msra.mxu0 %v2376_v24  ;;  %v1029_v3 = vsel %vm1012_vm1, %v1020_v61, %v1028_v63  ;;  %v2414_v15 = vld [vmem:[#allocation3 + $0x2b0] ss:$8 sps:$4 sm:$0xff]   ;;  %v2422_v17 = vld [vmem:[#allocation3 + $0x2c4] ss:$8 sps:$4 sm:$0xff]   ;;  %v2417_v18 = vld [vmem:[#allocation3 + $0x40] ss:$8 sps:$4 sm:$0xff]  }
  0x72   : > { %481 = vmatprep.subr.bf16.mxu1 %v2377_v25  ;;  %1124 = vmatprep.subr.bf16.mxu0 %v2379_v26  ;;  %v2420_v19 = vld [vmem:[#allocation3 + $0x2c0] ss:$8 sps:$4 sm:$0xff]   ;;  %v2425_v20 = vld [vmem:[#allocation3 + $0x54] ss:$8 sps:$4 sm:$0xff]   ;;  %v2423_v22 = vld [vmem:[#allocation3 + $0x50] ss:$8 sps:$4 sm:$0xff]  }
  0x73   : > { %v2428_v21 = vld [vmem:[#allocation3 + $0x2d4] ss:$8 sps:$4 sm:$0xff]   ;;  %v2426_v23 = vld [vmem:[#allocation3 + $0x2d0] ss:$8 sps:$4 sm:$0xff]   ;;  %v2431_v24 = vld [vmem:[#allocation3 + $0x64] ss:$8 sps:$4 sm:$0xff]  }
  0x74   : > { %v2434_v25 = vld [vmem:[#allocation3 + $0x2e4] ss:$8 sps:$4 sm:$0xff]   ;;  %v2429_v26 = vld [vmem:[#allocation3 + $0x60] ss:$8 sps:$4 sm:$0xff]   ;;  %v2438_v31 = vld [vmem:[#allocation3 + $0x2f0] ss:$8 sps:$4 sm:$0xff]  }
  0x75   : > { %482 = vmatpush1.bf16.msra.mxu1 %v2381_v27  ;;  %1125 = vmatpush1.bf16.msra.mxu0 %v2382_v28  ;;  %v2432_v27 = vld [vmem:[#allocation3 + $0x2e0] ss:$8 sps:$4 sm:$0xff]   ;;  %v2437_v28 = vld [vmem:[#allocation3 + $0x74] ss:$8 sps:$4 sm:$0xff]   ;;  %v2443_v35 = vld [vmem:[#allocation3 + $0x104] ss:$8 sps:$4 sm:$0xff]  }
  0x76   : > { %483 = vmatprep.subr.bf16.mxu1 %v2383_v29  ;;  %1126 = vmatprep.subr.bf16.mxu0 %v2385_v30  ;;  %v2440_v29 = vld [vmem:[#allocation3 + $0x2f4] ss:$8 sps:$4 sm:$0xff]   ;;  %v2435_v30 = vld [vmem:[#allocation3 + $0x70] ss:$8 sps:$4 sm:$0xff]   ;;  %v2444_v43 = vld [vmem:[#allocation3 + $0x300] ss:$8 sps:$4 sm:$0xff]  }
  0x77   : > { %v2450_v44 = vld [vmem:[#allocation3 + $0x114] ss:$8 sps:$4 sm:$0xff]   ;;  %v2451_v47 = vld [vmem:[#allocation3 + $0x310] ss:$8 sps:$4 sm:$0xff]   ;;  %v2460_v51 = vld [vmem:[#allocation3 + $0x324] ss:$8 sps:$4 sm:$0xff]  }
  0x78   : > { %v2453_v45 = vld [vmem:[#allocation3 + $0x314] ss:$8 sps:$4 sm:$0xff]   ;;  %v656_v48 = vld [vmem:[%s2848_s7] sm:$0xe]  ;;  %v2455_v53 = vld [vmem:[#allocation3 + $0x120] ss:$8 sps:$4 sm:$0xff]  }
  0x79   : > { %484 = vmatpush1.bf16.msra.mxu1 %v2387_v37  ;;  %1127 = vmatpush1.bf16.msra.mxu0 %v2388_v41  ;;  %v2446_v37 = vld [vmem:[#allocation3 + $0x304] ss:$8 sps:$4 sm:$0xff]   ;;  %v2441_v41 = vld [vmem:[#allocation3 + $0x100] ss:$8 sps:$4 sm:$0xff]   ;;  %v2102_v50 = vcombine.low %v656_v48, %v2852_v32  ;;  %v2463_v32 = vld [vmem:[#allocation3 + $0x134] ss:$8 sps:$4 sm:$0xff]  }
  0x7a   : > { %605 = vmatprep.subr.bf16.mxu1 %v2391_v46  ;;  %1269 = vmatprep.subr.bf16.mxu0 %v2394_v49  ;;  %v2448_v46 = vld [vmem:[#allocation3 + $0x110] ss:$8 sps:$4 sm:$0xff]   ;;  %v2457_v49 = vld [vmem:[#allocation3 + $0x124] ss:$8 sps:$4 sm:$0xff]   ;;  %v2458_v55 = vld [vmem:[#allocation3 + $0x320] ss:$8 sps:$4 sm:$0xff]  }
  0x7b   : > { %v2454_v52 = vld [vmem:[%s2848_s7 + $0x8] ss:$0 sps:$4 sm:$0x77]   ;;  %v2466_v57 = vld [vmem:[#allocation3 + $0x334] ss:$8 sps:$4 sm:$0xff]   ;;  %vm849_vm4 = vcmask 1044480  }
  0x7c   : > { %502 = vmatmul.mubr.bf16.vlgmr.msra.gmra.mrb[0].mxu1 %v383_v62  ;;  %1145 = vmatmul.mubr.bf16.vlgmr.msra.gmra.mrb[0].mxu0 %v1029_v3  ;;  %v2461_v58 = vld [vmem:[#allocation3 + $0x130] ss:$8 sps:$4 sm:$0xff]   ;;  %v2472_v40 = vld [vmem:[#allocation3 + $0x344] ss:$8 sps:$4 sm:$0xff]   ;;  %v2467_v61 = vld [vmem:[#allocation3 + $0x140] ss:$8 sps:$4 sm:$0xff]  }
  0x7d   : > { %606 = vmatpush1.bf16.msra.mxu1 %v2389_v56  ;;  %1270 = vmatpush1.bf16.msra.mxu0 %v2392_v60  ;;  %v2464_v59 = vld [vmem:[#allocation3 + $0x330] ss:$8 sps:$4 sm:$0xff]   ;;  %v2469_v60 = vld [vmem:[#allocation3 + $0x144] ss:$8 sps:$4 sm:$0xff]   ;;  %v2470_v62 = vld [vmem:[#allocation3 + $0x340] ss:$8 sps:$4 sm:$0xff]  }
  0x7e   : > { %607 = vmatprep.subr.bf16.mxu1 %v2401_v1  ;;  %1271 = vmatprep.subr.bf16.mxu0 %v2404_v2  ;;  %v2473_v1 = vld [vmem:[#allocation3 + $0x150] ss:$8 sps:$4 sm:$0xff]   ;;  %v2478_v2 = vld [vmem:[#allocation3 + $0x354] ss:$8 sps:$4 sm:$0xff]   ;;  %v2485_v5 = vld [vmem:[#allocation3 + $0x364] ss:$8 sps:$4 sm:$0xff]  }
  0x7f   : > { %1154 = vmatprep.mubr.bf16.mxu0 %v2691_v0  ;;  %511 = vmatprep.mubr.bf16.mxu1 %v2691_v0  ;;  %v2476_v3 = vld [vmem:[#allocation3 + $0x350] ss:$8 sps:$4 sm:$0xff]   ;;  %v2520_v34 = vld [vmem:[#allocation3 + $0x1c0] ss:$8 sps:$4 sm:$0xff]   ;;  %vm1519_vm5 = vsmask.f32 5376 }
  0x80   : > { %v2523_v48 = vld [vmem:[#allocation3 + $0x3c0] ss:$8 sps:$4 sm:$0xff]  }
  0x81   : > { %608 = vmatpush1.bf16.msra.mxu1 %v2399_v4  ;;  %1272 = vmatpush1.bf16.msra.mxu0 %v2402_v6  ;;  %v2482_v4 = vld [vmem:[#allocation3 + $0x164] ss:$8 sps:$4 sm:$0xff]   ;;  %v1326_v6 = vld [vmem:[%s2848_s7 + $0x4] sm:$0xc] }
  0x82   : > { %609 = vmatprep.subr.bf16.mxu1 %v2407_v7  ;;  %1273 = vmatprep.subr.bf16.mxu0 %v2410_v8  ;;  %v2904_v7 = vld [vmem:[%s2848_s7 + $0x8] sm:$0xf]  ;;  %v2907_v8 = vld [vmem:[%s2848_s7 + $0xc] sm:$0xf] }
  0x84   : > { %512 = vmatmul.mubr.bf16.gmra.mrb[4].mxu1 %v386_v10  ;;  %1155 = vmatmul.mubr.bf16.gmra.mrb[4].mxu0 %v1028_v63  ;;  %v2475_v63 = vld [vmem:[#allocation3 + $0x154] ss:$8 sps:$4 sm:$0xff]   ;;  %v2480_v10 = vld [vmem:[#allocation3 + $0x160] ss:$8 sps:$4 sm:$0xff]  }
  0x85   : > { %610 = vmatpush1.bf16.msra.mxu1 %v2405_v9  ;;  %1274 = vmatpush1.bf16.msra.mxu0 %v2408_v11  ;;  %v1329_v9 = vld [vmem:[%s2848_s7 + $0x10] sm:$0x1] }
  0x86   : > { %611 = vmatprep.subr.bf16.mxu1 %v2413_v12  ;;  %1275 = vmatprep.subr.bf16.mxu0 %v2416_v13  ;;  %v2483_v11 = vld [vmem:[#allocation3 + $0x360] ss:$8 sps:$4 sm:$0xff]   ;;  %v2488_v12 = vld [vmem:[#allocation3 + $0x174] ss:$8 sps:$4 sm:$0xff]   ;;  %v2911_v13 = vcombine.low %v1326_v6, %v2904_v7 }
  0x87   : > { %637 = vmatprep.mubr.bf16.mxu1 %v2691_v0  ;;  %1301 = vmatprep.mubr.bf16.mxu0 %v2691_v0 }
  0x89   : > { %612 = vmatpush1.bf16.msra.mxu1 %v2411_v14  ;;  %1276 = vmatpush1.bf16.msra.mxu0 %v2414_v15  ;;  %v2173_v14 = vcombine.low %v2907_v8, %v1329_v9  ;;  %v2491_v15 = vld [vmem:[#allocation3 + $0x374] ss:$8 sps:$4 sm:$0xff]  }
  0x8a   : > { %613 = vmatprep.subr.bf16.mxu1 %v2419_v16  ;;  %1277 = vmatprep.subr.bf16.mxu0 %v2422_v17  ;;  %v2486_v16 = vld [vmem:[#allocation3 + $0x170] ss:$8 sps:$4 sm:$0xff]  }
  0x8b   : > { %v2489_v17 = vld [vmem:[#allocation3 + $0x370] ss:$8 sps:$4 sm:$0xff]  }
  0x8d   : > { %614 = vmatpush1.bf16.msra.mxu1 %v2417_v18  ;;  %1278 = vmatpush1.bf16.msra.mxu0 %v2420_v19  ;;  %v2495_v18 = vld [vmem:[#allocation3 + $0x184] ss:$8 sps:$4 sm:$0xff]   ;;  %v1357_v19 = vrot.slane %v2911_v13, 2 }
  0x8e   : > { %615 = vmatprep.subr.bf16.mxu1 %v2425_v20  ;;  %1279 = vmatprep.subr.bf16.mxu0 %v2428_v21  ;;  %v1358_v20 = vrot.slane %v2173_v14, 2  ;;  %v2498_v21 = vld [vmem:[#allocation3 + $0x384] ss:$8 sps:$4 sm:$0xff]   ;;  %v2551_v14 = vld [vmem:[#allocation3 + $0x420] ss:$8 sps:$4 sm:$0xff]  }
  0x91   : > { %616 = vmatpush1.bf16.msra.mxu1 %v2423_v22  ;;  %1280 = vmatpush1.bf16.msra.mxu0 %v2426_v23  ;;  %v2493_v22 = vld [vmem:[#allocation3 + $0x180] ss:$8 sps:$4 sm:$0xff]  }
  0x92   : > { %617 = vmatprep.subr.bf16.mxu1 %v2431_v24  ;;  %1281 = vmatprep.subr.bf16.mxu0 %v2434_v25  ;;  %v2496_v23 = vld [vmem:[#allocation3 + $0x380] ss:$8 sps:$4 sm:$0xff]   ;;  %v1359_v24 = vsel %vm1356_vm3, %v1357_v19, %v1358_v20  ;;  %v2504_v25 = vld [vmem:[#allocation3 + $0x194] ss:$8 sps:$4 sm:$0xff]  }
  0x93   : > { %v2562_v19 = vld [vmem:[#allocation3 + $0x454] ss:$8 sps:$4 sm:$0xff]  }
  0x95   : > { %618 = vmatpush1.bf16.msra.mxu1 %v2429_v26  ;;  %1282 = vmatpush1.bf16.msra.mxu0 %v2432_v27  ;;  %v2507_v26 = vld [vmem:[#allocation3 + $0x394] ss:$8 sps:$4 sm:$0xff]   ;;  %v2502_v27 = vld [vmem:[#allocation3 + $0x190] ss:$8 sps:$4 sm:$0xff]  }
  0x96   : > { %619 = vmatprep.subr.bf16.mxu1 %v2437_v28  ;;  %1283 = vmatprep.subr.bf16.mxu0 %v2440_v29  ;;  %v2505_v28 = vld [vmem:[#allocation3 + $0x390] ss:$8 sps:$4 sm:$0xff]   ;;  %v2510_v29 = vld [vmem:[#allocation3 + $0x1a4] ss:$8 sps:$4 sm:$0xff]  }
  0x99   : > { %620 = vmatpush1.bf16.msra.mxu1 %v2435_v30  ;;  %1284 = vmatpush1.bf16.msra.mxu0 %v2438_v31  ;;  %v2513_v30 = vld [vmem:[#allocation3 + $0x3a4] ss:$8 sps:$4 sm:$0xff]   ;;  %v2508_v31 = vld [vmem:[#allocation3 + $0x1a0] ss:$8 sps:$4 sm:$0xff]  }
  0x9a   : > { %762 = vmatprep.subr.bf16.mxu1 %v2443_v35  ;;  %1442 = vmatprep.subr.bf16.mxu0 %v2446_v37  ;;  %v2511_v35 = vld [vmem:[#allocation3 + $0x3a0] ss:$8 sps:$4 sm:$0xff]   ;;  %v2516_v37 = vld [vmem:[#allocation3 + $0x1b4] ss:$8 sps:$4 sm:$0xff]  }
  0x9c   : > { %638 = vmatmul.mubr.bf16.vlgmr.msra.gmra.mrb[0].mxu1 %v2855_v33  ;;  %1302 = vmatmul.mubr.bf16.vlgmr.msra.gmra.mrb[0].mxu0 %v2154_v42  ;;  %v677_v33 = vrot.slane %v2102_v50, 1  ;;  %v2514_v42 = vld [vmem:[#allocation3 + $0x1b0] ss:$8 sps:$4 sm:$0xff]   ;;  %v2531_v50 = vld [vmem:[#allocation3 + $0x3d4] ss:$8 sps:$4 sm:$0xff]  }
  0x9d   : > { %763 = vmatpush1.bf16.msra.mxu1 %v2441_v41  ;;  %1443 = vmatpush1.bf16.msra.mxu0 %v2444_v43  ;;  %v2519_v41 = vld [vmem:[#allocation3 + $0x3b4] ss:$8 sps:$4 sm:$0xff]   ;;  %v1499_v43 = vld [vmem:[%s2848_s7 + $0x10] sm:$0x3] }
  0x9e   : > { %764 = vmatprep.subr.bf16.mxu1 %v2450_v44  ;;  %1444 = vmatprep.subr.bf16.mxu0 %v2453_v45  ;;  %v2898_v56 = vsel %vm676_vm2, %v677_v33, %v678_v36  ;;  %v2517_v44 = vld [vmem:[#allocation3 + $0x3b0] ss:$8 sps:$4 sm:$0xff]   ;;  %v2522_v45 = vld [vmem:[#allocation3 + $0x1c4] ss:$8 sps:$4 sm:$0xff]  }
  0x9f   : > { %647 = vmatprep.mubr.bf16.mxu1 %v2691_v0  ;;  %1311 = vmatprep.mubr.bf16.mxu0 %v2691_v0 }
  0xa1   : > { %765 = vmatpush1.bf16.msra.mxu1 %v2448_v46  ;;  %1445 = vmatpush1.bf16.msra.mxu0 %v2451_v47  ;;  %v2525_v46 = vld [vmem:[#allocation3 + $0x3c4] ss:$8 sps:$4 sm:$0xff]   ;;  %v2924_v47 = vcombine.low %v2907_v8, %v1499_v43 }
  0xa2   : > { %766 = vmatprep.subr.bf16.mxu1 %v2457_v49  ;;  %1446 = vmatprep.subr.bf16.mxu0 %v2460_v51  ;;  %v2528_v49 = vld [vmem:[#allocation3 + $0x1d4] ss:$8 sps:$4 sm:$0xff]   ;;  %v1521_v51 = vshrl.u32 %v2911_v13, 16 }
  0xa3   : > { %v1529_v33 = vshrl.u32 %v2924_v47, 16 }
  0xa4   : > { %648 = vmatmul.mubr.bf16.gmra.mrb[8].mxu1 %v2454_v52  ;;  %1312 = vmatmul.mubr.bf16.gmra.mrb[8].mxu0 %v2155_v54  ;;  %v1524_v52 = vshll.u32 %v2911_v13, 16  ;;  %v2529_v54 = vld [vmem:[#allocation3 + $0x3d0] ss:$8 sps:$4 sm:$0xff]   ;;  %v2553_v13 = vld [vmem:[#allocation3 + $0x424] ss:$8 sps:$4 sm:$0xff]  }
  0xa5   : > { %767 = vmatpush1.bf16.msra.mxu1 %v2455_v53  ;;  %1447 = vmatpush1.bf16.msra.mxu0 %v2458_v55  ;;  %v1532_v53 = vshll.u32 %v2924_v47, 16  ;;  %v2534_v55 = vld [vmem:[#allocation3 + $0x1e4] ss:$8 sps:$4 sm:$0xff]  }
  0xa6   : > { %768 = vmatprep.subr.bf16.mxu1 %v2463_v32  ;;  %1448 = vmatprep.subr.bf16.mxu0 %v2466_v57  ;;  %v822_v32 = vld [vmem:[%s2848_s7 + $0xc] sm:$0x3]  ;;  %v2532_v57 = vld [vmem:[#allocation3 + $0x1e0] ss:$8 sps:$4 sm:$0xff]  }
  0xa7   : > { %794 = vmatprep.mubr.bf16.mxu1 %v2691_v0  ;;  %1474 = vmatprep.mubr.bf16.mxu0 %v2691_v0 }
  0xa9   : > { %769 = vmatpush1.bf16.msra.mxu1 %v2461_v58  ;;  %1449 = vmatpush1.bf16.msra.mxu0 %v2464_v59  ;;  %v2120_v58 = vcombine.low %v2865_v38, %v822_v32  ;;  %v1523_v59 = vrot.slane %v1521_v51, 2  ;;  %v2547_v38 = vld [vmem:[#allocation3 + $0x404] ss:$8 sps:$4 sm:$0xff]  }
  0xaa   : > { %770 = vmatprep.subr.bf16.mxu1 %v2469_v60  ;;  %1450 = vmatprep.subr.bf16.mxu0 %v2472_v40  ;;  %v1526_v60 = vrot.slane %v1524_v52, 3  ;;  %v2535_v40 = vld [vmem:[#allocation3 + $0x3e0] ss:$8 sps:$4 sm:$0xff]  }
  0xac   : > { %v1527_v6 = vor.u32 %v1526_v60, %v1523_v59 }
  0xad   : > { %771 = vmatpush1.bf16.msra.mxu1 %v2467_v61  ;;  %1451 = vmatpush1.bf16.msra.mxu0 %v2470_v62  ;;  %v2540_v61 = vld [vmem:[#allocation3 + $0x1f4] ss:$8 sps:$4 sm:$0xff]   ;;  %v1531_v62 = vrot.slane %v1529_v33, 2 }
  0xae   : > { %772 = vmatprep.subr.bf16.mxu1 %v2475_v63  ;;  %1452 = vmatprep.subr.bf16.mxu0 %v2478_v2  ;;  %v1534_v63 = vrot.slane %v1532_v53, 3  ;;  %v2538_v2 = vld [vmem:[#allocation3 + $0x1f0] ss:$8 sps:$4 sm:$0xff]  }
  0xb0   : > { %v1535_v8 = vor.u32 %v1534_v63, %v1531_v62 }
  0xb1   : > { %773 = vmatpush1.bf16.msra.mxu1 %v2473_v1  ;;  %1453 = vmatpush1.bf16.msra.mxu0 %v2476_v3  ;;  %v2543_v1 = vld [vmem:[#allocation3 + $0x3f4] ss:$8 sps:$4 sm:$0xff]   ;;  %v850_v3 = vrot.slane %v2868_v39, 3  ;;  %v2548_v39 = vld [vmem:[#allocation3 + $0x410] ss:$8 sps:$4 sm:$0xff]  }
  0xb2   : > { %774 = vmatprep.subr.bf16.mxu1 %v2482_v4  ;;  %1454 = vmatprep.subr.bf16.mxu0 %v2485_v5  ;;  %v851_v4 = vrot.slane %v2120_v58, 3  ;;  %v2541_v5 = vld [vmem:[#allocation3 + $0x3f0] ss:$8 sps:$4 sm:$0xff]  }
  0xb4   : > { %v852_v9 = vsel %vm849_vm4, %v850_v3, %v851_v4 }
  0xb5   : > { %775 = vmatpush1.bf16.msra.mxu1 %v2480_v10  ;;  %1455 = vmatpush1.bf16.msra.mxu0 %v2483_v11  ;;  %v2545_v10 = vld [vmem:[#allocation3 + $0x400] ss:$8 sps:$4 sm:$0xff]   ;;  %v1536_v11 = vsel %vm1519_vm5, %v1527_v6, %v1535_v8 }
  0xb6   : > { %776 = vmatprep.subr.bf16.mxu1 %v2488_v12  ;;  %1456 = vmatprep.subr.bf16.mxu0 %v2491_v15  ;;  %v2550_v12 = vld [vmem:[#allocation3 + $0x414] ss:$8 sps:$4 sm:$0xff]  }
  0xb7   : > { %v2556_v15 = vld [vmem:[#allocation3 + $0x434] ss:$8 sps:$4 sm:$0xff]  }
  0xb9   : > { %777 = vmatpush1.bf16.msra.mxu1 %v2486_v16  ;;  %1457 = vmatpush1.bf16.msra.mxu0 %v2489_v17  ;;  %v2554_v16 = vld [vmem:[#allocation3 + $0x430] ss:$8 sps:$4 sm:$0xff]   ;;  %v2559_v17 = vld [vmem:[#allocation3 + $0x444] ss:$8 sps:$4 sm:$0xff]  }
  0xba   : > { %935 = vmatprep.subr.bf16.mxu1 %v2495_v18  ;;  %1619 = vmatprep.subr.bf16.mxu0 %v2498_v21  ;;  %v2557_v18 = vld [vmem:[#allocation3 + $0x440] ss:$8 sps:$4 sm:$0xff]   ;;  %v2565_v21 = vld [vmem:[#allocation3 + $0x464] ss:$8 sps:$4 sm:$0xff]  }
  0xbc   : > { %795 = vmatmul.mubr.bf16.vlgmr.msra.gmra.mrb[0].mxu1 %v2898_v56  ;;  %1475 = vmatmul.mubr.bf16.vlgmr.msra.gmra.mrb[0].mxu0 %v1359_v24  ;;  %v2537_v56 = vld [vmem:[#allocation3 + $0x3e4] ss:$8 sps:$4 sm:$0xff]   ;;  %v2568_v24 = vld [vmem:[#allocation3 + $0x474] ss:$8 sps:$4 sm:$0xff]  }
  0xbd   : > { %936 = vmatpush1.bf16.msra.mxu1 %v2493_v22  ;;  %1620 = vmatpush1.bf16.msra.mxu0 %v2496_v23  ;;  %v1676_v22 = vld [vmem:[%s2848_s7 + $0x4] sm:$0x8]  ;;  %v2563_v23 = vld [vmem:[#allocation3 + $0x460] ss:$8 sps:$4 sm:$0xff]  }
  0xbe   : > { %937 = vmatprep.subr.bf16.mxu1 %v2504_v25  ;;  %1621 = vmatprep.subr.bf16.mxu0 %v2507_v26  ;;  %v2566_v25 = vld [vmem:[#allocation3 + $0x470] ss:$8 sps:$4 sm:$0xff]  }
  0xbf   : > { %804 = vmatprep.mubr.bf16.mxu1 %v2691_v0  ;;  %1484 = vmatprep.mubr.bf16.mxu0 %v2691_v0 }
  0xc1   : > { %938 = vmatpush1.bf16.msra.mxu1 %v2502_v27  ;;  %1622 = vmatpush1.bf16.msra.mxu0 %v2505_v28  ;;  %v1697_v27 = vrot.slane %v2924_v47, 3 }
  0xc2   : > { %939 = vmatprep.subr.bf16.mxu1 %v2510_v29  ;;  %1623 = vmatprep.subr.bf16.mxu0 %v2513_v30  ;;  %v2692_v29 = vmov 0.0  }
  0xc3   : > { %319 = vst [vmem:[#allocation2 + $0x20] sm:$0x3f] %v2692_v29  ;;  %320 = vst [vmem:[#allocation2 + $0x28] sm:$0x3f] %v2692_v29 }
  0xc4   : > { %805 = vmatmul.mubr.bf16.gmra.mrb[12].mxu1 %v678_v36  ;;  %1485 = vmatmul.mubr.bf16.gmra.mrb[12].mxu0 %v1358_v20  ;;  %v2526_v36 = vld [vmem:[#allocation3 + $0x1d0] ss:$8 sps:$4 sm:$0xff]  }
  0xc5   : > { %940 = vmatpush1.bf16.msra.mxu1 %v2508_v31  ;;  %1624 = vmatpush1.bf16.msra.mxu0 %v2511_v35  ;;  %v2560_v20 = vld [vmem:[#allocation3 + $0x450] ss:$8 sps:$4 sm:$0xff]  }
  0xc6   : > { %941 = vmatprep.subr.bf16.mxu1 %v2516_v37  ;;  %1625 = vmatprep.subr.bf16.mxu0 %v2519_v41 }
  0xc7   : > { %967 = vmatprep.mubr.bf16.mxu1 %v2691_v0  ;;  %1651 = vmatprep.mubr.bf16.mxu0 %v2691_v0 }
  0xc9   : > { %942 = vmatpush1.bf16.msra.mxu1 %v2514_v42  ;;  %1626 = vmatpush1.bf16.msra.mxu0 %v2517_v44 }
  0xca   : > { %943 = vmatprep.subr.bf16.mxu1 %v2522_v45  ;;  %1627 = vmatprep.subr.bf16.mxu0 %v2525_v46 }
  0xcd   : > { %944 = vmatpush1.bf16.msra.mxu1 %v2520_v34  ;;  %1628 = vmatpush1.bf16.msra.mxu0 %v2523_v48 }
  0xce   : > { %945 = vmatprep.subr.bf16.mxu1 %v2528_v49  ;;  %1629 = vmatprep.subr.bf16.mxu0 %v2531_v50 }
  0xd1   : > { %946 = vmatpush1.bf16.msra.mxu1 %v2526_v36  ;;  %1630 = vmatpush1.bf16.msra.mxu0 %v2529_v54 }
  0xd2   : > { %947 = vmatprep.subr.bf16.mxu1 %v2534_v55  ;;  %1631 = vmatprep.subr.bf16.mxu0 %v2537_v56 }
  0xd5   : > { %948 = vmatpush1.bf16.msra.mxu1 %v2532_v57  ;;  %1632 = vmatpush1.bf16.msra.mxu0 %v2535_v40 }
  0xd6   : > { %949 = vmatprep.subr.bf16.mxu1 %v2540_v61  ;;  %1633 = vmatprep.subr.bf16.mxu0 %v2543_v1 }
  0xd9   : > { %950 = vmatpush1.bf16.msra.mxu1 %v2538_v2  ;;  %1634 = vmatpush1.bf16.msra.mxu0 %v2541_v5 }
  0xda   : > { %2232 = vmatprep.subr.bf16.mxu1 %v2547_v38  ;;  %1781 = vmatprep.subr.bf16.mxu0 %v2547_v38 }
  0xdc   : > { %968 = vmatmul.mubr.bf16.vlgmr.msra.gmra.mrb[0].mxu1 %v852_v9  ;;  %1652 = vmatmul.mubr.bf16.vlgmr.msra.gmra.mrb[0].mxu0 %v1536_v11 }
  0xdd   : > { %2240 = vmatpush1.bf16.msra.mxu1 %v2545_v10  ;;  %1782 = vmatpush1.bf16.msra.mxu0 %v2545_v10 }
  0xde   : > { %2233 = vmatprep.subr.bf16.mxu1 %v2550_v12  ;;  %1783 = vmatprep.subr.bf16.mxu0 %v2550_v12 }
  0xdf   : > { %977 = vmatprep.mubr.bf16.mxu1 %v2691_v0  ;;  %1661 = vmatprep.mubr.bf16.mxu0 %v2691_v0 }
  0xe1   : > { %2241 = vmatpush1.bf16.msra.mxu1 %v2548_v39  ;;  %1784 = vmatpush1.bf16.msra.mxu0 %v2548_v39 }
  0xe2   : > { %2234 = vmatprep.subr.bf16.mxu1 %v2553_v13  ;;  %1785 = vmatprep.subr.bf16.mxu0 %v2553_v13 }
  0xe4   : > { %978 = vmatmul.mubr.bf16.gmra.mrb[16].mxu1 %v851_v4  ;;  %1662 = vmatmul.mubr.bf16.gmra.mrb[16].mxu0 %v1535_v8 }
  0xe5   : > { %2242 = vmatpush1.bf16.msra.mxu1 %v2551_v14  ;;  %1786 = vmatpush1.bf16.msra.mxu0 %v2551_v14 }
  0xe6   : > { %2235 = vmatprep.subr.bf16.mxu1 %v2556_v15  ;;  %1787 = vmatprep.subr.bf16.mxu0 %v2556_v15 }
  0xe7   : > { %1813 = vmatprep.mubr.bf16.mxu0 %v2691_v0  ;;  %1823 = vmatprep.mubr.bf16.mxu1 %v2691_v0  ;;  %v2207_v0 = vcombine.low %v1676_v22, %v2904_v7  ;;  %v325_v22 = vld [vmem:[#allocation2 + $0x20] sm:$0x3f] }
  0xe9   : > { %2243 = vmatpush1.bf16.msra.mxu1 %v2554_v16  ;;  %1788 = vmatpush1.bf16.msra.mxu0 %v2554_v16  ;;  %v1696_v26 = vrot.slane %v2207_v0, 3  ;;  %v1877_v0 = vld [vmem:[#allocation7] sm:$0x3] }
  0xea   : > { %2236 = vmatprep.subr.bf16.mxu1 %v2559_v17  ;;  %1789 = vmatprep.subr.bf16.mxu0 %v2559_v17  ;;  %v1861_v17 = vlaneseq }
  0xeb   : > { %v1698_v28 = vsel %vm849_vm4, %v1696_v26, %v1697_v27  ;;  %v326_v26 = vld [vmem:[#allocation2 + $0x28] sm:$0x3f] }
  0xed   : > { %2244 = vmatpush1.bf16.msra.mxu1 %v2557_v18  ;;  %1790 = vmatpush1.bf16.msra.mxu0 %v2557_v18  ;;  %v1862_v18 = vshrl.u32 %v1861_v17, 7 }
  0xee   : > { %2237 = vmatprep.subr.bf16.mxu1 %v2562_v19  ;;  %1791 = vmatprep.subr.bf16.mxu0 %v2562_v19 }
  0xef   : > { %v1863_v19 = vsub.s32 0, %v1862_v18 }
  0xf1   : > { %2245 = vmatpush1.bf16.msra.mxu1 %v2560_v20  ;;  %1792 = vmatpush1.bf16.msra.mxu0 %v2560_v20  ;;  %v1859_v20 = vld [vmem:[#allocation5] sm:$0x3] }
  0xf2   : > { %2238 = vmatprep.subr.bf16.mxu1 %v2565_v21  ;;  %1793 = vmatprep.subr.bf16.mxu0 %v2565_v21  ;;  %v1867_v21 = vsub.s32 1, %v1862_v18  ;;  %v1864_v29 = vrot.slane %v1859_v20, %v1863_v19 }
  0xf5   : > { %2246 = vmatpush1.bf16.msra.mxu1 %v2563_v23  ;;  %1794 = vmatpush1.bf16.msra.mxu0 %v2563_v23 }
  0xf6   : > { %2239 = vmatprep.subr.bf16.mxu1 %v2568_v24  ;;  %1795 = vmatprep.subr.bf16.mxu0 %v2568_v24 }
  0xf9   : > { %2247 = vmatpush1.bf16.msra.mxu1 %v2566_v25  ;;  %1796 = vmatpush1.bf16.msra.mxu0 %v2566_v25 }
  0xfc   : > { %1824 = vmatmul.mubr.bf16.vlgmr.msra.gmra.mrb[20].mxu1 %v1697_v27  ;;  %1814 = vmatmul.mubr.bf16.vlgmr.msra.gmra.mrb[0].mxu0 %v1698_v28 }
 0x157   : > { %v513_v30 = vpop.f32.mrb[4].mxu1  ;;  %v1156_v7 = vpop.f32.mrb[4].mxu0 }
 0x158   : > { %v515_v31 = vpop.f32.mrb[5].mxu1  ;;  %v1158_v35 = vpop.f32.mrb[5].mxu0 }
 0x159   : > { %v517_v37 = vpop.f32.mrb[6].mxu1  ;;  %v1160_v41 = vpop.f32.mrb[6].mxu0 }
 0x15a   : > { %v518_v42 = vpop.f32.mrb[7].mxu1  ;;  %v1161_v43 = vpop.f32.mrb[7].mxu0  ;;  %v1868_v41 = vrot.slane %v1859_v20, %v1867_v21 }
 0x177   : > { %v649_v44 = vpop.f32.mrb[8].mxu1  ;;  %v1313_v47 = vpop.f32.mrb[8].mxu0 }
 0x178   : > { %v650_v45 = vadd.f32 %v649_v44, %v513_v30  ;;  %v651_v46 = vpop.f32.mrb[9].mxu1  ;;  %v1315_v48 = vpop.f32.mrb[9].mxu0  ;;  %v1882_v44 = vrot.slane %v1877_v0, %v1863_v19 }
 0x179   : > { %v652_v34 = vadd.f32 %v651_v46, %v515_v31  ;;  %v653_v49 = vpop.f32.mrb[10].mxu1  ;;  %v1317_v50 = vpop.f32.mrb[10].mxu0 }
 0x17a   : > { %v654_v36 = vpop.f32.mrb[11].mxu1  ;;  %v1318_v51 = vpop.f32.mrb[11].mxu0 }
 0x197   : > { %v806_v52 = vpop.f32.mrb[12].mxu1  ;;  %v1486_v54 = vpop.f32.mrb[12].mxu0 }
 0x198   : > { %v817_v33 = vadd.f32 %v806_v52, %v650_v45  ;;  %v808_v53 = vpop.f32.mrb[13].mxu1  ;;  %v1488_v32 = vpop.f32.mrb[13].mxu0 }
 0x199   : > { %v818_v55 = vadd.f32 %v808_v53, %v652_v34  ;;  %v810_v56 = vpop.f32.mrb[14].mxu1  ;;  %v1490_v57 = vpop.f32.mrb[14].mxu0  ;;  %v1886_v34 = vrot.slane %v1877_v0, %v1867_v21 }
 0x19a   : > { %v811_v58 = vpop.f32.mrb[15].mxu1  ;;  %v1491_v59 = vpop.f32.mrb[15].mxu0 }
 0x1af   : > { %v969_v60 = vpop.f32.mrb[0].mxu1 }
 0x1b0   : > { %v971_v40 = vpop.f32.mrb[1].mxu1 }
 0x1b1   : > { %v973_v61 = vpop.f32.mrb[2].mxu1 }
 0x1b2   : > { %v975_v62 = vpop.f32.mrb[3].mxu1 }
 0x1b7   : > { %v979_v63 = vpop.f32.mrb[16].mxu1  ;;  %v1663_v3 = vpop.f32.mrb[16].mxu0 }
 0x1b8   : > { %v990_v1 = vadd.f32 %v979_v63, %v817_v33  ;;  %v981_v2 = vpop.f32.mrb[17].mxu1  ;;  %v1665_v5 = vpop.f32.mrb[17].mxu0 }
 0x1b9   : > { %v991_v4 = vadd.f32 %v981_v2, %v818_v55  ;;  %v983_v38 = vpop.f32.mrb[18].mxu1  ;;  %v1667_v8 = vpop.f32.mrb[18].mxu0 }
 0x1ba   : > { %v1167_v6 = vadd.f32 %v1156_v7, %v990_v1  ;;  %v984_v9 = vpop.f32.mrb[19].mxu1  ;;  %v1668_v11 = vpop.f32.mrb[19].mxu0 }
 0x1bb   : > { %v1168_v10 = vadd.f32 %v1158_v35, %v991_v4 }
 0x1bc   : > { %v1324_v12 = vadd.f32 %v1313_v47, %v1167_v6 }
 0x1bd   : > { %v1325_v39 = vadd.f32 %v1315_v48, %v1168_v10 }
 0x1be   : > { %v1497_v13 = vadd.f32 %v1486_v54, %v1324_v12 }
 0x1bf   : > { %v1498_v14 = vadd.f32 %v1488_v32, %v1325_v39 }
 0x1c0   : > { %v1674_v15 = vadd.f32 %v1663_v3, %v1497_v13 }
 0x1c1   : > { %v1675_v16 = vadd.f32 %v1665_v5, %v1498_v14 }
 0x1cf   : > { %v1825_v23 = vpop.f32.mrb[20].mxu1  ;;  %v1815_v24 = vpop.f32.mrb[0].mxu0 }
 0x1d0   : > { %v1836_v25 = vadd.f32 %v1825_v23, %v1674_v15  ;;  %v1827_v27 = vpop.f32.mrb[21].mxu1  ;;  %v2248_v28 = vadd.f32 %v1815_v24, %v969_v60  ;;  %v1817_v30 = vpop.f32.mrb[1].mxu0 }
 0x1d1   : > { %v1837_v7 = vadd.f32 %v1827_v27, %v1675_v16  ;;  %v1829_v31 = vpop.f32.mrb[22].mxu1  ;;  %v2249_v37 = vadd.f32 %v1817_v30, %v971_v40  ;;  %v1819_v42 = vpop.f32.mrb[2].mxu0 }
 0x1d2   : > { %v1842_v35 = vadd.f32 %v1836_v25, %v325_v22  ;;  %v1830_v43 = vpop.f32.mrb[23].mxu1  ;;  %v2250_v46 = vadd.f32 %v1819_v42, %v973_v61  ;;  %v1821_v47 = vpop.f32.mrb[3].mxu0  ;;  %v1871_v49 = vmul.f32 %v2248_v28, %v1864_v29 }
 0x1d3   : > { %v1843_v45 = vadd.f32 %v1837_v7, %v326_v26  ;;  %v2251_v48 = vadd.f32 %v1821_v47, %v975_v62  ;;  %v1872_v50 = vmul.f32 %v2249_v37, %v1868_v41 }
 0x1d4   : > { %1848 = vst [vmem:[#allocation2 + $0x20] sm:$0x3f] %v1842_v35  ;;  %v1889_v36 = vadd.f32 %v1882_v44, %v1871_v49  ;;  %v1873_v51 = vmul.f32 %v2250_v46, %v1864_v29 }
 0x1d5   : > { %1849 = vst [vmem:[#allocation2 + $0x28] sm:$0x3f] %v1843_v45  ;;  %v1890_v52 = vadd.f32 %v1886_v34, %v1872_v50  ;;  %v1874_v33 = vmul.f32 %v2251_v48, %v1868_v41 }
 0x1d6   : > { %v1895_v53 = vmax.f32 %v1889_v36, 0.0  ;;  %v1891_v54 = vadd.f32 %v1882_v44, %v1873_v51 }
 0x1d7   : > { %v1896_v55 = vmax.f32 %v1890_v52, 0.0  ;;  %v1892_v32 = vadd.f32 %v1886_v34, %v1874_v33 }
 0x1d8   : > { %v1897_v57 = vmax.f32 %v1891_v54, 0.0 }
 0x1d9   : > { %v2229_v59 = vpack.c.bf16 %v1896_v55, %v1895_v53  ;;  %v1898_v40 = vmax.f32 %v1892_v32, 0.0 }
 0x1db   : > { %v1857_v56 = vld [vmem:[#allocation2 + $0x20] sm:$0x3f]  ;;  %1921 = vst [vmem:[%s308_s30] sm:$0xff] %v2229_v59  ;;  %v2230_v63 = vpack.c.bf16 %v1898_v40, %v1897_v57 }
 0x1dc   : > { %v1875_v58 = vmul.f32 %v1864_v29, %v1857_v56  ;;  %v1858_v60 = vld [vmem:[#allocation2 + $0x28] sm:$0x3f] }
 0x1dd   : > { %v1876_v61 = vmul.f32 %v1868_v41, %v1858_v60  ;;  %1922 = vst [vmem:[%s308_s30 + $0x8] sm:$0xff] %v2230_v63 }
 0x1de   : > { %v1893_v62 = vadd.f32 %v1882_v44, %v1875_v58 }
 0x1df   : > { %v1894_v1 = vadd.f32 %v1886_v34, %v1876_v61 }
 0x1e0   : > { %v1899_v2 = vmax.f32 %v1893_v62, 0.0 }
 0x1e1   : > { %v1900_v3 = vmax.f32 %v1894_v1, 0.0 }
 0x1e3   : > { %v2231_v4 = vpack.c.bf16 %v1900_v3, %v1899_v2 }
 0x1e5   : > { %1923 = vst [vmem:[%s308_s30 + $0x10] sm:$0x77] %v2231_v4 }
 0x1e6 PF: > { %s16_s17 = sadd.s32 1, %s2684_s17   ;;  %s2971_s15 = smov %s2680_s16 }
 0x1e7   : > { %p13_p8 = scmp.ge.s32.totalorder %s16_s17, 4   ;;  %s2972_s16 = smov %s2974_s23 }
 0x1e9   :  { %15 = sbr.rel (!%p13_p8) target bundleno = 3 (0x3), region = 90 }
 0x1f0   :  { %1954 = vsyncpa [#allocation4], 1 }
 0x1f1   :  { %1956 = vsyncpa [#allocation4 + $0x1], 1 }
 0x1f2   :  { %1957 = vsyncpa [#allocation6], 1 }

// kernel: pspnet_forward.9
= control target key start
LH: loop header
LB: loop body
LE: loop exit
PB: predicated region body
PF: predicated region fallthrough
CT: control target
= control target key end

     0   :  { %s911_s15 = smov 0   ;;  %s913_s16 = smov 0   ;;  %s1015_s0 = inlined_call_operand.vmem [shape: bf16[2,24,256], index: 0, kind: input, shape index: {}]   ;;  %s1016_s1 = inlined_call_operand.vmem [shape: bf16[256,128], index: 1, kind: input, shape index: {}]   ;;  %s1017_s2 = inlined_call_operand.vmem [shape: f32[1,128], index: 2, kind: input, shape index: {}]   ;;  %s1018_s3 = inlined_call_operand.vmem [shape: bf16[64,24], index: 3, kind: input, shape index: {}]   ;;  %s1019_s4 = inlined_call_operand.vmem [shape: bf16[2,64,128], index: 4, kind: output, shape index: {}]  }
   0x1   :  { %s915_s17 = smov 0  }
   0x2 LB: > { %s26_s18 = sadd.s32 1, %s880_s16  ;;  %p690_p0 = scmp.ge.s32.totalorder %s884_s17, 1  ;;  %s884_s17 = sphi %s915_s17, %s14_s17   ;;  %s880_s16 = sphi %s913_s16, %s1021_s16   ;;  %s876_s15 = sphi %s911_s15, %s1020_s15  }
   0x3   : > { %p28_p1 = scmp.ge.s32.totalorder %s26_s18, 2  ;;  %p184_p2 = scmp.lt.s32.totalorder %s884_s17, 3 }
   0x5   : > { %s1023_s18 = smov (%p28_p1, %s26_s18), 0  ;;  %p185_p3 = pnand %p690_p0, %p184_p2 }
   0x6   : > { %v837_v0 = vld [vmem:[%s1016_s1 + $0x40] sm:$0xff] (!%p185_p3)   ;;  %v839_v2 = vld [vmem:[%s1016_s1 + $0x48] sm:$0xff] (!%p185_p3)   ;;  %p220_p4 = scmp.lt.s32.totalorder (!%p185_p3), %s876_s15, 1  ;;  %v841_v4 = vld [vmem:[%s1016_s1 + $0x50] sm:$0xff] (!%p185_p3)   ;;  %vm474_vm0 = vcmask (!%p185_p3), 195584   ;;  %vm487_vm1 = vcmask (!%p185_p3), 1043456  }
   0x7   : > { %188 = sbr.rel (%p185_p3) target bundleno = 496 (0x1f0), region = 36  ;;  %v838_v1 = vld [vmem:[%s1016_s1] sm:$0xff] (!%p185_p3)   ;;  %765 = vmatprep.subr.bf16.mxu0 (!%p185_p3), %v837_v0  ;;  %v840_v3 = vld [vmem:[%s1016_s1 + $0x8] sm:$0xff] (!%p185_p3)   ;;  %v842_v5 = vld [vmem:[%s1016_s1 + $0x10] sm:$0xff] (!%p185_p3)  }
   0x8   : > { %766 = vmatpush3.bf16.msra.mxu0 (!%p185_p3), %v838_v1  ;;  %v843_v6 = vld [vmem:[%s1016_s1 + $0x58] sm:$0xff] (!%p185_p3)   ;;  %v845_v8 = vld [vmem:[%s1016_s1 + $0x60] sm:$0xff] (!%p185_p3)   ;;  %v847_v10 = vld [vmem:[%s1016_s1 + $0x68] sm:$0xff] (!%p185_p3)  }
   0x9   : > { %767 = vmatprep.subr.bf16.mxu0 (!%p185_p3), %v839_v2  ;;  %v844_v7 = vld [vmem:[%s1016_s1 + $0x18] sm:$0xff] (!%p185_p3)   ;;  %v846_v9 = vld [vmem:[%s1016_s1 + $0x20] sm:$0xff] (!%p185_p3)   ;;  %v848_v11 = vld [vmem:[%s1016_s1 + $0x28] sm:$0xff] (!%p185_p3)  }
   0xa   : > { %v849_v13 = vld [vmem:[%s1016_s1 + $0x70] sm:$0xff] (!%p185_p3)   ;;  %v851_v15 = vld [vmem:[%s1016_s1 + $0x78] sm:$0xff] (!%p185_p3)   ;;  %v858_v21 = vld [vmem:[%s1018_s3] sm:$0xff] (!%p185_p3)  }
   0xb   : > { %v850_v14 = vld [vmem:[%s1016_s1 + $0x30] sm:$0xff] (!%p185_p3)   ;;  %v852_v16 = vld [vmem:[%s1016_s1 + $0x38] sm:$0xff] (!%p185_p3)   ;;  %803 = vmatprep.mubr.msk.bf16.mxu1 (!%p185_p3), %vm474_vm0, %v858_v21  ;;  %v694_v26 = vld [vmem:[%s1017_s2] ss:$0 sm:$0xff] (!%p185_p3) }
   0xc   : > { %768 = vmatpush3.bf16.msra.mxu0 (!%p185_p3), %v840_v3  ;;  %v859_v40 = vld [vmem:[%s1018_s3 + $0x8] sm:$0xff] (!%p185_p3)   ;;  %v860_v41 = vld [vmem:[%s1018_s3 + $0x10] sm:$0xff] (!%p185_p3)   ;;  %v861_v42 = vld [vmem:[%s1018_s3 + $0x18] sm:$0xff] (!%p185_p3)  }
   0xd   : > { %769 = vmatprep.subr.bf16.mxu0 (!%p185_p3), %v841_v4 }
   0xe   : > { %s1025_s15 = smov (!%p220_p4, %s876_s15), 1 }
   0xf   : > { %s812_s7 = smul.u32 24, %s1025_s15  ;;  %s733_s21 = sshll.u32 %s1025_s15, 5 }
  0x10   : > { %770 = vmatpush3.bf16.msra.mxu0 %v842_v5  ;;  %s238_s24 = scalar_lea.vmem %s1019_s4, %s733_s21 }
  0x11   : > { %771 = vmatprep.subr.bf16.mxu0 %v843_v6  ;;  %s228_s14 = scalar_lea.vmem %s1015_s0, %s812_s7 }
  0x12   : > { %v855_v12 = vld [vmem:[%s228_s14 + $0x4] ss:$8 sps:$4 sm:$0xff]   ;;  %v243_v17 = vld [vmem:[%s228_s14 + $0x10] sm:$0xff]  ;;  %v853_v18 = vld [vmem:[%s228_s14] ss:$8 sps:$4 sm:$0xff]  }
  0x13   : > { %428 = vmatprep.mubr.bf16.mxu0 %v855_v12  ;;  %v698_v19 = vcombine.high %v243_v17, %v243_v17  ;;  %v697_v20 = vcombine.low %v243_v17, %v243_v17 }
  0x14   : > { %772 = vmatpush3.bf16.msra.mxu0 %v844_v7 }
  0x15   : > { %773 = vmatprep.subr.bf16.mxu0 %v845_v8 }
  0x18   : > { %774 = vmatpush3.bf16.msra.mxu0 %v846_v9 }
  0x19   : > { %775 = vmatprep.subr.bf16.mxu0 %v847_v10 }
  0x1c   : > { %776 = vmatpush3.bf16.msra.mxu0 %v848_v11 }
  0x1d   : > { %777 = vmatprep.subr.bf16.mxu0 %v849_v13 }
  0x20   : > { %778 = vmatpush3.bf16.msra.mxu0 %v850_v14 }
  0x21   : > { %779 = vmatprep.subr.bf16.mxu0 %v851_v15 }
  0x24   : > { %780 = vmatpush3.bf16.msra.mxu0 %v852_v16 }
  0x27   : > { %429 = vmatmul.mubr.bf16.vlgmr.msra.gmra.mrb[0].mxu0 %v853_v18 }
  0x28   : > { %436 = vmatprep.mubr.bf16.mxu0 %v698_v19 }
  0x2f   : > { %437 = vmatmul.mubr.bf16.gmra.mrb[4].mxu0 %v697_v20 }
  0xfa   : > { %v781_v22 = vpop.f32.mrb[0].mxu0 }
  0xfb   : > { %v782_v23 = vpop.f32.mrb[1].mxu0 }
  0xfc   : > { %v783_v24 = vadd.f32 %v782_v23, %v781_v22  ;;  %v784_v25 = vpop.f32.mrb[2].mxu0 }
  0xfd   : > { %v785_v27 = vpop.f32.mrb[3].mxu0 }
  0xfe   : > { %v786_v28 = vadd.f32 %v785_v27, %v784_v25  ;;  %v431_v29 = vadd.f32 %v783_v24, %v694_v26 }
 0x100   : > { %v434_v30 = vadd.f32 %v786_v28, %v694_v26 }
 0x102   : > { %v787_v31 = vpop.f32.mrb[4].mxu0  ;;  %v452_v32 = vpack.c.bf16 %v434_v30, %v431_v29 }
 0x103   : > { %v788_v33 = vpop.f32.mrb[5].mxu0 }
 0x104   : > { %v789_v34 = vadd.f32 %v788_v33, %v787_v31  ;;  %v790_v35 = vpop.f32.mrb[6].mxu0  ;;  %799 = vmatprep.subr.bf16.mxu1 %v452_v32 }
 0x105   : > { %v791_v36 = vpop.f32.mrb[7].mxu0  ;;  %800 = vmatpush3.bf16.msra.mxu1 %v452_v32 }
 0x106   : > { %v439_v37 = vadd.f32 %v789_v34, %v694_v26 }
 0x108   : > { %v453_v38 = vpack.c.bf16 %v439_v37, %v439_v37 }
 0x10a   : > { %811 = vmatprep.subr.msk.bf16.mxu1 %vm487_vm1, %v453_v38  ;;  %v489_v39 = vsel %vm487_vm1, %v453_v38, 0 }
 0x10b   : > { %802 = vmatpush3.bf16.msra.mxu1 %v489_v39 }
 0x10e   : > { %804 = vmatmul.mubr.msk.bf16.vlgmr.msra.gmra.mrb[0].mxu1 %vm474_vm0, %v859_v40 }
 0x10f   : > { %807 = vmatprep.mubr.msk.bf16.mxu1 %vm474_vm0, %v860_v41 }
 0x116   : > { %808 = vmatmul.mubr.msk.bf16.gmra.mrb[4].mxu1 %vm474_vm0, %v861_v42 }
 0x1e1   : > { %v805_v43 = vpop.f32.mrb[0].mxu1 }
 0x1e2   : > { %v525_v44 = vpop.f32.mrb[1].mxu1 }
 0x1e3   : > { %v806_v45 = vpop.f32.mrb[2].mxu1 }
 0x1e4   : > { %v750_v46 = vpack.c.bf16 %v806_v45, %v805_v43  ;;  %v528_v47 = vpop.f32.mrb[3].mxu1 }
 0x1e5   : > { %v745_v48 = vpack.c.bf16 %v528_v47, %v525_v44 }
 0x1e6   : > { %762 = vst [vmem:[%s238_s24 + $0x8] sm:$0xff] %v750_v46  }
 0x1e7   : > { %746 = vst [vmem:[%s238_s24] sm:$0xff] %v745_v48  }
 0x1e9   : > { %v809_v49 = vpop.f32.mrb[4].mxu1 }
 0x1ea   : > { %v541_v50 = vpop.f32.mrb[5].mxu1 }
 0x1eb   : > { %v810_v51 = vpop.f32.mrb[6].mxu1 }
 0x1ec   : > { %v760_v52 = vpack.c.bf16 %v810_v51, %v809_v49  ;;  %v544_v53 = vpop.f32.mrb[7].mxu1 }
 0x1ed   : > { %v755_v54 = vpack.c.bf16 %v544_v53, %v541_v50 }
 0x1ee   : > { %764 = vst [vmem:[%s238_s24 + $0x18] sm:$0xff] %v760_v52  }
 0x1ef   : > { %763 = vst [vmem:[%s238_s24 + $0x10] sm:$0xff] %v755_v54  }
 0x1f0 PF: > { %s14_s17 = sadd.s32 1, %s884_s17   ;;  %s1020_s15 = smov %s880_s16 }
 0x1f1   : > { %p11_p5 = scmp.ge.s32.totalorder %s14_s17, 4   ;;  %s1021_s16 = smov %s1023_s18 }
 0x1f3   :  { %13 = sbr.rel (!%p11_p5) target bundleno = 2 (0x2), region = 66 }

// kernel: pspnet_forward.10
= control target key start
LH: loop header
LB: loop body
LE: loop exit
PB: predicated region body
PF: predicated region fallthrough
CT: control target
= control target key end

     0   :  { %s961_s9 = smov 0   ;;  %s963_s10 = smov 0   ;;  %s1060_s0 = inlined_call_operand.vmem [shape: bf16[2,4,2048], index: 0, kind: input, shape index: {}]   ;;  %s1061_s1 = inlined_call_operand.vmem [shape: bf16[16,4], index: 1, kind: input, shape index: {}]   ;;  %s1062_s2 = inlined_call_operand.vmem [shape: bf16[2,16,2048], index: 2, kind: output, shape index: {}]  }
   0x1   :  { %s965_s11 = smov 0   ;;  %s967_s12 = smov 0  }
   0x2   :  { %s969_s13 = smov 0  }
   0x3 LB: > { %s21_s14 = sadd.s32 1, %s934_s11  ;;  %s24_s15 = sadd.s32 1, %s938_s12  ;;  %s942_s13 = sphi %s969_s13, %s12_s13   ;;  %s938_s12 = sphi %s967_s12, %s1066_s12   ;;  %s934_s11 = sphi %s965_s11, %s1065_s11   ;;  %s930_s10 = sphi %s963_s10, %s1064_s10   ;;  %s926_s9 = sphi %s961_s9, %s1063_s9  }
   0x4   : > { %p22_p0 = scmp.ge.s32.totalorder %s21_s14, 2  ;;  %p816_p1 = scmp.ge.s32.totalorder %s942_s13, 1 }
   0x5   : > { %p135_p2 = scmp.lt.s32.totalorder %s942_s13, 5 }
   0x6   : > { %s1068_s14 = smov (%p22_p0, %s21_s14), 0  ;;  %s1070_s15 = smov (!%p22_p0, %s24_s15), %s938_s12 }
   0x7   : > { %p136_p3 = pnand %p816_p1, %p135_p2  ;;  %p26_p4 = scmp.ge.s32.totalorder %s1070_s15, 2 }
   0x8   : > { %p165_p5 = scmp.lt.s32.totalorder (!%p136_p3), %s930_s10, 1  ;;  %p170_p6 = scmp.lt.s32.totalorder (!%p136_p3), %s926_s9, 1  ;;  %v197_v0 = vlaneseq (!%p136_p3)  ;;  %v944_v1 = vmov (!%p136_p3), 1983009808   ;;  %v945_v3 = vmov (!%p136_p3), 0   ;;  %vm265_vm0 = vcmask (!%p136_p3), 1041408  }
   0x9   : > { %s1072_s15 = smov (%p26_p4, %s1070_s15), 0  ;;  %139 = sbr.rel (%p136_p3) target bundleno = 270 (0x10e), region = 28 }
   0xa   : > { %v195_v2 = vunpack.c.l.s4 (!%p136_p3), %v944_v1  ;;  %346 = vmatprep.mubr.bf16.mxu0 (!%p136_p3), %v945_v3  ;;  %387 = vmatprep.mubr.bf16.mxu1 (!%p136_p3), %v945_v3  ;;  %v198_v4 = vshrl.u32 (!%p136_p3), %v197_v0, 7  ;;  %vm261_vm1 = vcmask (!%p136_p3), 31744  }
   0xc   : > { %v196_v5 = vunpack.c.0.s8 (!%p136_p3), %v195_v2 }
   0xe   : > { %v199_v6 = vsub.s32 (!%p136_p3), %v196_v5, %v198_v4 }
  0x10   : > { %s1074_s10 = smov (!%p165_p5, %s930_s10), 1  ;;  %s1076_s9 = smov (!%p170_p6, %s926_s9), 1 }
  0x11   : > { %s849_s16 = sshll.u32 %s1074_s10, 5  ;;  %s819_s20 = sshll.u32 %s1076_s9, 2 }
  0x12   : > { %s169_s19 = scalar_lea.vmem %s1060_s0, %s849_s16  ;;  %s820_s21 = sshll.u32 %s1076_s9, 4 }
  0x13   : > { %v185_v7 = vld [vmem:[%s169_s19] sm:$0xff]  ;;  %v186_v8 = vld [vmem:[%s169_s19 + $0x8] sm:$0xff]  ;;  %v187_v9 = vld [vmem:[%s169_s19 + $0x10] sm:$0xff]  ;;  %s996_s22 = sadd.s32 %s849_s16, %s820_s21  ;;  %s173_s25 = scalar_lea.vmem %s1061_s1, %s819_s20 }
  0x14   : > { %v200_v10 = vrot.slane %v185_v7, %v199_v6  ;;  %v193_v11 = vcombine.high %v185_v7, %v185_v7  ;;  %v217_v12 = vrot.slane %v186_v8, %v199_v6  ;;  %v210_v13 = vcombine.high %v186_v8, %v186_v8  ;;  %v184_v24 = vld [vmem:[%s173_s25] sm:$0xf]  ;;  %v188_v26 = vld [vmem:[%s169_s19 + $0x18] sm:$0xff]  ;;  %s822_s26 = sshll.u32 %s996_s22, 2 }
  0x15   : > { %v234_v14 = vrot.slane %v187_v9, %v199_v6  ;;  %v227_v15 = vcombine.high %v187_v9, %v187_v9  ;;  %v244_v31 = vcombine.high %v188_v26, %v188_v26  ;;  %v251_v32 = vrot.slane %v188_v26, %v199_v6  ;;  %s1035_s29 = scalar_lea.vmem %s1062_s2, %s822_s26 }
  0x16   : > { %v208_v16 = vcombine.high %v200_v10, %v200_v10  ;;  %v267_v17 = vsel %vm265_vm0, %v200_v10, 0  ;;  %v207_v18 = vrot.slane %v193_v11, %v199_v6  ;;  %v225_v19 = vcombine.high %v217_v12, %v217_v12 }
  0x17   : > { %v224_v20 = vrot.slane %v210_v13, %v199_v6  ;;  %v241_v23 = vrot.slane %v227_v15, %v199_v6  ;;  %v279_v27 = vsel %vm265_vm0, %v217_v12, 0  ;;  %v242_v28 = vcombine.high %v234_v14, %v234_v14 }
  0x18   : > { %823 = vmatprep.subr.msk.bf16.mxu0 %vm265_vm0, %v208_v16  ;;  %v209_v21 = vcombine.high %v207_v18, %v207_v18  ;;  %v273_v22 = vsel %vm265_vm0, %v207_v18, 0  ;;  %v258_v33 = vrot.slane %v244_v31, %v199_v6  ;;  %v291_v34 = vsel %vm265_vm0, %v234_v14, 0 }
  0x19   : > { %315 = vmatpush1.bf16.msra.mxu0 %v267_v17  ;;  %v226_v25 = vcombine.high %v224_v20, %v224_v20  ;;  %v285_v29 = vsel %vm265_vm0, %v224_v20, 0  ;;  %v243_v30 = vcombine.high %v241_v23, %v241_v23  ;;  %v259_v35 = vcombine.high %v251_v32, %v251_v32 }
  0x1a   : > { %825 = vmatprep.subr.msk.bf16.mxu1 %vm265_vm0, %v209_v21  ;;  %827 = vmatprep.subr.msk.bf16.mxu0 %vm265_vm0, %v225_v19  ;;  %v297_v36 = vsel %vm265_vm0, %v241_v23, 0  ;;  %v260_v37 = vcombine.high %v258_v33, %v258_v33  ;;  %v303_v38 = vsel %vm265_vm0, %v251_v32, 0  ;;  %v309_v39 = vsel %vm265_vm0, %v258_v33, 0 }
  0x1b   : > { %356 = vmatpush1.bf16.msra.mxu1 %v273_v22 }
  0x1c   : > { %824 = vmatmul.mubr.msk.bf16.vlgmr.msra.gmra.mrb[0].mxu0 %vm261_vm1, %v184_v24  ;;  %829 = vmatprep.subr.msk.bf16.mxu1 %vm265_vm0, %v226_v25 }
  0x1d   : > { %397 = vmatpush1.bf16.msra.mxu0 %v279_v27  ;;  %428 = vmatprep.mubr.bf16.mxu0 %v945_v3 }
  0x1e   : > { %826 = vmatmul.mubr.msk.bf16.vlgmr.msra.gmra.mrb[0].mxu1 %vm261_vm1, %v184_v24  ;;  %831 = vmatprep.subr.msk.bf16.mxu0 %vm265_vm0, %v242_v28 }
  0x1f   : > { %438 = vmatpush1.bf16.msra.mxu1 %v285_v29  ;;  %469 = vmatprep.mubr.bf16.mxu1 %v945_v3 }
  0x20   : > { %833 = vmatprep.subr.msk.bf16.mxu1 %vm265_vm0, %v243_v30 }
  0x24   : > { %828 = vmatmul.mubr.msk.bf16.vlgmr.msra.gmra.mrb[4].mxu0 %vm261_vm1, %v184_v24 }
  0x25   : > { %479 = vmatpush1.bf16.msra.mxu0 %v291_v34  ;;  %510 = vmatprep.mubr.bf16.mxu0 %v945_v3 }
  0x26   : > { %830 = vmatmul.mubr.msk.bf16.vlgmr.msra.gmra.mrb[4].mxu1 %vm261_vm1, %v184_v24  ;;  %835 = vmatprep.subr.msk.bf16.mxu0 %vm265_vm0, %v259_v35 }
  0x27   : > { %520 = vmatpush1.bf16.msra.mxu1 %v297_v36  ;;  %551 = vmatprep.mubr.bf16.mxu1 %v945_v3 }
  0x28   : > { %837 = vmatprep.subr.msk.bf16.mxu1 %vm265_vm0, %v260_v37 }
  0x2c   : > { %832 = vmatmul.mubr.msk.bf16.vlgmr.msra.gmra.mrb[8].mxu0 %vm261_vm1, %v184_v24 }
  0x2d   : > { %561 = vmatpush1.bf16.msra.mxu0 %v303_v38  ;;  %592 = vmatprep.mubr.bf16.mxu0 %v945_v3 }
  0x2e   : > { %834 = vmatmul.mubr.msk.bf16.vlgmr.msra.gmra.mrb[8].mxu1 %vm261_vm1, %v184_v24 }
  0x2f   : > { %602 = vmatpush1.bf16.msra.mxu1 %v309_v39  ;;  %633 = vmatprep.mubr.bf16.mxu1 %v945_v3 }
  0x34   : > { %836 = vmatmul.mubr.msk.bf16.vlgmr.msra.gmra.mrb[12].mxu0 %vm261_vm1, %v184_v24 }
  0x36   : > { %838 = vmatmul.mubr.msk.bf16.vlgmr.msra.gmra.mrb[12].mxu1 %vm261_vm1, %v184_v24 }
  0xef   : > { %v348_v40 = vpop.f32.mrb[0].mxu0 }
  0xf0   : > { %v350_v41 = vpop.f32.mrb[1].mxu0 }
  0xf1   : > { %v850_v42 = vpack.c.bf16 %v350_v41, %v348_v40  ;;  %v352_v43 = vpop.f32.mrb[2].mxu0  ;;  %v389_v44 = vpop.f32.mrb[0].mxu1 }
  0xf2   : > { %v353_v45 = vpop.f32.mrb[3].mxu0  ;;  %v391_v46 = vpop.f32.mrb[1].mxu1 }
  0xf3   : > { %706 = vst [vmem:[%s1035_s29] sm:$0xff] %v850_v42  ;;  %v851_v47 = vpack.c.bf16 %v391_v46, %v389_v44  ;;  %v393_v48 = vpop.f32.mrb[2].mxu1 }
  0xf4   : > { %v394_v49 = vpop.f32.mrb[3].mxu1 }
  0xf5   : > { %707 = vst [vmem:[%s1035_s29 + $0x8] sm:$0xff] %v851_v47 }
  0xf7   : > { %v430_v50 = vpop.f32.mrb[4].mxu0 }
  0xf8   : > { %v432_v51 = vpop.f32.mrb[5].mxu0 }
  0xf9   : > { %v852_v52 = vpack.c.bf16 %v432_v51, %v430_v50  ;;  %v434_v53 = vpop.f32.mrb[6].mxu0  ;;  %v471_v54 = vpop.f32.mrb[4].mxu1 }
  0xfa   : > { %v435_v55 = vpop.f32.mrb[7].mxu0  ;;  %v473_v56 = vpop.f32.mrb[5].mxu1 }
  0xfb   : > { %708 = vst [vmem:[%s1035_s29 + $0x10] sm:$0xff] %v852_v52  ;;  %v853_v57 = vpack.c.bf16 %v473_v56, %v471_v54  ;;  %v475_v58 = vpop.f32.mrb[6].mxu1 }
  0xfc   : > { %v476_v59 = vpop.f32.mrb[7].mxu1 }
  0xfd   : > { %709 = vst [vmem:[%s1035_s29 + $0x18] sm:$0xff] %v853_v57 }
  0xff   : > { %v512_v60 = vpop.f32.mrb[8].mxu0 }
 0x100   : > { %v514_v61 = vpop.f32.mrb[9].mxu0 }
 0x101   : > { %v854_v62 = vpack.c.bf16 %v514_v61, %v512_v60  ;;  %v516_v63 = vpop.f32.mrb[10].mxu0  ;;  %v553_v0 = vpop.f32.mrb[8].mxu1 }
 0x102   : > { %v517_v1 = vpop.f32.mrb[11].mxu0  ;;  %v555_v2 = vpop.f32.mrb[9].mxu1 }
 0x103   : > { %710 = vst [vmem:[%s1035_s29 + $0x20] sm:$0xff] %v854_v62  ;;  %v855_v3 = vpack.c.bf16 %v555_v2, %v553_v0  ;;  %v557_v4 = vpop.f32.mrb[10].mxu1 }
 0x104   : > { %v558_v5 = vpop.f32.mrb[11].mxu1 }
 0x105   : > { %711 = vst [vmem:[%s1035_s29 + $0x28] sm:$0xff] %v855_v3 }
 0x107   : > { %v594_v6 = vpop.f32.mrb[12].mxu0 }
 0x108   : > { %v596_v7 = vpop.f32.mrb[13].mxu0 }
 0x109   : > { %v856_v8 = vpack.c.bf16 %v596_v7, %v594_v6  ;;  %v598_v9 = vpop.f32.mrb[14].mxu0  ;;  %v635_v10 = vpop.f32.mrb[12].mxu1 }
 0x10a   : > { %v599_v11 = vpop.f32.mrb[15].mxu0  ;;  %v637_v12 = vpop.f32.mrb[13].mxu1 }
 0x10b   : > { %712 = vst [vmem:[%s1035_s29 + $0x30] sm:$0xff] %v856_v8  ;;  %v857_v13 = vpack.c.bf16 %v637_v12, %v635_v10  ;;  %v639_v14 = vpop.f32.mrb[14].mxu1 }
 0x10c   : > { %v640_v15 = vpop.f32.mrb[15].mxu1 }
 0x10d   : > { %713 = vst [vmem:[%s1035_s29 + $0x38] sm:$0xff] %v857_v13 }
 0x10e PF: > { %s12_s13 = sadd.s32 1, %s942_s13   ;;  %s1063_s9 = smov %s934_s11 }
 0x10f   : > { %p9_p7 = scmp.ge.s32.totalorder %s12_s13, 6   ;;  %s1064_s10 = smov %s938_s12 }
 0x110   : > { %s1065_s11 = smov %s1068_s14  ;;  %s1066_s12 = smov %s1072_s15 }
 0x111   :  { %11 = sbr.rel (!%p9_p7) target bundleno = 3 (0x3), region = 61 }

// kernel: pspnet_forward.8
= control target key start
LH: loop header
LB: loop body
LE: loop exit
PB: predicated region body
PF: predicated region fallthrough
CT: control target
= control target key end

     0   :  { %s5648_s0 = inlined_call_operand.vmem [shape: bf16[2,36,128], index: 0, kind: input, shape index: {}]   ;;  %s5649_s1 = inlined_call_operand.vmem [shape: bf16[2,4,36,128], index: 1, kind: input, shape index: {}]   ;;  %s5650_s2 = inlined_call_operand.hbm [shape: bf16[5,1152,256], index: 2, kind: input, shape index: {}]   ;;  %s5651_s3 = inlined_call_operand.hbm [shape: f32[1,256], index: 3, kind: input, shape index: {}]   ;;  %s5652_s4 = inlined_call_operand.hbm [shape: f32[1,256], index: 4, kind: input, shape index: {}]   ;;  %s5653_s5 = inlined_call_operand.vmem [shape: bf16[2,22,256], index: 5, kind: output, shape index: {}]  }
   0x1   :  { %5659 = sst [smem:[#allocation10_spill]] %s5650_s2 }
   0x2   :  { %10 = vsyncpa [#allocation4], 0 }
   0x3   :  { %12 = vsyncpa [#allocation4 + $0x1], 0 }
   0x4   :  { %13 = vsyncpa [#allocation6], 0  ;;  %s4943_s18 = smov 0   ;;  %s4945_s19 = smov 0  }
   0x5   :  { %s4947_s20 = smov 0   ;;  %s4949_s21 = smov 0  }
   0x6   :  { %s4951_s22 = smov 0   ;;  %s4953_s23 = smov 0  }
   0x7   :  { %s4955_s24 = smov 0   ;;  %s4957_s25 = smov 0  }
   0x8 LB: > { %s3738_s26 = sadd.s32 4294967295, %s4903_s25   ;;  %s113_s27 = sadd.s32 1, %s4883_s20  ;;  %s4903_s25 = sphi %s4957_s25, %s19_s25   ;;  %s4899_s24 = sphi %s4955_s24, %s5676_s24   ;;  %s4895_s23 = sphi %s4953_s23, %s5675_s23   ;;  %s4891_s22 = sphi %s4951_s22, %s5674_s22   ;;  %s4887_s21 = sphi %s4949_s21, %s5673_s21   ;;  %s4883_s20 = sphi %s4947_s20, %s5672_s20   ;;  %s4879_s19 = sphi %s4945_s19, %s5671_s19   ;;  %s4875_s18 = sphi %s4943_s18, %s5670_s18  }
   0x9   : > { %p120_p0 = scmp.ne.s32.totalorder %s4883_s20, %s4879_s19  ;;  %p121_p1 = scmp.eq.s32.totalorder %s4903_s25, 0 }
   0xa   : > { %p126_p2 = scmp.ne.s32.totalorder %s4879_s19, %s4875_s18  ;;  %p4987_p3 = scmp.eq.s32.totalorder %s3738_s26, 0 }
   0xb   : > { %p122_p4 = por %p121_p1, %p120_p0  ;;  %p3742_p5 = scmp.ge.s32.totalorder %s4903_s25, 1 }
   0xc   : > { %s5660_s28 = scalar_select %p4987_p3, 1, 0 }
   0xd   : > { %p4994_p6 = por %p4987_p3, %p126_p2  ;;  %p217_p7 = scmp.lt.s32.totalorder %s4903_s25, 11 }
   0xe   : > { %s4905_s6 = smov [#allocation5]   ;;  %p4214_p10 = scmp.lt.s32.totalorder %s4903_s25, 10 }
   0xf   : > { %s5661_s29 = scalar_select %p4994_p6, 1, 0 }
  0x10   : > { %p4999_p8 = pnand %p3742_p5, %p217_p7  ;;  %s233_s7 = sshll.u32 %s4905_s6, 4  ;;  %s234_s7 = int_to_ptr.vmem [resolvable:$true] %s233_s7 }
  0x11   : > { %p5012_p12 = pnand %p4214_p10, %p122_p4  ;;  %s4906_s10 = smov [#allocation7]  }
  0x12   : > { %s5662_s30 = scalar_select %p4999_p8, 1, 0 }
  0x13   : > { %p4201_p9 = pneg %p4999_p8  ;;  %s247_s11 = sshll.u32 %s4906_s10, 4  ;;  %s248_s11 = int_to_ptr.vmem [resolvable:$true] %s247_s11 }
  0x14   : > { %s5664_s9 = scalar_select %p5012_p12, 1, 0 }
  0x15   : > { %p5008_p11 = pnand %p4201_p9, %p4987_p3  ;;  %s4747_s14 = scalar_lea.hbm %s5651_s3, 32 }
  0x16   : > { %p4748_p13 = scmp.ne.s32.totalorder %s5651_s3, %s4747_s14  ;;  %p4754_p4 = scmp.lt.u32.totalorder %s4747_s14, %s5651_s3 }
  0x17   : > { %p4749_p0 = pneg %p5008_p11 }
  0x19   : > { %p4750_p1 = pnand %p4749_p0, %p4748_p13 }
  0x1b   : > { %p4751_p2 = pneg %p4750_p1 }
  0x1d   : > { %p4756_p5 = pnand %p4754_p4, %p4751_p2 }
  0x1f   : > { %4759 = shalt.err (!%p4756_p5)
}
  0x20   : > { %s4760_s26 = scalar_lea.vmem %s234_s7, 32  ;;  %p4768_p3 = scmp.lt.s32.totalorder %s234_s7, %s234_s7 }
  0x21   : > { %p4761_p7 = scmp.ne.s32.totalorder %s234_s7, %s4760_s26  ;;  %p4769_p6 = scmp.lt.s32.totalorder %s4760_s26, %s4760_s26 }
  0x23   : > { %p4763_p9 = pnand %p4761_p7, %p4749_p0  ;;  %p4770_p8 = por %p4769_p6, %p4768_p3 }
  0x25   : > { %p4764_p10 = pneg %p4763_p9 }
  0x27   : > { %p4771_p12 = pnand %p4770_p8, %p4764_p10 }
  0x29   : > { %4774 = shalt.err (!%p4771_p12)
}
  0x2a   : > { %4204 = dma.hbm_to_vmem [thread:$0]  (!%p5008_p11), %s5651_s3, 32, %s234_s7, [#allocation6]  }
  0x2b   : > { %s4775_s14 = scalar_lea.hbm %s5652_s4, 32 }
  0x2c   : > { %p4776_p13 = scmp.ne.s32.totalorder %s5652_s4, %s4775_s14  ;;  %p4782_p8 = scmp.lt.u32.totalorder %s4775_s14, %s5652_s4 }
  0x2e   : > { %p4778_p3 = pnand %p4776_p13, %p4749_p0 }
  0x30   : > { %p4779_p6 = pneg %p4778_p3 }
  0x32   : > { %p4784_p12 = pnand %p4782_p8, %p4779_p6 }
  0x34   : > { %4787 = shalt.err (!%p4784_p12)
}
  0x35   : > { %s4788_s7 = scalar_lea.vmem %s248_s11, 32  ;;  %p4796_p5 = scmp.lt.s32.totalorder %s248_s11, %s248_s11 }
  0x36   : > { %p4789_p1 = scmp.ne.s32.totalorder %s248_s11, %s4788_s7  ;;  %p4797_p7 = scmp.lt.s32.totalorder %s4788_s7, %s4788_s7 }
  0x38   : > { %p4791_p2 = pnand %p4789_p1, %p4749_p0  ;;  %p4798_p9 = por %p4797_p7, %p4796_p5 }
  0x3a   : > { %p4792_p4 = pneg %p4791_p2 }
  0x3c   : > { %p4799_p10 = pnand %p4798_p9, %p4792_p4 }
  0x3e   : > { %4802 = shalt.err (!%p4799_p10)
}
  0x3f   : > { %4207 = dma.hbm_to_vmem [thread:$0]  (!%p5008_p11), %s5652_s4, 32, %s248_s11, [#allocation6]  }
  0x40   : > { %s38_s10 = sadd.s32 1, %s4899_s24  ;;  %s31_s12 = sadd.s32 1, %s4895_s23 }
  0x41   : > { %s291_s13 = sand.u32 1, %s4883_s20   ;;  %p32_p0 = scmp.ge.s32.totalorder %s31_s12, 5 }
  0x42   : > { %s4184_s14 = smul.u32 1152, %s291_s13  ;;  %s5665_s2 = sld [smem:[#allocation10_spill]] }
  0x43   : > { %s5678_s12 = smov (%p32_p0, %s31_s12), 0  ;;  %s5680_s10 = smov (!%p32_p0, %s38_s10), %s4899_s24 }
  0x44   : > { %s108_s8 = ssub.s32 %s4895_s23, %s5678_s12  ;;  %p40_p13 = scmp.ge.s32.totalorder %s5680_s10, 2 }
  0x45   : > { %p111_p3 = scmp.eq.s32.totalorder %s108_s8, 0  ;;  %s4185_s15 = smul.u32 18432, %s4895_s23 }
  0x46   : > { %s295_s16 = scalar_lea.vmem [#allocation3], %s4184_s14  ;;  %s5682_s10 = smov (%p40_p13, %s5680_s10), 0 }
  0x47   : > { %s304_s17 = sshll.u32 %s295_s16, 4  ;;  %s5081_s6 = scalar_lea.sflag [#allocation4], %s291_s13  ;;  %s5079_s17 = int_to_ptr.vmem [resolvable:$true] %s304_s17 }
  0x48   : > { %s5072_s11 = scalar_select %p111_p3, %s4883_s20, %s113_s27  }
  0x49   : > { %s5077_s26 = scalar_lea.hbm %s5665_s2, %s4185_s15  ;;  %p5666_p6 = scmp.ne.s32.totalorder %s5664_s9, 0 }
  0x4a   : > { %s4803_s14 = scalar_lea.hbm %s5077_s26, 18432  ;;  %s4808_s15 = scalar_lea.hbm %s5665_s2, 92160 }
  0x4b   : > { %p4804_p11 = scmp.ne.s32.totalorder %s5077_s26, %s4803_s14  ;;  %p4805_p8 = pneg %p5666_p6 }
  0x4c   : > { %p4809_p2 = scmp.lt.u32.totalorder %s5077_s26, %s5665_s2  ;;  %p4810_p4 = scmp.lt.u32.totalorder %s4808_s15, %s4803_s14 }
  0x4d   : > { %p4806_p12 = pnand %p4805_p8, %p4804_p11  ;;  %p4812_p7 = scmp.lt.u32.totalorder %s4803_s14, %s5077_s26 }
  0x4e   : > { %p4811_p5 = por %p4810_p4, %p4809_p2 }
  0x4f   : > { %p4807_p1 = pneg %p4806_p12 }
  0x50   : > { %p4813_p9 = por %p4812_p7, %p4811_p5 }
  0x52   : > { %p4814_p10 = pnand %p4813_p9, %p4807_p1 }
  0x54   : > { %4817 = shalt.err (!%p4814_p10)
}
  0x55   : > { %s4818_s13 = scalar_lea.vmem %s5079_s17, 18432  ;;  %s4907_s7 = smov [#allocation3]  }
  0x56   : > { %p4819_p0 = scmp.ne.s32.totalorder %s5079_s17, %s4818_s13  ;;  %s4823_s27 = sshll.u32 %s4907_s7, 4  ;;  %s4824_s27 = int_to_ptr.vmem [resolvable:$false] %s4823_s27 }
  0x57   : > { %s4825_s8 = scalar_lea.vmem %s4824_s27, 36864  ;;  %p4826_p11 = scmp.lt.s32.totalorder %s5079_s17, %s4824_s27 }
  0x58   : > { %p4821_p13 = pnand %p4819_p0, %p4805_p8  ;;  %p4827_p12 = scmp.lt.s32.totalorder %s4825_s8, %s4818_s13 }
  0x5a   : > { %p4822_p3 = pneg %p4821_p13  ;;  %p4828_p2 = por %p4827_p12, %p4826_p11 }
  0x5c   : > { %p4829_p4 = pnand %p4828_p2, %p4822_p3 }
  0x5e   : > { %4832 = shalt.err (!%p4829_p4)
}
  0x5f   : > { %s4908_s14 = smov 128   ;;  %s4909_s15 = smov 8  }
  0x60   : > { %4211 = dma.hbm_to_vmem [thread:$0]  (!%p5666_p6), %s5077_s26, 18432, %s5079_s17, %s5081_s6, %s4908_s14, %s4908_s14, %s4909_s15  }
  0x61   : > { %p5667_p8 = scmp.ne.s32.totalorder %s5662_s30, 0 }
  0x62   : > { %s318_s16 = sand.u32 (!%p5667_p8), 1, %s4879_s19   ;;  %p5668_p1 = scmp.ne.s32.totalorder (!%p5667_p8), %s5661_s29, 0 }
  0x63   : > { %316 = sbr.rel (%p5667_p8) target bundleno = 909 (0x38d), region = 40  ;;  %s319_s7 = scalar_lea.sflag (!%p5667_p8), [#allocation4], %s318_s16 }
  0x64   : > { %s4186_s18 = smul.u32 (!%p5667_p8), 1152, %s318_s16 }
  0x66   : > { %s5112_s13 = scalar_lea.vmem (!%p5667_p8), [#allocation3], %s4186_s18 }
  0x6a   : > { %4866 = dma.done.wait (%p5668_p1), %s319_s7, 18432  }
  0x6b   : > { %4868 = vsyncadd (%p5668_p1), %s319_s7, 4294948864  ;;  %p5669_p5 = scmp.ne.s32.totalorder %s5660_s28, 0 }
  0x6d   : > { %4870 = dma.done.wait (%p5669_p5), [#allocation6], 64  }
  0x6e   : > { %4872 = vsyncadd (%p5669_p5), [#allocation6], 4294967232  ;;  %p386_p6 = scmp.lt.s32.totalorder %s4891_s22, 1  ;;  %p397_p7 = scmp.lt.s32.totalorder %s4887_s21, 3 }
  0x6f   : > { %p3762_p9 = scmp.ne.s32.totalorder %s4887_s21, 0 }
  0x70   : > { %s5684_s22 = smov (!%p386_p6, %s4891_s22), 1  ;;  %v4910_v0 = vmov (!%p3762_p9), 0.0  }
  0x71   : > { %s398_s30 = scalar_select %p397_p7, %s4887_s21, 3 }
  0x72   : > { %s4217_s9 = smul.u32 20, %s5684_s22  ;;  %428 = vst [vmem:[#allocation2] sm:$0xff] (!%p3762_p9), %v4910_v0  ;;  %429 = vst [vmem:[#allocation2 + $0x8] sm:$0xff] (!%p3762_p9), %v4910_v0 }
  0x73   : > { %s5686_s30 = smov (!%p397_p7, %s398_s30), 3  ;;  %s4190_s6 = smul.u32 24, %s5684_s22  ;;  %430 = vst [vmem:[#allocation2 + $0x10] sm:$0xff] (!%p3762_p9), %v4910_v0  ;;  %431 = vst [vmem:[#allocation2 + $0x18] sm:$0xff] (!%p3762_p9), %v4910_v0 }
  0x74   : > { %s5129_s29 = scalar_lea.vmem %s5648_s0, %s4217_s9  ;;  %s4188_s27 = smul.u32 5, %s5686_s30  ;;  %432 = vst [vmem:[#allocation2 + $0x20] sm:$0x3f] (!%p3762_p9), %v4910_v0  ;;  %433 = vst [vmem:[#allocation2 + $0x28] sm:$0x3f] (!%p3762_p9), %v4910_v0 }
  0x75   : > { %s5134_s14 = scalar_lea.vmem %s5653_s5, %s4190_s6  ;;  %427 = sbr.rel (%p3762_p9) target bundleno = 124 (0x7c), region = 56 }
  0x76   : > { %s405_s15 = sadd.s32 %s4217_s9, %s4188_s27 }
  0x77   : > { %s3760_s16 = sshll.u32 %s405_s15, 2 }
  0x78   : > { %s5139_s2 = scalar_lea.vmem %s5649_s1, %s3760_s16 }
  0x7c PF: > { %p3763_p10 = scmp.ge.s32.totalorder %s4887_s21, 4 }
  0x7d   : > { %v4289_v1 = vld [vmem:[%s5112_s13 + $0x84] ss:$8 sps:$4 sm:$0xff] (!%p3763_p10)   ;;  %v4911_v3 = vmov (!%p3763_p10), 0   ;;  %v4293_v4 = vld [vmem:[%s5112_s13 + $0x80] ss:$8 sps:$4 sm:$0xff] (!%p3763_p10)   ;;  %vm793_vm2 = vcmask (!%p3763_p10), 1046528  }
  0x7e   : > { %437 = sbr.rel (%p3763_p10) target bundleno = 507 (0x1fb), region = 60  ;;  %v4291_v2 = vld [vmem:[%s5112_s13 + $0x204] ss:$8 sps:$4 sm:$0xff] (!%p3763_p10)   ;;  %618 = vmatprep.mubr.bf16.mxu1 (!%p3763_p10), %v4911_v3  ;;  %1261 = vmatprep.mubr.bf16.mxu0 (!%p3763_p10), %v4911_v3  ;;  %v4294_v5 = vld [vmem:[%s5112_s13 + $0x200] ss:$8 sps:$4 sm:$0xff] (!%p3763_p10)   ;;  %vm1473_vm3 = vcmask (!%p3763_p10), 1045504  }
  0x7f   : > { %586 = vmatprep.subr.bf16.mxu1 (!%p3763_p10), %v4289_v1  ;;  %1229 = vmatprep.subr.bf16.mxu0 (!%p3763_p10), %v4291_v2  ;;  %v4295_v6 = vld [vmem:[%s5112_s13 + $0x94] ss:$8 sps:$4 sm:$0xff] (!%p3763_p10)   ;;  %v4299_v8 = vld [vmem:[%s5112_s13 + $0x90] ss:$8 sps:$4 sm:$0xff] (!%p3763_p10)   ;;  %v4301_v10 = vld [vmem:[%s5112_s13 + $0xa4] ss:$8 sps:$4 sm:$0xff] (!%p3763_p10)  }
  0x80   : > { %587 = vmatpush1.bf16.msra.mxu1 (!%p3763_p10), %v4293_v4  ;;  %1230 = vmatpush1.bf16.msra.mxu0 (!%p3763_p10), %v4294_v5  ;;  %v4297_v7 = vld [vmem:[%s5112_s13 + $0x214] ss:$8 sps:$4 sm:$0xff] (!%p3763_p10)   ;;  %v4300_v9 = vld [vmem:[%s5112_s13 + $0x210] ss:$8 sps:$4 sm:$0xff] (!%p3763_p10)   ;;  %v4303_v11 = vld [vmem:[%s5112_s13 + $0x224] ss:$8 sps:$4 sm:$0xff] (!%p3763_p10)  }
  0x81   : > { %588 = vmatprep.subr.bf16.mxu1 (!%p3763_p10), %v4295_v6  ;;  %1231 = vmatprep.subr.bf16.mxu0 (!%p3763_p10), %v4297_v7  ;;  %v4305_v12 = vld [vmem:[%s5112_s13 + $0xa0] ss:$8 sps:$4 sm:$0xff] (!%p3763_p10)   ;;  %v4307_v14 = vld [vmem:[%s5112_s13 + $0xb4] ss:$8 sps:$4 sm:$0xff] (!%p3763_p10)   ;;  %v4311_v16 = vld [vmem:[%s5112_s13 + $0xb0] ss:$8 sps:$4 sm:$0xff] (!%p3763_p10)  }
  0x82   : > { %v4306_v13 = vld [vmem:[%s5112_s13 + $0x220] ss:$8 sps:$4 sm:$0xff] (!%p3763_p10)   ;;  %v4309_v15 = vld [vmem:[%s5112_s13 + $0x234] ss:$8 sps:$4 sm:$0xff] (!%p3763_p10)   ;;  %v4312_v17 = vld [vmem:[%s5112_s13 + $0x230] ss:$8 sps:$4 sm:$0xff] (!%p3763_p10)  }
  0x83   : > { %v4313_v18 = vld [vmem:[%s5112_s13 + $0xc4] ss:$8 sps:$4 sm:$0xff] (!%p3763_p10)   ;;  %v4317_v20 = vld [vmem:[%s5112_s13 + $0xc0] ss:$8 sps:$4 sm:$0xff] (!%p3763_p10)   ;;  %v4319_v22 = vld [vmem:[%s5112_s13 + $0xd4] ss:$8 sps:$4 sm:$0xff] (!%p3763_p10)  }
  0x84   : > { %589 = vmatpush1.bf16.msra.mxu1 (!%p3763_p10), %v4299_v8  ;;  %1232 = vmatpush1.bf16.msra.mxu0 (!%p3763_p10), %v4300_v9  ;;  %v4315_v19 = vld [vmem:[%s5112_s13 + $0x244] ss:$8 sps:$4 sm:$0xff] (!%p3763_p10)   ;;  %v4318_v21 = vld [vmem:[%s5112_s13 + $0x240] ss:$8 sps:$4 sm:$0xff] (!%p3763_p10)   ;;  %v4321_v23 = vld [vmem:[%s5112_s13 + $0x254] ss:$8 sps:$4 sm:$0xff] (!%p3763_p10)  }
  0x85   : > { %590 = vmatprep.subr.bf16.mxu1 %v4301_v10  ;;  %1233 = vmatprep.subr.bf16.mxu0 %v4303_v11  ;;  %v4323_v24 = vld [vmem:[%s5112_s13 + $0xd0] ss:$8 sps:$4 sm:$0xff]   ;;  %v4325_v26 = vld [vmem:[%s5112_s13 + $0xe4] ss:$8 sps:$4 sm:$0xff]   ;;  %v4329_v28 = vld [vmem:[%s5112_s13 + $0xe0] ss:$8 sps:$4 sm:$0xff]  }
  0x86   : > { %v4324_v25 = vld [vmem:[%s5112_s13 + $0x250] ss:$8 sps:$4 sm:$0xff]   ;;  %v4327_v27 = vld [vmem:[%s5112_s13 + $0x264] ss:$8 sps:$4 sm:$0xff]   ;;  %v4330_v29 = vld [vmem:[%s5112_s13 + $0x260] ss:$8 sps:$4 sm:$0xff]  }
  0x87   : > { %v4331_v30 = vld [vmem:[%s5112_s13 + $0xf4] ss:$8 sps:$4 sm:$0xff]   ;;  %v444_v32 = vld [vmem:[%s5139_s2] sm:$0xf]  ;;  %v5183_v35 = vld [vmem:[%s5139_s2 + $0x8] ss:$0 sps:$4 sm:$0xff]  }
  0x88   : > { %591 = vmatpush1.bf16.msra.mxu1 %v4305_v12  ;;  %1234 = vmatpush1.bf16.msra.mxu0 %v4306_v13  ;;  %v4333_v31 = vld [vmem:[%s5112_s13 + $0x274] ss:$8 sps:$4 sm:$0xff]   ;;  %v936_v36 = vld [vmem:[%s5139_s2] sm:$0x8]  ;;  %v5191_v39 = vld [vmem:[%s5139_s2 + $0x8] sm:$0xf] }
  0x89   : > { %592 = vmatprep.subr.bf16.mxu1 %v4307_v14  ;;  %1235 = vmatprep.subr.bf16.mxu0 %v4309_v15  ;;  %v5177_v33 = vld [vmem:[%s5139_s2 + $0x4] sm:$0xf]  ;;  %v4335_v38 = vld [vmem:[%s5112_s13 + $0xf0] ss:$8 sps:$4 sm:$0xff]   ;;  %v5197_v41 = vld [vmem:[%s5139_s2 + $0xc] sm:$0x7] }
  0x8a   : > { %v5180_v34 = vcombine.low %v444_v32, %v5177_v33  ;;  %v5187_v37 = vld [vmem:[%s5139_s2 + $0x4] sm:$0xf]  ;;  %v4336_v42 = vld [vmem:[%s5112_s13 + $0x270] ss:$8 sps:$4 sm:$0xff]   ;;  %v497_v45 = vshll.u32 %v5183_v35, 16  ;;  %v3834_v46 = vcombine.low %v5191_v39, %v5197_v41  ;;  %v501_v6 = vshrl.u32 %v5183_v35, 16 }
  0x8b   : > { %v5194_v40 = vcombine.low %v936_v36, %v5187_v37  ;;  %v4339_v47 = vld [vmem:[%s5112_s13 + $0x4] ss:$8 sps:$4 sm:$0xff]   ;;  %vm488_vm0 = vsmask.f32 7424  ;;  %v4337_v57 = vld [vmem:[%s5112_s13] ss:$8 sps:$4 sm:$0xff]  }
  0x8c   : > { %593 = vmatpush1.bf16.msra.mxu1 %v4311_v16  ;;  %1236 = vmatpush1.bf16.msra.mxu0 %v4312_v17  ;;  %v490_v43 = vshrl.u32 %v5180_v34, 16  ;;  %v492_v44 = vshll.u32 %v5180_v34, 16  ;;  %v4342_v50 = vld [vmem:[%s5112_s13 + $0x284] ss:$8 sps:$4 sm:$0xff]   ;;  %v499_v52 = vrot.slane %v497_v45, 1  ;;  %v1139_v53 = vshrl.u32 %v3834_v46, 16 }
  0x8d   : > { %594 = vmatprep.subr.bf16.mxu1 %v4313_v18  ;;  %1237 = vmatprep.subr.bf16.mxu0 %v4315_v19  ;;  %v1131_v48 = vshrl.u32 %v5194_v40, 16  ;;  %v1134_v49 = vshll.u32 %v5194_v40, 16  ;;  %v1142_v54 = vshll.u32 %v3834_v46, 16  ;;  %v4340_v61 = vld [vmem:[%s5112_s13 + $0x280] ss:$8 sps:$4 sm:$0xff]   ;;  %vm966_vm4 = vcmask 1044480  }
  0x8e   : > { %v494_v51 = vrot.slane %v492_v44, 1  ;;  %v1141_v59 = vrot.slane %v1139_v53, 3  ;;  %vm1129_vm1 = vsmask.f32 4352  ;;  %v4349_v1 = vld [vmem:[%s5112_s13 + $0x14] ss:$8 sps:$4 sm:$0xff]   ;;  %v503_v11 = vor.u32 %v501_v6, %v499_v52 }
  0x8f   : > { %v1133_v55 = vrot.slane %v1131_v48, 3  ;;  %v1136_v56 = vrot.slane %v1134_v49, 4  ;;  %v1144_v60 = vrot.slane %v1142_v54, 4  ;;  %v4352_v2 = vld [vmem:[%s5112_s13 + $0x294] ss:$8 sps:$4 sm:$0xff]  }
  0x90   : > { %595 = vmatpush1.bf16.msra.mxu1 %v4317_v20  ;;  %1238 = vmatpush1.bf16.msra.mxu0 %v4318_v21  ;;  %v495_v58 = vor.u32 %v494_v51, %v490_v43  ;;  %v4347_v5 = vld [vmem:[%s5112_s13 + $0x10] ss:$8 sps:$4 sm:$0xff]   ;;  %v4355_v8 = vld [vmem:[%s5112_s13 + $0x24] ss:$8 sps:$4 sm:$0xff]   ;;  %v4353_v10 = vld [vmem:[%s5112_s13 + $0x20] ss:$8 sps:$4 sm:$0xff]   ;;  %v3851_v43 = vcombine.low %v5187_v37, %v5191_v39 }
  0x91   : > { %596 = vmatprep.subr.bf16.mxu1 %v4319_v22  ;;  %1239 = vmatprep.subr.bf16.mxu0 %v4321_v23  ;;  %v1137_v62 = vor.u32 %v1136_v56, %v1133_v55  ;;  %v1145_v0 = vor.u32 %v1144_v60, %v1141_v59  ;;  %v4350_v7 = vld [vmem:[%s5112_s13 + $0x290] ss:$8 sps:$4 sm:$0xff]   ;;  %v4358_v9 = vld [vmem:[%s5112_s13 + $0x2a4] ss:$8 sps:$4 sm:$0xff]   ;;  %v4356_v12 = vld [vmem:[%s5112_s13 + $0x2a0] ss:$8 sps:$4 sm:$0xff]  }
  0x92   : > { %v500_v63 = vsel %vm488_vm0, %v495_v58, %v499_v52  ;;  %v4361_v13 = vld [vmem:[%s5112_s13 + $0x34] ss:$8 sps:$4 sm:$0xff]   ;;  %v4359_v15 = vld [vmem:[%s5112_s13 + $0x30] ss:$8 sps:$4 sm:$0xff]   ;;  %v4367_v17 = vld [vmem:[%s5112_s13 + $0x44] ss:$8 sps:$4 sm:$0xff]  }
  0x93   : > { %v1146_v4 = vsel %vm1129_vm1, %v1137_v62, %v1145_v0  ;;  %v4364_v14 = vld [vmem:[%s5112_s13 + $0x2b4] ss:$8 sps:$4 sm:$0xff]   ;;  %v4362_v16 = vld [vmem:[%s5112_s13 + $0x2b0] ss:$8 sps:$4 sm:$0xff]   ;;  %v4370_v18 = vld [vmem:[%s5112_s13 + $0x2c4] ss:$8 sps:$4 sm:$0xff]  }
  0x94   : > { %597 = vmatpush1.bf16.msra.mxu1 %v4323_v24  ;;  %1240 = vmatpush1.bf16.msra.mxu0 %v4324_v25  ;;  %v4365_v19 = vld [vmem:[%s5112_s13 + $0x40] ss:$8 sps:$4 sm:$0xff]   ;;  %v4373_v21 = vld [vmem:[%s5112_s13 + $0x54] ss:$8 sps:$4 sm:$0xff]   ;;  %v4371_v23 = vld [vmem:[%s5112_s13 + $0x50] ss:$8 sps:$4 sm:$0xff]  }
  0x95   : > { %598 = vmatprep.subr.bf16.mxu1 %v4325_v26  ;;  %1241 = vmatprep.subr.bf16.mxu0 %v4327_v27  ;;  %v4368_v20 = vld [vmem:[%s5112_s13 + $0x2c0] ss:$8 sps:$4 sm:$0xff]   ;;  %v4376_v22 = vld [vmem:[%s5112_s13 + $0x2d4] ss:$8 sps:$4 sm:$0xff]   ;;  %v4374_v24 = vld [vmem:[%s5112_s13 + $0x2d0] ss:$8 sps:$4 sm:$0xff]  }
  0x96   : > { %v4379_v25 = vld [vmem:[%s5112_s13 + $0x64] ss:$8 sps:$4 sm:$0xff]   ;;  %v4377_v27 = vld [vmem:[%s5112_s13 + $0x60] ss:$8 sps:$4 sm:$0xff]   ;;  %v4386_v32 = vld [vmem:[%s5112_s13 + $0x2f0] ss:$8 sps:$4 sm:$0xff]  }
  0x97   : > { %v4382_v26 = vld [vmem:[%s5112_s13 + $0x2e4] ss:$8 sps:$4 sm:$0xff]   ;;  %v4392_v44 = vld [vmem:[%s5112_s13 + $0x300] ss:$8 sps:$4 sm:$0xff]   ;;  %v4398_v45 = vld [vmem:[%s5112_s13 + $0x114] ss:$8 sps:$4 sm:$0xff]  }
  0x98   : > { %599 = vmatpush1.bf16.msra.mxu1 %v4329_v28  ;;  %1242 = vmatpush1.bf16.msra.mxu0 %v4330_v29  ;;  %v4380_v28 = vld [vmem:[%s5112_s13 + $0x2e0] ss:$8 sps:$4 sm:$0xff]   ;;  %v4385_v29 = vld [vmem:[%s5112_s13 + $0x74] ss:$8 sps:$4 sm:$0xff]   ;;  %v4391_v36 = vld [vmem:[%s5112_s13 + $0x104] ss:$8 sps:$4 sm:$0xff]  }
  0x99   : > { %600 = vmatprep.subr.bf16.mxu1 %v4331_v30  ;;  %1243 = vmatprep.subr.bf16.mxu0 %v4333_v31  ;;  %v4388_v30 = vld [vmem:[%s5112_s13 + $0x2f4] ss:$8 sps:$4 sm:$0xff]   ;;  %v4383_v31 = vld [vmem:[%s5112_s13 + $0x70] ss:$8 sps:$4 sm:$0xff]   ;;  %v4405_v37 = vld [vmem:[%s5112_s13 + $0x124] ss:$8 sps:$4 sm:$0xff]  }
  0x9a   : > { %v4401_v46 = vld [vmem:[%s5112_s13 + $0x314] ss:$8 sps:$4 sm:$0xff]   ;;  %v4399_v48 = vld [vmem:[%s5112_s13 + $0x310] ss:$8 sps:$4 sm:$0xff]   ;;  %v795_v51 = vrot.slane %v5183_v35, 1 }
  0x9b   : > { %v773_v49 = vld [vmem:[%s5139_s2] sm:$0xe]  ;;  %v4402_v52 = vld [vmem:[%s5139_s2 + $0x8] ss:$0 sps:$4 sm:$0x77]  }
  0x9c   : > { %601 = vmatpush1.bf16.msra.mxu1 %v4335_v38  ;;  %1244 = vmatpush1.bf16.msra.mxu0 %v4336_v42  ;;  %v4394_v38 = vld [vmem:[%s5112_s13 + $0x304] ss:$8 sps:$4 sm:$0xff]   ;;  %v4389_v42 = vld [vmem:[%s5112_s13 + $0x100] ss:$8 sps:$4 sm:$0xff]   ;;  %v4411_v56 = vld [vmem:[%s5112_s13 + $0x134] ss:$8 sps:$4 sm:$0xff]  }
  0x9d   : > { %722 = vmatprep.subr.bf16.mxu1 %v4339_v47  ;;  %1386 = vmatprep.subr.bf16.mxu0 %v4342_v50  ;;  %v4396_v47 = vld [vmem:[%s5112_s13 + $0x110] ss:$8 sps:$4 sm:$0xff]   ;;  %v3799_v50 = vcombine.low %v773_v49, %v5177_v33  ;;  %v4403_v54 = vld [vmem:[%s5112_s13 + $0x120] ss:$8 sps:$4 sm:$0xff]   ;;  %v3852_v33 = vcombine.low %v5197_v41, %v5197_v41  ;;  %v4414_v58 = vld [vmem:[%s5112_s13 + $0x334] ss:$8 sps:$4 sm:$0xff]  }
  0x9e   : > { %v4406_v55 = vld [vmem:[%s5112_s13 + $0x320] ss:$8 sps:$4 sm:$0xff]   ;;  %v4409_v59 = vld [vmem:[%s5112_s13 + $0x130] ss:$8 sps:$4 sm:$0xff]   ;;  %v4417_v41 = vld [vmem:[%s5112_s13 + $0x144] ss:$8 sps:$4 sm:$0xff]  }
  0x9f   : > { %619 = vmatmul.mubr.bf16.vlgmr.msra.gmra.mrb[0].mxu1 %v500_v63  ;;  %1262 = vmatmul.mubr.bf16.vlgmr.msra.gmra.mrb[0].mxu0 %v1146_v4  ;;  %v794_v53 = vrot.slane %v3799_v50, 1  ;;  %v4412_v60 = vld [vmem:[%s5112_s13 + $0x330] ss:$8 sps:$4 sm:$0xff]   ;;  %v4415_v62 = vld [vmem:[%s5112_s13 + $0x140] ss:$8 sps:$4 sm:$0xff]  }
  0xa0   : > { %723 = vmatpush1.bf16.msra.mxu1 %v4337_v57  ;;  %1387 = vmatpush1.bf16.msra.mxu0 %v4340_v61  ;;  %v4420_v61 = vld [vmem:[%s5112_s13 + $0x344] ss:$8 sps:$4 sm:$0xff]   ;;  %v4418_v63 = vld [vmem:[%s5112_s13 + $0x340] ss:$8 sps:$4 sm:$0xff]   ;;  %v4424_v4 = vld [vmem:[%s5112_s13 + $0x350] ss:$8 sps:$4 sm:$0xff]  }
  0xa1   : > { %724 = vmatprep.subr.bf16.mxu1 %v4349_v1  ;;  %1388 = vmatprep.subr.bf16.mxu0 %v4352_v2  ;;  %v5270_v57 = vsel %vm793_vm2, %v794_v53, %v795_v51  ;;  %v4421_v1 = vld [vmem:[%s5112_s13 + $0x150] ss:$8 sps:$4 sm:$0xff]   ;;  %v4426_v2 = vld [vmem:[%s5112_s13 + $0x354] ss:$8 sps:$4 sm:$0xff]   ;;  %v4433_v6 = vld [vmem:[%s5112_s13 + $0x364] ss:$8 sps:$4 sm:$0xff]  }
  0xa2   : > { %1271 = vmatprep.mubr.bf16.mxu0 %v4911_v3  ;;  %628 = vmatprep.mubr.bf16.mxu1 %v4911_v3  ;;  %v4471_v49 = vld [vmem:[%s5112_s13 + $0x3c0] ss:$8 sps:$4 sm:$0xff]   ;;  %v4479_v50 = vld [vmem:[%s5112_s13 + $0x3d4] ss:$8 sps:$4 sm:$0xff]   ;;  %vm1636_vm5 = vsmask.f32 5376 }
  0xa4   : > { %725 = vmatpush1.bf16.msra.mxu1 %v4347_v5  ;;  %1389 = vmatpush1.bf16.msra.mxu0 %v4350_v7  ;;  %v4430_v5 = vld [vmem:[%s5112_s13 + $0x164] ss:$8 sps:$4 sm:$0xff]   ;;  %v1443_v7 = vld [vmem:[%s5139_s2 + $0x4] sm:$0xc] }
  0xa5   : > { %726 = vmatprep.subr.bf16.mxu1 %v4355_v8  ;;  %1390 = vmatprep.subr.bf16.mxu0 %v4358_v9  ;;  %v5289_v8 = vld [vmem:[%s5139_s2 + $0x8] sm:$0xf]  ;;  %v5292_v9 = vld [vmem:[%s5139_s2 + $0xc] sm:$0xf] }
  0xa7   : > { %629 = vmatmul.mubr.bf16.gmra.mrb[4].mxu1 %v503_v11  ;;  %1272 = vmatmul.mubr.bf16.gmra.mrb[4].mxu0 %v1145_v0  ;;  %v4423_v0 = vld [vmem:[%s5112_s13 + $0x154] ss:$8 sps:$4 sm:$0xff]   ;;  %v4428_v11 = vld [vmem:[%s5112_s13 + $0x160] ss:$8 sps:$4 sm:$0xff]  }
  0xa8   : > { %727 = vmatpush1.bf16.msra.mxu1 %v4353_v10  ;;  %1391 = vmatpush1.bf16.msra.mxu0 %v4356_v12  ;;  %v1446_v10 = vld [vmem:[%s5139_s2 + $0x10] sm:$0x1] }
  0xa9   : > { %728 = vmatprep.subr.bf16.mxu1 %v4361_v13  ;;  %1392 = vmatprep.subr.bf16.mxu0 %v4364_v14  ;;  %v4431_v12 = vld [vmem:[%s5112_s13 + $0x360] ss:$8 sps:$4 sm:$0xff]   ;;  %v4436_v13 = vld [vmem:[%s5112_s13 + $0x174] ss:$8 sps:$4 sm:$0xff]   ;;  %v5299_v14 = vcombine.low %v1443_v7, %v5289_v8 }
  0xaa   : > { %754 = vmatprep.mubr.bf16.mxu1 %v4911_v3  ;;  %1418 = vmatprep.mubr.bf16.mxu0 %v4911_v3 }
  0xac   : > { %729 = vmatpush1.bf16.msra.mxu1 %v4359_v15  ;;  %1393 = vmatpush1.bf16.msra.mxu0 %v4362_v16  ;;  %v3870_v15 = vcombine.low %v5292_v9, %v1446_v10  ;;  %v4439_v16 = vld [vmem:[%s5112_s13 + $0x374] ss:$8 sps:$4 sm:$0xff]  }
  0xad   : > { %730 = vmatprep.subr.bf16.mxu1 %v4367_v17  ;;  %1394 = vmatprep.subr.bf16.mxu0 %v4370_v18  ;;  %v4434_v17 = vld [vmem:[%s5112_s13 + $0x170] ss:$8 sps:$4 sm:$0xff]  }
  0xae   : > { %v4437_v18 = vld [vmem:[%s5112_s13 + $0x370] ss:$8 sps:$4 sm:$0xff]  }
  0xb0   : > { %731 = vmatpush1.bf16.msra.mxu1 %v4365_v19  ;;  %1395 = vmatpush1.bf16.msra.mxu0 %v4368_v20  ;;  %v4443_v19 = vld [vmem:[%s5112_s13 + $0x184] ss:$8 sps:$4 sm:$0xff]   ;;  %v1474_v20 = vrot.slane %v5299_v14, 2 }
  0xb1   : > { %732 = vmatprep.subr.bf16.mxu1 %v4373_v21  ;;  %1396 = vmatprep.subr.bf16.mxu0 %v4376_v22  ;;  %v1475_v21 = vrot.slane %v3870_v15, 2  ;;  %v4446_v22 = vld [vmem:[%s5112_s13 + $0x384] ss:$8 sps:$4 sm:$0xff]   ;;  %v4499_v15 = vld [vmem:[%s5112_s13 + $0x420] ss:$8 sps:$4 sm:$0xff]  }
  0xb4   : > { %733 = vmatpush1.bf16.msra.mxu1 %v4371_v23  ;;  %1397 = vmatpush1.bf16.msra.mxu0 %v4374_v24  ;;  %v4441_v23 = vld [vmem:[%s5112_s13 + $0x180] ss:$8 sps:$4 sm:$0xff]  }
  0xb5   : > { %734 = vmatprep.subr.bf16.mxu1 %v4379_v25  ;;  %1398 = vmatprep.subr.bf16.mxu0 %v4382_v26  ;;  %v4444_v24 = vld [vmem:[%s5112_s13 + $0x380] ss:$8 sps:$4 sm:$0xff]   ;;  %v1476_v25 = vsel %vm1473_vm3, %v1474_v20, %v1475_v21  ;;  %v4452_v26 = vld [vmem:[%s5112_s13 + $0x194] ss:$8 sps:$4 sm:$0xff]  }
  0xb6   : > { %v4510_v20 = vld [vmem:[%s5112_s13 + $0x454] ss:$8 sps:$4 sm:$0xff]  }
  0xb8   : > { %735 = vmatpush1.bf16.msra.mxu1 %v4377_v27  ;;  %1399 = vmatpush1.bf16.msra.mxu0 %v4380_v28  ;;  %v4455_v27 = vld [vmem:[%s5112_s13 + $0x394] ss:$8 sps:$4 sm:$0xff]   ;;  %v4450_v28 = vld [vmem:[%s5112_s13 + $0x190] ss:$8 sps:$4 sm:$0xff]  }
  0xb9   : > { %736 = vmatprep.subr.bf16.mxu1 %v4385_v29  ;;  %1400 = vmatprep.subr.bf16.mxu0 %v4388_v30  ;;  %v4453_v29 = vld [vmem:[%s5112_s13 + $0x390] ss:$8 sps:$4 sm:$0xff]   ;;  %v4458_v30 = vld [vmem:[%s5112_s13 + $0x1a4] ss:$8 sps:$4 sm:$0xff]  }
  0xbc   : > { %737 = vmatpush1.bf16.msra.mxu1 %v4383_v31  ;;  %1401 = vmatpush1.bf16.msra.mxu0 %v4386_v32  ;;  %v4461_v31 = vld [vmem:[%s5112_s13 + $0x3a4] ss:$8 sps:$4 sm:$0xff]   ;;  %v4456_v32 = vld [vmem:[%s5112_s13 + $0x1a0] ss:$8 sps:$4 sm:$0xff]  }
  0xbd   : > { %879 = vmatprep.subr.bf16.mxu1 %v4391_v36  ;;  %1559 = vmatprep.subr.bf16.mxu0 %v4394_v38  ;;  %v4459_v36 = vld [vmem:[%s5112_s13 + $0x3a0] ss:$8 sps:$4 sm:$0xff]   ;;  %v4464_v38 = vld [vmem:[%s5112_s13 + $0x1b4] ss:$8 sps:$4 sm:$0xff]  }
  0xbf   : > { %755 = vmatmul.mubr.bf16.vlgmr.msra.gmra.mrb[0].mxu1 %v5180_v34  ;;  %1419 = vmatmul.mubr.bf16.vlgmr.msra.gmra.mrb[0].mxu0 %v3851_v43  ;;  %v4408_v34 = vld [vmem:[%s5112_s13 + $0x324] ss:$8 sps:$4 sm:$0xff]   ;;  %v4462_v43 = vld [vmem:[%s5112_s13 + $0x1b0] ss:$8 sps:$4 sm:$0xff]  }
  0xc0   : > { %880 = vmatpush1.bf16.msra.mxu1 %v4389_v42  ;;  %1560 = vmatpush1.bf16.msra.mxu0 %v4392_v44  ;;  %v4467_v42 = vld [vmem:[%s5112_s13 + $0x3b4] ss:$8 sps:$4 sm:$0xff]   ;;  %v1616_v44 = vld [vmem:[%s5139_s2 + $0x10] sm:$0x3] }
  0xc1   : > { %881 = vmatprep.subr.bf16.mxu1 %v4398_v45  ;;  %1561 = vmatprep.subr.bf16.mxu0 %v4401_v46  ;;  %v4465_v45 = vld [vmem:[%s5112_s13 + $0x3b0] ss:$8 sps:$4 sm:$0xff]   ;;  %v4470_v46 = vld [vmem:[%s5112_s13 + $0x1c4] ss:$8 sps:$4 sm:$0xff]   ;;  %v5333_v35 = vcombine.low %v5292_v9, %v1616_v44 }
  0xc2   : > { %764 = vmatprep.mubr.bf16.mxu1 %v4911_v3  ;;  %1428 = vmatprep.mubr.bf16.mxu0 %v4911_v3 }
  0xc3   : > { %v1646_v53 = vshrl.u32 %v5333_v35, 16 }
  0xc4   : > { %882 = vmatpush1.bf16.msra.mxu1 %v4396_v47  ;;  %1562 = vmatpush1.bf16.msra.mxu0 %v4399_v48  ;;  %v4473_v47 = vld [vmem:[%s5112_s13 + $0x3c4] ss:$8 sps:$4 sm:$0xff]   ;;  %v4468_v48 = vld [vmem:[%s5112_s13 + $0x1c0] ss:$8 sps:$4 sm:$0xff]  }
  0xc5   : > { %883 = vmatprep.subr.bf16.mxu1 %v4405_v37  ;;  %1563 = vmatprep.subr.bf16.mxu0 %v4408_v34  ;;  %v4476_v37 = vld [vmem:[%s5112_s13 + $0x1d4] ss:$8 sps:$4 sm:$0xff]   ;;  %v1638_v34 = vshrl.u32 %v5299_v14, 16 }
  0xc7   : > { %765 = vmatmul.mubr.bf16.gmra.mrb[8].mxu1 %v4402_v52  ;;  %1429 = vmatmul.mubr.bf16.gmra.mrb[8].mxu0 %v3852_v33  ;;  %v1641_v52 = vshll.u32 %v5299_v14, 16  ;;  %v4477_v33 = vld [vmem:[%s5112_s13 + $0x3d0] ss:$8 sps:$4 sm:$0xff]   ;;  %v4501_v14 = vld [vmem:[%s5112_s13 + $0x424] ss:$8 sps:$4 sm:$0xff]  }
  0xc8   : > { %884 = vmatpush1.bf16.msra.mxu1 %v4403_v54  ;;  %1564 = vmatpush1.bf16.msra.mxu0 %v4406_v55  ;;  %v1649_v54 = vshll.u32 %v5333_v35, 16  ;;  %v4482_v55 = vld [vmem:[%s5112_s13 + $0x1e4] ss:$8 sps:$4 sm:$0xff]  }
  0xc9   : > { %885 = vmatprep.subr.bf16.mxu1 %v4411_v56  ;;  %1565 = vmatprep.subr.bf16.mxu0 %v4414_v58  ;;  %v939_v56 = vld [vmem:[%s5139_s2 + $0xc] sm:$0x3]  ;;  %v4480_v58 = vld [vmem:[%s5112_s13 + $0x1e0] ss:$8 sps:$4 sm:$0xff]  }
  0xca   : > { %911 = vmatprep.mubr.bf16.mxu1 %v4911_v3  ;;  %1591 = vmatprep.mubr.bf16.mxu0 %v4911_v3 }
  0xcc   : > { %886 = vmatpush1.bf16.msra.mxu1 %v4409_v59  ;;  %1566 = vmatpush1.bf16.msra.mxu0 %v4412_v60  ;;  %v3817_v59 = vcombine.low %v5191_v39, %v939_v56  ;;  %v1640_v60 = vrot.slane %v1638_v34, 2  ;;  %v4489_v39 = vld [vmem:[%s5112_s13 + $0x3f0] ss:$8 sps:$4 sm:$0xff]  }
  0xcd   : > { %887 = vmatprep.subr.bf16.mxu1 %v4417_v41  ;;  %1567 = vmatprep.subr.bf16.mxu0 %v4420_v61  ;;  %v1643_v41 = vrot.slane %v1641_v52, 3  ;;  %v4483_v61 = vld [vmem:[%s5112_s13 + $0x3e0] ss:$8 sps:$4 sm:$0xff]  }
  0xcf   : > { %v1644_v7 = vor.u32 %v1643_v41, %v1640_v60 }
  0xd0   : > { %888 = vmatpush1.bf16.msra.mxu1 %v4415_v62  ;;  %1568 = vmatpush1.bf16.msra.mxu0 %v4418_v63  ;;  %v4488_v62 = vld [vmem:[%s5112_s13 + $0x1f4] ss:$8 sps:$4 sm:$0xff]   ;;  %v1648_v63 = vrot.slane %v1646_v53, 2 }
  0xd1   : > { %889 = vmatprep.subr.bf16.mxu1 %v4423_v0  ;;  %1569 = vmatprep.subr.bf16.mxu0 %v4426_v2  ;;  %v1651_v0 = vrot.slane %v1649_v54, 3  ;;  %v4486_v2 = vld [vmem:[%s5112_s13 + $0x1f0] ss:$8 sps:$4 sm:$0xff]  }
  0xd3   : > { %v1652_v9 = vor.u32 %v1651_v0, %v1648_v63 }
  0xd4   : > { %890 = vmatpush1.bf16.msra.mxu1 %v4421_v1  ;;  %1570 = vmatpush1.bf16.msra.mxu0 %v4424_v4  ;;  %v4491_v1 = vld [vmem:[%s5112_s13 + $0x3f4] ss:$8 sps:$4 sm:$0xff]   ;;  %v967_v4 = vrot.slane %v5194_v40, 3 }
  0xd5   : > { %891 = vmatprep.subr.bf16.mxu1 %v4430_v5  ;;  %1571 = vmatprep.subr.bf16.mxu0 %v4433_v6  ;;  %v968_v5 = vrot.slane %v3817_v59, 3  ;;  %v4495_v6 = vld [vmem:[%s5112_s13 + $0x404] ss:$8 sps:$4 sm:$0xff]   ;;  %v1653_v40 = vsel %vm1636_vm5, %v1644_v7, %v1652_v9 }
  0xd7   : > { %v969_v10 = vsel %vm966_vm4, %v967_v4, %v968_v5 }
  0xd8   : > { %892 = vmatpush1.bf16.msra.mxu1 %v4428_v11  ;;  %1572 = vmatpush1.bf16.msra.mxu0 %v4431_v12  ;;  %v4493_v11 = vld [vmem:[%s5112_s13 + $0x400] ss:$8 sps:$4 sm:$0xff]   ;;  %v4498_v12 = vld [vmem:[%s5112_s13 + $0x414] ss:$8 sps:$4 sm:$0xff]  }
  0xd9   : > { %893 = vmatprep.subr.bf16.mxu1 %v4436_v13  ;;  %1573 = vmatprep.subr.bf16.mxu0 %v4439_v16  ;;  %v4496_v13 = vld [vmem:[%s5112_s13 + $0x410] ss:$8 sps:$4 sm:$0xff]   ;;  %v4504_v16 = vld [vmem:[%s5112_s13 + $0x434] ss:$8 sps:$4 sm:$0xff]  }
  0xdc   : > { %894 = vmatpush1.bf16.msra.mxu1 %v4434_v17  ;;  %1574 = vmatpush1.bf16.msra.mxu0 %v4437_v18  ;;  %v4502_v17 = vld [vmem:[%s5112_s13 + $0x430] ss:$8 sps:$4 sm:$0xff]   ;;  %v4507_v18 = vld [vmem:[%s5112_s13 + $0x444] ss:$8 sps:$4 sm:$0xff]  }
  0xdd   : > { %1052 = vmatprep.subr.bf16.mxu1 %v4443_v19  ;;  %1736 = vmatprep.subr.bf16.mxu0 %v4446_v22  ;;  %v4505_v19 = vld [vmem:[%s5112_s13 + $0x440] ss:$8 sps:$4 sm:$0xff]   ;;  %v4513_v22 = vld [vmem:[%s5112_s13 + $0x464] ss:$8 sps:$4 sm:$0xff]  }
  0xdf   : > { %912 = vmatmul.mubr.bf16.vlgmr.msra.gmra.mrb[0].mxu1 %v5270_v57  ;;  %1592 = vmatmul.mubr.bf16.vlgmr.msra.gmra.mrb[0].mxu0 %v1476_v25  ;;  %v4485_v57 = vld [vmem:[%s5112_s13 + $0x3e4] ss:$8 sps:$4 sm:$0xff]  }
  0xe0   : > { %1053 = vmatpush1.bf16.msra.mxu1 %v4441_v23  ;;  %1737 = vmatpush1.bf16.msra.mxu0 %v4444_v24  ;;  %v1793_v23 = vld [vmem:[%s5139_s2 + $0x4] sm:$0x8]  ;;  %v4511_v24 = vld [vmem:[%s5112_s13 + $0x460] ss:$8 sps:$4 sm:$0xff]  }
  0xe1   : > { %1054 = vmatprep.subr.bf16.mxu1 %v4452_v26  ;;  %1738 = vmatprep.subr.bf16.mxu0 %v4455_v27  ;;  %v3904_v25 = vcombine.low %v1793_v23, %v5289_v8  ;;  %v4514_v26 = vld [vmem:[%s5112_s13 + $0x470] ss:$8 sps:$4 sm:$0xff]  }
  0xe2   : > { %921 = vmatprep.mubr.bf16.mxu1 %v4911_v3  ;;  %1601 = vmatprep.mubr.bf16.mxu0 %v4911_v3 }
  0xe3   : > { %v1813_v27 = vrot.slane %v3904_v25, 3 }
  0xe4   : > { %1055 = vmatpush1.bf16.msra.mxu1 %v4450_v28  ;;  %1739 = vmatpush1.bf16.msra.mxu0 %v4453_v29  ;;  %v1814_v28 = vrot.slane %v5333_v35, 3 }
  0xe5   : > { %1056 = vmatprep.subr.bf16.mxu1 %v4458_v30  ;;  %1740 = vmatprep.subr.bf16.mxu0 %v4461_v31 }
  0xe6   : > { %v1815_v29 = vsel %vm966_vm4, %v1813_v27, %v1814_v28 }
  0xe7   : > { %922 = vmatmul.mubr.bf16.gmra.mrb[12].mxu1 %v795_v51  ;;  %1602 = vmatmul.mubr.bf16.gmra.mrb[12].mxu0 %v1475_v21  ;;  %v4474_v51 = vld [vmem:[%s5112_s13 + $0x1d0] ss:$8 sps:$4 sm:$0xff]  }
  0xe8   : > { %1057 = vmatpush1.bf16.msra.mxu1 %v4456_v32  ;;  %1741 = vmatpush1.bf16.msra.mxu0 %v4459_v36  ;;  %v4508_v21 = vld [vmem:[%s5112_s13 + $0x450] ss:$8 sps:$4 sm:$0xff]  }
  0xe9   : > { %1058 = vmatprep.subr.bf16.mxu1 %v4464_v38  ;;  %1742 = vmatprep.subr.bf16.mxu0 %v4467_v42 }
  0xea   : > { %1084 = vmatprep.mubr.bf16.mxu1 %v4911_v3  ;;  %1768 = vmatprep.mubr.bf16.mxu0 %v4911_v3 }
  0xec   : > { %1059 = vmatpush1.bf16.msra.mxu1 %v4462_v43  ;;  %1743 = vmatpush1.bf16.msra.mxu0 %v4465_v45 }
  0xed   : > { %1060 = vmatprep.subr.bf16.mxu1 %v4470_v46  ;;  %1744 = vmatprep.subr.bf16.mxu0 %v4473_v47 }
  0xf0   : > { %1061 = vmatpush1.bf16.msra.mxu1 %v4468_v48  ;;  %1745 = vmatpush1.bf16.msra.mxu0 %v4471_v49 }
  0xf1   : > { %1062 = vmatprep.subr.bf16.mxu1 %v4476_v37  ;;  %1746 = vmatprep.subr.bf16.mxu0 %v4479_v50 }
  0xf4   : > { %1063 = vmatpush1.bf16.msra.mxu1 %v4474_v51  ;;  %1747 = vmatpush1.bf16.msra.mxu0 %v4477_v33 }
  0xf5   : > { %1064 = vmatprep.subr.bf16.mxu1 %v4482_v55  ;;  %1748 = vmatprep.subr.bf16.mxu0 %v4485_v57 }
  0xf8   : > { %1065 = vmatpush1.bf16.msra.mxu1 %v4480_v58  ;;  %1749 = vmatpush1.bf16.msra.mxu0 %v4483_v61 }
  0xf9   : > { %1066 = vmatprep.subr.bf16.mxu1 %v4488_v62  ;;  %1750 = vmatprep.subr.bf16.mxu0 %v4491_v1 }
  0xfc   : > { %1067 = vmatpush1.bf16.msra.mxu1 %v4486_v2  ;;  %1751 = vmatpush1.bf16.msra.mxu0 %v4489_v39 }
  0xfd   : > { %4088 = vmatprep.subr.bf16.mxu1 %v4495_v6  ;;  %1898 = vmatprep.subr.bf16.mxu0 %v4495_v6 }
  0xff   : > { %1085 = vmatmul.mubr.bf16.vlgmr.msra.gmra.mrb[0].mxu1 %v969_v10  ;;  %1769 = vmatmul.mubr.bf16.vlgmr.msra.gmra.mrb[0].mxu0 %v1653_v40 }
 0x100   : > { %4096 = vmatpush1.bf16.msra.mxu1 %v4493_v11  ;;  %1899 = vmatpush1.bf16.msra.mxu0 %v4493_v11 }
 0x101   : > { %4089 = vmatprep.subr.bf16.mxu1 %v4498_v12  ;;  %1900 = vmatprep.subr.bf16.mxu0 %v4498_v12 }
 0x102   : > { %1094 = vmatprep.mubr.bf16.mxu1 %v4911_v3  ;;  %1778 = vmatprep.mubr.bf16.mxu0 %v4911_v3 }
 0x104   : > { %4097 = vmatpush1.bf16.msra.mxu1 %v4496_v13  ;;  %1901 = vmatpush1.bf16.msra.mxu0 %v4496_v13 }
 0x105   : > { %4090 = vmatprep.subr.bf16.mxu1 %v4501_v14  ;;  %1902 = vmatprep.subr.bf16.mxu0 %v4501_v14 }
 0x107   : > { %1095 = vmatmul.mubr.bf16.gmra.mrb[16].mxu1 %v968_v5  ;;  %1779 = vmatmul.mubr.bf16.gmra.mrb[16].mxu0 %v1652_v9 }
 0x108   : > { %4098 = vmatpush1.bf16.msra.mxu1 %v4499_v15  ;;  %1903 = vmatpush1.bf16.msra.mxu0 %v4499_v15 }
 0x109   : > { %4091 = vmatprep.subr.bf16.mxu1 %v4504_v16  ;;  %1904 = vmatprep.subr.bf16.mxu0 %v4504_v16 }
 0x10a   : > { %1930 = vmatprep.mubr.bf16.mxu0 %v4911_v3  ;;  %1940 = vmatprep.mubr.bf16.mxu1 %v4911_v3  ;;  %v4516_v3 = vld [vmem:[%s5112_s13 + $0x474] ss:$8 sps:$4 sm:$0xff]  }
 0x10c   : > { %4099 = vmatpush1.bf16.msra.mxu1 %v4502_v17  ;;  %1905 = vmatpush1.bf16.msra.mxu0 %v4502_v17  ;;  %v442_v17 = vld [vmem:[#allocation2 + $0x20] sm:$0x3f] }
 0x10d   : > { %4092 = vmatprep.subr.bf16.mxu1 %v4507_v18  ;;  %1906 = vmatprep.subr.bf16.mxu0 %v4507_v18 }
 0x110   : > { %4100 = vmatpush1.bf16.msra.mxu1 %v4505_v19  ;;  %1907 = vmatpush1.bf16.msra.mxu0 %v4505_v19  ;;  %v438_v19 = vld [vmem:[#allocation2] sm:$0xff] }
 0x111   : > { %4093 = vmatprep.subr.bf16.mxu1 %v4510_v20  ;;  %1908 = vmatprep.subr.bf16.mxu0 %v4510_v20 }
 0x114   : > { %4101 = vmatpush1.bf16.msra.mxu1 %v4508_v21  ;;  %1909 = vmatpush1.bf16.msra.mxu0 %v4508_v21 }
 0x115   : > { %4094 = vmatprep.subr.bf16.mxu1 %v4513_v22  ;;  %1910 = vmatprep.subr.bf16.mxu0 %v4513_v22  ;;  %v443_v22 = vld [vmem:[#allocation2 + $0x28] sm:$0x3f] }
 0x118   : > { %4102 = vmatpush1.bf16.msra.mxu1 %v4511_v24  ;;  %1911 = vmatpush1.bf16.msra.mxu0 %v4511_v24 }
 0x119   : > { %4095 = vmatprep.subr.bf16.mxu1 %v4516_v3  ;;  %1912 = vmatprep.subr.bf16.mxu0 %v4516_v3  ;;  %v439_v3 = vld [vmem:[#allocation2 + $0x8] sm:$0xff] }
 0x11c   : > { %4103 = vmatpush1.bf16.msra.mxu1 %v4514_v26  ;;  %1913 = vmatpush1.bf16.msra.mxu0 %v4514_v26 }
 0x11f   : > { %1941 = vmatmul.mubr.bf16.vlgmr.msra.gmra.mrb[20].mxu1 %v1814_v28  ;;  %1931 = vmatmul.mubr.bf16.vlgmr.msra.gmra.mrb[0].mxu0 %v1815_v29 }
 0x17a   : > { %v630_v30 = vpop.f32.mrb[4].mxu1  ;;  %v1273_v31 = vpop.f32.mrb[4].mxu0 }
 0x17b   : > { %v632_v32 = vpop.f32.mrb[5].mxu1  ;;  %v1275_v36 = vpop.f32.mrb[5].mxu0 }
 0x17c   : > { %v634_v8 = vpop.f32.mrb[6].mxu1  ;;  %v1277_v38 = vpop.f32.mrb[6].mxu0 }
 0x17d   : > { %v635_v42 = vpop.f32.mrb[7].mxu1  ;;  %v1278_v43 = vpop.f32.mrb[7].mxu0 }
 0x17e   : > { %v441_v42 = vld [vmem:[#allocation2 + $0x18] sm:$0xff] }
 0x19a   : > { %v766_v44 = vpop.f32.mrb[8].mxu1  ;;  %v1430_v47 = vpop.f32.mrb[8].mxu0 }
 0x19b   : > { %v767_v45 = vadd.f32 %v766_v44, %v630_v30  ;;  %v768_v46 = vpop.f32.mrb[9].mxu1  ;;  %v1432_v48 = vpop.f32.mrb[9].mxu0  ;;  %v440_v30 = vld [vmem:[#allocation2 + $0x10] sm:$0xff] }
 0x19c   : > { %v769_v35 = vadd.f32 %v768_v46, %v632_v32  ;;  %v770_v49 = vpop.f32.mrb[10].mxu1  ;;  %v1434_v37 = vpop.f32.mrb[10].mxu0 }
 0x19d   : > { %v771_v50 = vpop.f32.mrb[11].mxu1  ;;  %v1435_v51 = vpop.f32.mrb[11].mxu0 }
 0x1ba   : > { %v923_v34 = vpop.f32.mrb[12].mxu1  ;;  %v1603_v54 = vpop.f32.mrb[12].mxu0 }
 0x1bb   : > { %v934_v52 = vadd.f32 %v923_v34, %v767_v45  ;;  %v925_v53 = vpop.f32.mrb[13].mxu1  ;;  %v1605_v55 = vpop.f32.mrb[13].mxu0 }
 0x1bc   : > { %v935_v33 = vadd.f32 %v925_v53, %v769_v35  ;;  %v927_v56 = vpop.f32.mrb[14].mxu1  ;;  %v1607_v57 = vpop.f32.mrb[14].mxu0 }
 0x1bd   : > { %v928_v58 = vpop.f32.mrb[15].mxu1  ;;  %v1608_v59 = vpop.f32.mrb[15].mxu0 }
 0x1d2   : > { %v1086_v60 = vpop.f32.mrb[0].mxu1 }
 0x1d3   : > { %v1088_v41 = vpop.f32.mrb[1].mxu1 }
 0x1d4   : > { %v1090_v61 = vpop.f32.mrb[2].mxu1 }
 0x1d5   : > { %v1092_v62 = vpop.f32.mrb[3].mxu1 }
 0x1da   : > { %v1096_v63 = vpop.f32.mrb[16].mxu1  ;;  %v1780_v2 = vpop.f32.mrb[16].mxu0 }
 0x1db   : > { %v1107_v0 = vadd.f32 %v1096_v63, %v934_v52  ;;  %v1098_v1 = vpop.f32.mrb[17].mxu1  ;;  %v1782_v5 = vpop.f32.mrb[17].mxu0 }
 0x1dc   : > { %v1108_v4 = vadd.f32 %v1098_v1, %v935_v33  ;;  %v1100_v39 = vpop.f32.mrb[18].mxu1  ;;  %v1784_v7 = vpop.f32.mrb[18].mxu0 }
 0x1dd   : > { %v1284_v6 = vadd.f32 %v1273_v31, %v1107_v0  ;;  %v1101_v9 = vpop.f32.mrb[19].mxu1  ;;  %v1785_v11 = vpop.f32.mrb[19].mxu0 }
 0x1de   : > { %v1285_v10 = vadd.f32 %v1275_v36, %v1108_v4 }
 0x1df   : > { %v1441_v40 = vadd.f32 %v1430_v47, %v1284_v6 }
 0x1e0   : > { %v1442_v12 = vadd.f32 %v1432_v48, %v1285_v10 }
 0x1e1   : > { %v1614_v13 = vadd.f32 %v1603_v54, %v1441_v40 }
 0x1e2   : > { %v1615_v14 = vadd.f32 %v1605_v55, %v1442_v12 }
 0x1e3   : > { %v1791_v15 = vadd.f32 %v1780_v2, %v1614_v13 }
 0x1e4   : > { %v1792_v16 = vadd.f32 %v1782_v5, %v1615_v14 }
 0x1f2   : > { %v1942_v18 = vpop.f32.mrb[20].mxu1  ;;  %v1932_v20 = vpop.f32.mrb[0].mxu0 }
 0x1f3   : > { %v1953_v21 = vadd.f32 %v1942_v18, %v1791_v15  ;;  %v1944_v23 = vpop.f32.mrb[21].mxu1  ;;  %v4104_v24 = vadd.f32 %v1932_v20, %v1086_v60  ;;  %v1934_v25 = vpop.f32.mrb[1].mxu0 }
 0x1f4   : > { %v1954_v26 = vadd.f32 %v1944_v23, %v1792_v16  ;;  %v1946_v27 = vpop.f32.mrb[22].mxu1  ;;  %v4105_v29 = vadd.f32 %v1934_v25, %v1088_v41  ;;  %v1936_v31 = vpop.f32.mrb[2].mxu0 }
 0x1f5   : > { %v1959_v28 = vadd.f32 %v1953_v21, %v442_v17  ;;  %v1947_v32 = vpop.f32.mrb[23].mxu1  ;;  %v1955_v36 = vadd.f32 %v4104_v24, %v438_v19  ;;  %v4106_v38 = vadd.f32 %v1936_v31, %v1090_v61  ;;  %v1938_v43 = vpop.f32.mrb[3].mxu0 }
 0x1f6   : > { %v1960_v8 = vadd.f32 %v1954_v26, %v443_v22  ;;  %v1956_v44 = vadd.f32 %v4105_v29, %v439_v3  ;;  %v4107_v45 = vadd.f32 %v1938_v43, %v1092_v62 }
 0x1f7   : > { %1965 = vst [vmem:[#allocation2 + $0x20] sm:$0x3f] %v1959_v28  ;;  %1961 = vst [vmem:[#allocation2] sm:$0xff] %v1955_v36  ;;  %v1957_v46 = vadd.f32 %v4106_v38, %v440_v30 }
 0x1f8   : > { %1966 = vst [vmem:[#allocation2 + $0x28] sm:$0x3f] %v1960_v8  ;;  %1962 = vst [vmem:[#allocation2 + $0x8] sm:$0xff] %v1956_v44  ;;  %v1958_v47 = vadd.f32 %v4107_v45, %v441_v42 }
 0x1f9   : > { %1963 = vst [vmem:[#allocation2 + $0x10] sm:$0xff] %v1957_v46 }
 0x1fa   : > { %1964 = vst [vmem:[#allocation2 + $0x18] sm:$0xff] %v1958_v47 }
 0x1fb PF: > { %p3921_p0 = scmp.lt.s32.totalorder %s4887_s21, 4 }
 0x1fc   : > { %v4518_v35 = vld [vmem:[%s5112_s13 + $0x84] ss:$8 sps:$4 sm:$0xff] (!%p3921_p0)   ;;  %v4912_v49 = vmov (!%p3921_p0), 0   ;;  %v4522_v37 = vld [vmem:[%s5112_s13 + $0x80] ss:$8 sps:$4 sm:$0xff] (!%p3921_p0)   ;;  %vm2326_vm8 = vcmask (!%p3921_p0), 1046528  }
 0x1fd   : > { %1970 = sbr.rel (%p3921_p0) target bundleno = 890 (0x37a), region = 64  ;;  %v4520_v48 = vld [vmem:[%s5112_s13 + $0x204] ss:$8 sps:$4 sm:$0xff] (!%p3921_p0)   ;;  %2151 = vmatprep.mubr.bf16.mxu1 (!%p3921_p0), %v4912_v49  ;;  %2794 = vmatprep.mubr.bf16.mxu0 (!%p3921_p0), %v4912_v49  ;;  %v4523_v50 = vld [vmem:[%s5112_s13 + $0x200] ss:$8 sps:$4 sm:$0xff] (!%p3921_p0)   ;;  %vm3006_vm9 = vcmask (!%p3921_p0), 1045504  }
 0x1fe   : > { %2119 = vmatprep.subr.bf16.mxu1 (!%p3921_p0), %v4518_v35  ;;  %2762 = vmatprep.subr.bf16.mxu0 (!%p3921_p0), %v4520_v48  ;;  %v4524_v51 = vld [vmem:[%s5112_s13 + $0x94] ss:$8 sps:$4 sm:$0xff] (!%p3921_p0)   ;;  %v4528_v52 = vld [vmem:[%s5112_s13 + $0x90] ss:$8 sps:$4 sm:$0xff] (!%p3921_p0)   ;;  %v4530_v54 = vld [vmem:[%s5112_s13 + $0xa4] ss:$8 sps:$4 sm:$0xff] (!%p3921_p0)  }
 0x1ff   : > { %2120 = vmatpush1.bf16.msra.mxu1 (!%p3921_p0), %v4522_v37  ;;  %2763 = vmatpush1.bf16.msra.mxu0 (!%p3921_p0), %v4523_v50  ;;  %v4526_v34 = vld [vmem:[%s5112_s13 + $0x214] ss:$8 sps:$4 sm:$0xff] (!%p3921_p0)   ;;  %v4529_v53 = vld [vmem:[%s5112_s13 + $0x210] ss:$8 sps:$4 sm:$0xff] (!%p3921_p0)   ;;  %v4532_v33 = vld [vmem:[%s5112_s13 + $0x224] ss:$8 sps:$4 sm:$0xff] (!%p3921_p0)  }
 0x200   : > { %2121 = vmatprep.subr.bf16.mxu1 (!%p3921_p0), %v4524_v51  ;;  %2764 = vmatprep.subr.bf16.mxu0 (!%p3921_p0), %v4526_v34  ;;  %v4534_v55 = vld [vmem:[%s5112_s13 + $0xa0] ss:$8 sps:$4 sm:$0xff] (!%p3921_p0)   ;;  %v4536_v57 = vld [vmem:[%s5112_s13 + $0xb4] ss:$8 sps:$4 sm:$0xff] (!%p3921_p0)   ;;  %v4540_v59 = vld [vmem:[%s5112_s13 + $0xb0] ss:$8 sps:$4 sm:$0xff] (!%p3921_p0)  }
 0x201   : > { %v4535_v56 = vld [vmem:[%s5112_s13 + $0x220] ss:$8 sps:$4 sm:$0xff] (!%p3921_p0)   ;;  %v4538_v58 = vld [vmem:[%s5112_s13 + $0x234] ss:$8 sps:$4 sm:$0xff] (!%p3921_p0)   ;;  %v4541_v60 = vld [vmem:[%s5112_s13 + $0x230] ss:$8 sps:$4 sm:$0xff] (!%p3921_p0)  }
 0x202   : > { %v4542_v41 = vld [vmem:[%s5112_s13 + $0xc4] ss:$8 sps:$4 sm:$0xff] (!%p3921_p0)   ;;  %v4546_v62 = vld [vmem:[%s5112_s13 + $0xc0] ss:$8 sps:$4 sm:$0xff] (!%p3921_p0)   ;;  %v4548_v0 = vld [vmem:[%s5112_s13 + $0xd4] ss:$8 sps:$4 sm:$0xff] (!%p3921_p0)  }
 0x203   : > { %2122 = vmatpush1.bf16.msra.mxu1 (!%p3921_p0), %v4528_v52  ;;  %2765 = vmatpush1.bf16.msra.mxu0 (!%p3921_p0), %v4529_v53  ;;  %v4544_v61 = vld [vmem:[%s5112_s13 + $0x244] ss:$8 sps:$4 sm:$0xff] (!%p3921_p0)   ;;  %v4547_v63 = vld [vmem:[%s5112_s13 + $0x240] ss:$8 sps:$4 sm:$0xff] (!%p3921_p0)   ;;  %v4550_v1 = vld [vmem:[%s5112_s13 + $0x254] ss:$8 sps:$4 sm:$0xff] (!%p3921_p0)  }
 0x204   : > { %2123 = vmatprep.subr.bf16.mxu1 %v4530_v54  ;;  %2766 = vmatprep.subr.bf16.mxu0 %v4532_v33  ;;  %v4552_v2 = vld [vmem:[%s5112_s13 + $0xd0] ss:$8 sps:$4 sm:$0xff]   ;;  %v4554_v5 = vld [vmem:[%s5112_s13 + $0xe4] ss:$8 sps:$4 sm:$0xff]   ;;  %v4558_v6 = vld [vmem:[%s5112_s13 + $0xe0] ss:$8 sps:$4 sm:$0xff]  }
 0x205   : > { %v4553_v4 = vld [vmem:[%s5112_s13 + $0x250] ss:$8 sps:$4 sm:$0xff]   ;;  %v4556_v39 = vld [vmem:[%s5112_s13 + $0x264] ss:$8 sps:$4 sm:$0xff]   ;;  %v4559_v7 = vld [vmem:[%s5112_s13 + $0x260] ss:$8 sps:$4 sm:$0xff]  }
 0x206   : > { %v4560_v9 = vld [vmem:[%s5112_s13 + $0xf4] ss:$8 sps:$4 sm:$0xff]   ;;  %v1977_v11 = vld [vmem:[%s5129_s29] sm:$0xf]  ;;  %v5422_v13 = vld [vmem:[%s5129_s29 + $0x8] ss:$0 sps:$4 sm:$0xff]  }
 0x207   : > { %2124 = vmatpush1.bf16.msra.mxu1 %v4534_v55  ;;  %2767 = vmatpush1.bf16.msra.mxu0 %v4535_v56  ;;  %v4562_v10 = vld [vmem:[%s5112_s13 + $0x274] ss:$8 sps:$4 sm:$0xff]   ;;  %v2469_v14 = vld [vmem:[%s5129_s29] sm:$0x8]  ;;  %v5430_v17 = vld [vmem:[%s5129_s29 + $0x8] sm:$0xf] }
 0x208   : > { %2125 = vmatprep.subr.bf16.mxu1 %v4536_v57  ;;  %2768 = vmatprep.subr.bf16.mxu0 %v4538_v58  ;;  %v5416_v40 = vld [vmem:[%s5129_s29 + $0x4] sm:$0xf]  ;;  %v4564_v16 = vld [vmem:[%s5112_s13 + $0xf0] ss:$8 sps:$4 sm:$0xff]   ;;  %v5436_v19 = vld [vmem:[%s5129_s29 + $0xc] sm:$0x7] }
 0x209   : > { %v5419_v12 = vcombine.low %v1977_v11, %v5416_v40  ;;  %v5426_v15 = vld [vmem:[%s5129_s29 + $0x4] sm:$0xf]  ;;  %v4565_v20 = vld [vmem:[%s5112_s13 + $0x270] ss:$8 sps:$4 sm:$0xff]   ;;  %v2030_v23 = vshll.u32 %v5422_v13, 16  ;;  %v3992_v24 = vcombine.low %v5430_v17, %v5436_v19  ;;  %v2034_v51 = vshrl.u32 %v5422_v13, 16 }
 0x20a   : > { %v5433_v18 = vcombine.low %v2469_v14, %v5426_v15  ;;  %v4568_v3 = vld [vmem:[%s5112_s13 + $0x4] ss:$8 sps:$4 sm:$0xff]   ;;  %vm2021_vm6 = vsmask.f32 7424  ;;  %v4566_v8 = vld [vmem:[%s5112_s13] ss:$8 sps:$4 sm:$0xff]  }
 0x20b   : > { %2126 = vmatpush1.bf16.msra.mxu1 %v4540_v59  ;;  %2769 = vmatpush1.bf16.msra.mxu0 %v4541_v60  ;;  %v2023_v21 = vshrl.u32 %v5419_v12, 16  ;;  %v2025_v22 = vshll.u32 %v5419_v12, 16  ;;  %v4571_v27 = vld [vmem:[%s5112_s13 + $0x284] ss:$8 sps:$4 sm:$0xff]   ;;  %v2032_v29 = vrot.slane %v2030_v23, 1  ;;  %v2672_v30 = vshrl.u32 %v3992_v24, 16 }
 0x20c   : > { %2127 = vmatprep.subr.bf16.mxu1 %v4542_v41  ;;  %2770 = vmatprep.subr.bf16.mxu0 %v4544_v61  ;;  %v2664_v25 = vshrl.u32 %v5433_v18, 16  ;;  %v2667_v26 = vshll.u32 %v5433_v18, 16  ;;  %v2675_v31 = vshll.u32 %v3992_v24, 16  ;;  %v4569_v44 = vld [vmem:[%s5112_s13 + $0x280] ss:$8 sps:$4 sm:$0xff]   ;;  %vm2499_vm10 = vcmask 1044480  }
 0x20d   : > { %v2027_v28 = vrot.slane %v2025_v22, 1  ;;  %v2674_v42 = vrot.slane %v2672_v30, 3  ;;  %vm2662_vm7 = vsmask.f32 4352  ;;  %v4578_v35 = vld [vmem:[%s5112_s13 + $0x14] ss:$8 sps:$4 sm:$0xff]   ;;  %v2036_v33 = vor.u32 %v2034_v51, %v2032_v29 }
 0x20e   : > { %v2666_v32 = vrot.slane %v2664_v25, 3  ;;  %v2669_v36 = vrot.slane %v2667_v26, 4  ;;  %v2677_v43 = vrot.slane %v2675_v31, 4  ;;  %v4581_v48 = vld [vmem:[%s5112_s13 + $0x294] ss:$8 sps:$4 sm:$0xff]  }
 0x20f   : > { %2128 = vmatpush1.bf16.msra.mxu1 %v4546_v62  ;;  %2771 = vmatpush1.bf16.msra.mxu0 %v4547_v63  ;;  %v2028_v38 = vor.u32 %v2027_v28, %v2023_v21  ;;  %v4576_v50 = vld [vmem:[%s5112_s13 + $0x10] ss:$8 sps:$4 sm:$0xff]   ;;  %v4584_v52 = vld [vmem:[%s5112_s13 + $0x24] ss:$8 sps:$4 sm:$0xff]   ;;  %v4582_v54 = vld [vmem:[%s5112_s13 + $0x20] ss:$8 sps:$4 sm:$0xff]   ;;  %v4009_v21 = vcombine.low %v5426_v15, %v5430_v17 }
 0x210   : > { %2129 = vmatprep.subr.bf16.mxu1 %v4548_v0  ;;  %2772 = vmatprep.subr.bf16.mxu0 %v4550_v1  ;;  %v2670_v45 = vor.u32 %v2669_v36, %v2666_v32  ;;  %v2678_v47 = vor.u32 %v2677_v43, %v2674_v42  ;;  %v4579_v34 = vld [vmem:[%s5112_s13 + $0x290] ss:$8 sps:$4 sm:$0xff]   ;;  %v4587_v53 = vld [vmem:[%s5112_s13 + $0x2a4] ss:$8 sps:$4 sm:$0xff]   ;;  %v4585_v55 = vld [vmem:[%s5112_s13 + $0x2a0] ss:$8 sps:$4 sm:$0xff]  }
 0x211   : > { %v2033_v46 = vsel %vm2021_vm6, %v2028_v38, %v2032_v29  ;;  %v4590_v56 = vld [vmem:[%s5112_s13 + $0x34] ss:$8 sps:$4 sm:$0xff]   ;;  %v4588_v58 = vld [vmem:[%s5112_s13 + $0x30] ss:$8 sps:$4 sm:$0xff]   ;;  %v4596_v60 = vld [vmem:[%s5112_s13 + $0x44] ss:$8 sps:$4 sm:$0xff]  }
 0x212   : > { %v2679_v37 = vsel %vm2662_vm7, %v2670_v45, %v2678_v47  ;;  %v4593_v57 = vld [vmem:[%s5112_s13 + $0x2b4] ss:$8 sps:$4 sm:$0xff]   ;;  %v4591_v59 = vld [vmem:[%s5112_s13 + $0x2b0] ss:$8 sps:$4 sm:$0xff]   ;;  %v4599_v41 = vld [vmem:[%s5112_s13 + $0x2c4] ss:$8 sps:$4 sm:$0xff]  }
 0x213   : > { %2130 = vmatpush1.bf16.msra.mxu1 %v4552_v2  ;;  %2773 = vmatpush1.bf16.msra.mxu0 %v4553_v4  ;;  %v4594_v61 = vld [vmem:[%s5112_s13 + $0x40] ss:$8 sps:$4 sm:$0xff]   ;;  %v4602_v63 = vld [vmem:[%s5112_s13 + $0x54] ss:$8 sps:$4 sm:$0xff]   ;;  %v4600_v1 = vld [vmem:[%s5112_s13 + $0x50] ss:$8 sps:$4 sm:$0xff]  }
 0x214   : > { %2131 = vmatprep.subr.bf16.mxu1 %v4554_v5  ;;  %2774 = vmatprep.subr.bf16.mxu0 %v4556_v39  ;;  %v4597_v62 = vld [vmem:[%s5112_s13 + $0x2c0] ss:$8 sps:$4 sm:$0xff]   ;;  %v4605_v0 = vld [vmem:[%s5112_s13 + $0x2d4] ss:$8 sps:$4 sm:$0xff]   ;;  %v4603_v2 = vld [vmem:[%s5112_s13 + $0x2d0] ss:$8 sps:$4 sm:$0xff]  }
 0x215   : > { %v4608_v4 = vld [vmem:[%s5112_s13 + $0x64] ss:$8 sps:$4 sm:$0xff]   ;;  %v4606_v39 = vld [vmem:[%s5112_s13 + $0x60] ss:$8 sps:$4 sm:$0xff]   ;;  %v4615_v11 = vld [vmem:[%s5112_s13 + $0x2f0] ss:$8 sps:$4 sm:$0xff]  }
 0x216   : > { %v4611_v5 = vld [vmem:[%s5112_s13 + $0x2e4] ss:$8 sps:$4 sm:$0xff]   ;;  %v4621_v22 = vld [vmem:[%s5112_s13 + $0x300] ss:$8 sps:$4 sm:$0xff]   ;;  %v4627_v23 = vld [vmem:[%s5112_s13 + $0x114] ss:$8 sps:$4 sm:$0xff]  }
 0x217   : > { %2132 = vmatpush1.bf16.msra.mxu1 %v4558_v6  ;;  %2775 = vmatpush1.bf16.msra.mxu0 %v4559_v7  ;;  %v4609_v6 = vld [vmem:[%s5112_s13 + $0x2e0] ss:$8 sps:$4 sm:$0xff]   ;;  %v4614_v7 = vld [vmem:[%s5112_s13 + $0x74] ss:$8 sps:$4 sm:$0xff]   ;;  %v4620_v14 = vld [vmem:[%s5112_s13 + $0x104] ss:$8 sps:$4 sm:$0xff]  }
 0x218   : > { %2133 = vmatprep.subr.bf16.mxu1 %v4560_v9  ;;  %2776 = vmatprep.subr.bf16.mxu0 %v4562_v10  ;;  %v4617_v9 = vld [vmem:[%s5112_s13 + $0x2f4] ss:$8 sps:$4 sm:$0xff]   ;;  %v4612_v10 = vld [vmem:[%s5112_s13 + $0x70] ss:$8 sps:$4 sm:$0xff]   ;;  %v4634_v15 = vld [vmem:[%s5112_s13 + $0x124] ss:$8 sps:$4 sm:$0xff]  }
 0x219   : > { %v4630_v24 = vld [vmem:[%s5112_s13 + $0x314] ss:$8 sps:$4 sm:$0xff]   ;;  %v4628_v25 = vld [vmem:[%s5112_s13 + $0x310] ss:$8 sps:$4 sm:$0xff]   ;;  %v2328_v28 = vrot.slane %v5422_v13, 1 }
 0x21a   : > { %v2306_v26 = vld [vmem:[%s5129_s29] sm:$0xe]  ;;  %v4631_v29 = vld [vmem:[%s5129_s29 + $0x8] ss:$0 sps:$4 sm:$0x77]  }
 0x21b   : > { %2134 = vmatpush1.bf16.msra.mxu1 %v4564_v16  ;;  %2777 = vmatpush1.bf16.msra.mxu0 %v4565_v20  ;;  %v4623_v16 = vld [vmem:[%s5112_s13 + $0x304] ss:$8 sps:$4 sm:$0xff]   ;;  %v4618_v20 = vld [vmem:[%s5112_s13 + $0x100] ss:$8 sps:$4 sm:$0xff]   ;;  %v4640_v36 = vld [vmem:[%s5112_s13 + $0x134] ss:$8 sps:$4 sm:$0xff]  }
 0x21c   : > { %2255 = vmatprep.subr.bf16.mxu1 %v4568_v3  ;;  %2919 = vmatprep.subr.bf16.mxu0 %v4571_v27  ;;  %v4625_v3 = vld [vmem:[%s5112_s13 + $0x110] ss:$8 sps:$4 sm:$0xff]   ;;  %v3957_v27 = vcombine.low %v2306_v26, %v5416_v40  ;;  %v4632_v31 = vld [vmem:[%s5112_s13 + $0x120] ss:$8 sps:$4 sm:$0xff]   ;;  %v4010_v40 = vcombine.low %v5436_v19, %v5436_v19  ;;  %v4643_v38 = vld [vmem:[%s5112_s13 + $0x334] ss:$8 sps:$4 sm:$0xff]  }
 0x21d   : > { %v4635_v32 = vld [vmem:[%s5112_s13 + $0x320] ss:$8 sps:$4 sm:$0xff]   ;;  %v4638_v42 = vld [vmem:[%s5112_s13 + $0x130] ss:$8 sps:$4 sm:$0xff]   ;;  %v4646_v19 = vld [vmem:[%s5112_s13 + $0x144] ss:$8 sps:$4 sm:$0xff]  }
 0x21e   : > { %2152 = vmatmul.mubr.bf16.vlgmr.msra.gmra.mrb[0].mxu1 %v2033_v46  ;;  %2795 = vmatmul.mubr.bf16.vlgmr.msra.gmra.mrb[0].mxu0 %v2679_v37  ;;  %v2327_v30 = vrot.slane %v3957_v27, 1  ;;  %v4641_v43 = vld [vmem:[%s5112_s13 + $0x330] ss:$8 sps:$4 sm:$0xff]   ;;  %v4644_v45 = vld [vmem:[%s5112_s13 + $0x140] ss:$8 sps:$4 sm:$0xff]  }
 0x21f   : > { %2256 = vmatpush1.bf16.msra.mxu1 %v4566_v8  ;;  %2920 = vmatpush1.bf16.msra.mxu0 %v4569_v44  ;;  %v4649_v44 = vld [vmem:[%s5112_s13 + $0x344] ss:$8 sps:$4 sm:$0xff]   ;;  %v4647_v46 = vld [vmem:[%s5112_s13 + $0x340] ss:$8 sps:$4 sm:$0xff]   ;;  %v4653_v37 = vld [vmem:[%s5112_s13 + $0x350] ss:$8 sps:$4 sm:$0xff]  }
 0x220   : > { %2257 = vmatprep.subr.bf16.mxu1 %v4578_v35  ;;  %2921 = vmatprep.subr.bf16.mxu0 %v4581_v48  ;;  %v5509_v8 = vsel %vm2326_vm8, %v2327_v30, %v2328_v28  ;;  %v4650_v35 = vld [vmem:[%s5112_s13 + $0x150] ss:$8 sps:$4 sm:$0xff]   ;;  %v4655_v48 = vld [vmem:[%s5112_s13 + $0x354] ss:$8 sps:$4 sm:$0xff]   ;;  %v4662_v51 = vld [vmem:[%s5112_s13 + $0x364] ss:$8 sps:$4 sm:$0xff]  }
 0x221   : > { %2804 = vmatprep.mubr.bf16.mxu0 %v4912_v49  ;;  %2161 = vmatprep.mubr.bf16.mxu1 %v4912_v49  ;;  %v4700_v26 = vld [vmem:[%s5112_s13 + $0x3c0] ss:$8 sps:$4 sm:$0xff]   ;;  %v4708_v27 = vld [vmem:[%s5112_s13 + $0x3d4] ss:$8 sps:$4 sm:$0xff]   ;;  %vm3169_vm11 = vsmask.f32 5376 }
 0x223   : > { %2258 = vmatpush1.bf16.msra.mxu1 %v4576_v50  ;;  %2922 = vmatpush1.bf16.msra.mxu0 %v4579_v34  ;;  %v4659_v50 = vld [vmem:[%s5112_s13 + $0x164] ss:$8 sps:$4 sm:$0xff]   ;;  %v2976_v34 = vld [vmem:[%s5129_s29 + $0x4] sm:$0xc] }
 0x224   : > { %2259 = vmatprep.subr.bf16.mxu1 %v4584_v52  ;;  %2923 = vmatprep.subr.bf16.mxu0 %v4587_v53  ;;  %v5528_v52 = vld [vmem:[%s5129_s29 + $0x8] sm:$0xf]  ;;  %v5531_v53 = vld [vmem:[%s5129_s29 + $0xc] sm:$0xf] }
 0x226   : > { %2162 = vmatmul.mubr.bf16.gmra.mrb[4].mxu1 %v2036_v33  ;;  %2805 = vmatmul.mubr.bf16.gmra.mrb[4].mxu0 %v2678_v47  ;;  %v4652_v47 = vld [vmem:[%s5112_s13 + $0x154] ss:$8 sps:$4 sm:$0xff]   ;;  %v4657_v33 = vld [vmem:[%s5112_s13 + $0x160] ss:$8 sps:$4 sm:$0xff]  }
 0x227   : > { %2260 = vmatpush1.bf16.msra.mxu1 %v4582_v54  ;;  %2924 = vmatpush1.bf16.msra.mxu0 %v4585_v55  ;;  %v2979_v54 = vld [vmem:[%s5129_s29 + $0x10] sm:$0x1] }
 0x228   : > { %2261 = vmatprep.subr.bf16.mxu1 %v4590_v56  ;;  %2925 = vmatprep.subr.bf16.mxu0 %v4593_v57  ;;  %v4660_v55 = vld [vmem:[%s5112_s13 + $0x360] ss:$8 sps:$4 sm:$0xff]   ;;  %v4665_v56 = vld [vmem:[%s5112_s13 + $0x174] ss:$8 sps:$4 sm:$0xff]   ;;  %v5538_v57 = vcombine.low %v2976_v34, %v5528_v52 }
 0x229   : > { %2287 = vmatprep.mubr.bf16.mxu1 %v4912_v49  ;;  %2951 = vmatprep.mubr.bf16.mxu0 %v4912_v49 }
 0x22b   : > { %2262 = vmatpush1.bf16.msra.mxu1 %v4588_v58  ;;  %2926 = vmatpush1.bf16.msra.mxu0 %v4591_v59  ;;  %v4028_v58 = vcombine.low %v5531_v53, %v2979_v54  ;;  %v4668_v59 = vld [vmem:[%s5112_s13 + $0x374] ss:$8 sps:$4 sm:$0xff]  }
 0x22c   : > { %2263 = vmatprep.subr.bf16.mxu1 %v4596_v60  ;;  %2927 = vmatprep.subr.bf16.mxu0 %v4599_v41  ;;  %v4663_v60 = vld [vmem:[%s5112_s13 + $0x170] ss:$8 sps:$4 sm:$0xff]  }
 0x22d   : > { %v4666_v41 = vld [vmem:[%s5112_s13 + $0x370] ss:$8 sps:$4 sm:$0xff]  }
 0x22f   : > { %2264 = vmatpush1.bf16.msra.mxu1 %v4594_v61  ;;  %2928 = vmatpush1.bf16.msra.mxu0 %v4597_v62  ;;  %v4672_v61 = vld [vmem:[%s5112_s13 + $0x184] ss:$8 sps:$4 sm:$0xff]   ;;  %v3007_v62 = vrot.slane %v5538_v57, 2 }
 0x230   : > { %2265 = vmatprep.subr.bf16.mxu1 %v4602_v63  ;;  %2929 = vmatprep.subr.bf16.mxu0 %v4605_v0  ;;  %v3008_v63 = vrot.slane %v4028_v58, 2  ;;  %v4675_v0 = vld [vmem:[%s5112_s13 + $0x384] ss:$8 sps:$4 sm:$0xff]   ;;  %v4728_v58 = vld [vmem:[%s5112_s13 + $0x420] ss:$8 sps:$4 sm:$0xff]  }
 0x233   : > { %2266 = vmatpush1.bf16.msra.mxu1 %v4600_v1  ;;  %2930 = vmatpush1.bf16.msra.mxu0 %v4603_v2  ;;  %v4670_v1 = vld [vmem:[%s5112_s13 + $0x180] ss:$8 sps:$4 sm:$0xff]  }
 0x234   : > { %2267 = vmatprep.subr.bf16.mxu1 %v4608_v4  ;;  %2931 = vmatprep.subr.bf16.mxu0 %v4611_v5  ;;  %v4673_v2 = vld [vmem:[%s5112_s13 + $0x380] ss:$8 sps:$4 sm:$0xff]   ;;  %v3009_v4 = vsel %vm3006_vm9, %v3007_v62, %v3008_v63  ;;  %v4681_v5 = vld [vmem:[%s5112_s13 + $0x194] ss:$8 sps:$4 sm:$0xff]  }
 0x235   : > { %v4739_v62 = vld [vmem:[%s5112_s13 + $0x454] ss:$8 sps:$4 sm:$0xff]  }
 0x237   : > { %2268 = vmatpush1.bf16.msra.mxu1 %v4606_v39  ;;  %2932 = vmatpush1.bf16.msra.mxu0 %v4609_v6  ;;  %v4684_v39 = vld [vmem:[%s5112_s13 + $0x394] ss:$8 sps:$4 sm:$0xff]   ;;  %v4679_v6 = vld [vmem:[%s5112_s13 + $0x190] ss:$8 sps:$4 sm:$0xff]  }
 0x238   : > { %2269 = vmatprep.subr.bf16.mxu1 %v4614_v7  ;;  %2933 = vmatprep.subr.bf16.mxu0 %v4617_v9  ;;  %v4682_v7 = vld [vmem:[%s5112_s13 + $0x390] ss:$8 sps:$4 sm:$0xff]   ;;  %v4687_v9 = vld [vmem:[%s5112_s13 + $0x1a4] ss:$8 sps:$4 sm:$0xff]  }
 0x23b   : > { %2270 = vmatpush1.bf16.msra.mxu1 %v4612_v10  ;;  %2934 = vmatpush1.bf16.msra.mxu0 %v4615_v11  ;;  %v4690_v10 = vld [vmem:[%s5112_s13 + $0x3a4] ss:$8 sps:$4 sm:$0xff]   ;;  %v4685_v11 = vld [vmem:[%s5112_s13 + $0x1a0] ss:$8 sps:$4 sm:$0xff]  }
 0x23c   : > { %2412 = vmatprep.subr.bf16.mxu1 %v4620_v14  ;;  %3092 = vmatprep.subr.bf16.mxu0 %v4623_v16  ;;  %v4688_v14 = vld [vmem:[%s5112_s13 + $0x3a0] ss:$8 sps:$4 sm:$0xff]   ;;  %v4693_v16 = vld [vmem:[%s5112_s13 + $0x1b4] ss:$8 sps:$4 sm:$0xff]  }
 0x23e   : > { %2288 = vmatmul.mubr.bf16.vlgmr.msra.gmra.mrb[0].mxu1 %v5419_v12  ;;  %2952 = vmatmul.mubr.bf16.vlgmr.msra.gmra.mrb[0].mxu0 %v4009_v21  ;;  %v4637_v12 = vld [vmem:[%s5112_s13 + $0x324] ss:$8 sps:$4 sm:$0xff]   ;;  %v4691_v21 = vld [vmem:[%s5112_s13 + $0x1b0] ss:$8 sps:$4 sm:$0xff]  }
 0x23f   : > { %2413 = vmatpush1.bf16.msra.mxu1 %v4618_v20  ;;  %3093 = vmatpush1.bf16.msra.mxu0 %v4621_v22  ;;  %v4696_v20 = vld [vmem:[%s5112_s13 + $0x3b4] ss:$8 sps:$4 sm:$0xff]   ;;  %v3149_v22 = vld [vmem:[%s5129_s29 + $0x10] sm:$0x3] }
 0x240   : > { %2414 = vmatprep.subr.bf16.mxu1 %v4627_v23  ;;  %3094 = vmatprep.subr.bf16.mxu0 %v4630_v24  ;;  %v4694_v23 = vld [vmem:[%s5112_s13 + $0x3b0] ss:$8 sps:$4 sm:$0xff]   ;;  %v4699_v24 = vld [vmem:[%s5112_s13 + $0x1c4] ss:$8 sps:$4 sm:$0xff]   ;;  %v5572_v13 = vcombine.low %v5531_v53, %v3149_v22 }
 0x241   : > { %2297 = vmatprep.mubr.bf16.mxu1 %v4912_v49  ;;  %2961 = vmatprep.mubr.bf16.mxu0 %v4912_v49 }
 0x242   : > { %v3179_v30 = vshrl.u32 %v5572_v13, 16 }
 0x243   : > { %2415 = vmatpush1.bf16.msra.mxu1 %v4625_v3  ;;  %3095 = vmatpush1.bf16.msra.mxu0 %v4628_v25  ;;  %v4702_v3 = vld [vmem:[%s5112_s13 + $0x3c4] ss:$8 sps:$4 sm:$0xff]   ;;  %v4697_v25 = vld [vmem:[%s5112_s13 + $0x1c0] ss:$8 sps:$4 sm:$0xff]  }
 0x244   : > { %2416 = vmatprep.subr.bf16.mxu1 %v4634_v15  ;;  %3096 = vmatprep.subr.bf16.mxu0 %v4637_v12  ;;  %v4705_v15 = vld [vmem:[%s5112_s13 + $0x1d4] ss:$8 sps:$4 sm:$0xff]   ;;  %v3171_v12 = vshrl.u32 %v5538_v57, 16 }
 0x246   : > { %2298 = vmatmul.mubr.bf16.gmra.mrb[8].mxu1 %v4631_v29  ;;  %2962 = vmatmul.mubr.bf16.gmra.mrb[8].mxu0 %v4010_v40  ;;  %v3174_v29 = vshll.u32 %v5538_v57, 16  ;;  %v4706_v40 = vld [vmem:[%s5112_s13 + $0x3d0] ss:$8 sps:$4 sm:$0xff]   ;;  %v4730_v57 = vld [vmem:[%s5112_s13 + $0x424] ss:$8 sps:$4 sm:$0xff]  }
 0x247   : > { %2417 = vmatpush1.bf16.msra.mxu1 %v4632_v31  ;;  %3097 = vmatpush1.bf16.msra.mxu0 %v4635_v32  ;;  %v3182_v31 = vshll.u32 %v5572_v13, 16  ;;  %v4711_v32 = vld [vmem:[%s5112_s13 + $0x1e4] ss:$8 sps:$4 sm:$0xff]  }
 0x248   : > { %2418 = vmatprep.subr.bf16.mxu1 %v4640_v36  ;;  %3098 = vmatprep.subr.bf16.mxu0 %v4643_v38  ;;  %v2472_v36 = vld [vmem:[%s5129_s29 + $0xc] sm:$0x3]  ;;  %v4709_v38 = vld [vmem:[%s5112_s13 + $0x1e0] ss:$8 sps:$4 sm:$0xff]  }
 0x249   : > { %2444 = vmatprep.mubr.bf16.mxu1 %v4912_v49  ;;  %3124 = vmatprep.mubr.bf16.mxu0 %v4912_v49 }
 0x24b   : > { %2419 = vmatpush1.bf16.msra.mxu1 %v4638_v42  ;;  %3099 = vmatpush1.bf16.msra.mxu0 %v4641_v43  ;;  %v3975_v42 = vcombine.low %v5430_v17, %v2472_v36  ;;  %v3173_v43 = vrot.slane %v3171_v12, 2  ;;  %v4718_v17 = vld [vmem:[%s5112_s13 + $0x3f0] ss:$8 sps:$4 sm:$0xff]  }
 0x24c   : > { %2420 = vmatprep.subr.bf16.mxu1 %v4646_v19  ;;  %3100 = vmatprep.subr.bf16.mxu0 %v4649_v44  ;;  %v3176_v19 = vrot.slane %v3174_v29, 3  ;;  %v4712_v44 = vld [vmem:[%s5112_s13 + $0x3e0] ss:$8 sps:$4 sm:$0xff]  }
 0x24e   : > { %v3177_v34 = vor.u32 %v3176_v19, %v3173_v43 }
 0x24f   : > { %2421 = vmatpush1.bf16.msra.mxu1 %v4644_v45  ;;  %3101 = vmatpush1.bf16.msra.mxu0 %v4647_v46  ;;  %v4717_v45 = vld [vmem:[%s5112_s13 + $0x1f4] ss:$8 sps:$4 sm:$0xff]   ;;  %v3181_v46 = vrot.slane %v3179_v30, 2 }
 0x250   : > { %2422 = vmatprep.subr.bf16.mxu1 %v4652_v47  ;;  %3102 = vmatprep.subr.bf16.mxu0 %v4655_v48  ;;  %v3184_v47 = vrot.slane %v3182_v31, 3  ;;  %v4715_v48 = vld [vmem:[%s5112_s13 + $0x1f0] ss:$8 sps:$4 sm:$0xff]  }
 0x252   : > { %v3185_v53 = vor.u32 %v3184_v47, %v3181_v46 }
 0x253   : > { %2423 = vmatpush1.bf16.msra.mxu1 %v4650_v35  ;;  %3103 = vmatpush1.bf16.msra.mxu0 %v4653_v37  ;;  %v4720_v35 = vld [vmem:[%s5112_s13 + $0x3f4] ss:$8 sps:$4 sm:$0xff]   ;;  %v2500_v37 = vrot.slane %v5433_v18, 3 }
 0x254   : > { %2424 = vmatprep.subr.bf16.mxu1 %v4659_v50  ;;  %3104 = vmatprep.subr.bf16.mxu0 %v4662_v51  ;;  %v2501_v50 = vrot.slane %v3975_v42, 3  ;;  %v4724_v51 = vld [vmem:[%s5112_s13 + $0x404] ss:$8 sps:$4 sm:$0xff]   ;;  %v3186_v18 = vsel %vm3169_vm11, %v3177_v34, %v3185_v53 }
 0x256   : > { %v2502_v54 = vsel %vm2499_vm10, %v2500_v37, %v2501_v50 }
 0x257   : > { %2425 = vmatpush1.bf16.msra.mxu1 %v4657_v33  ;;  %3105 = vmatpush1.bf16.msra.mxu0 %v4660_v55  ;;  %v4722_v33 = vld [vmem:[%s5112_s13 + $0x400] ss:$8 sps:$4 sm:$0xff]   ;;  %v4727_v55 = vld [vmem:[%s5112_s13 + $0x414] ss:$8 sps:$4 sm:$0xff]  }
 0x258   : > { %2426 = vmatprep.subr.bf16.mxu1 %v4665_v56  ;;  %3106 = vmatprep.subr.bf16.mxu0 %v4668_v59  ;;  %v4725_v56 = vld [vmem:[%s5112_s13 + $0x410] ss:$8 sps:$4 sm:$0xff]   ;;  %v4733_v59 = vld [vmem:[%s5112_s13 + $0x434] ss:$8 sps:$4 sm:$0xff]  }
 0x25b   : > { %2427 = vmatpush1.bf16.msra.mxu1 %v4663_v60  ;;  %3107 = vmatpush1.bf16.msra.mxu0 %v4666_v41  ;;  %v4731_v60 = vld [vmem:[%s5112_s13 + $0x430] ss:$8 sps:$4 sm:$0xff]   ;;  %v4736_v41 = vld [vmem:[%s5112_s13 + $0x444] ss:$8 sps:$4 sm:$0xff]  }
 0x25c   : > { %2585 = vmatprep.subr.bf16.mxu1 %v4672_v61  ;;  %3269 = vmatprep.subr.bf16.mxu0 %v4675_v0  ;;  %v4734_v61 = vld [vmem:[%s5112_s13 + $0x440] ss:$8 sps:$4 sm:$0xff]   ;;  %v4742_v0 = vld [vmem:[%s5112_s13 + $0x464] ss:$8 sps:$4 sm:$0xff]  }
 0x25e   : > { %2445 = vmatmul.mubr.bf16.vlgmr.msra.gmra.mrb[0].mxu1 %v5509_v8  ;;  %3125 = vmatmul.mubr.bf16.vlgmr.msra.gmra.mrb[0].mxu0 %v3009_v4  ;;  %v4714_v8 = vld [vmem:[%s5112_s13 + $0x3e4] ss:$8 sps:$4 sm:$0xff]  }
 0x25f   : > { %2586 = vmatpush1.bf16.msra.mxu1 %v4670_v1  ;;  %3270 = vmatpush1.bf16.msra.mxu0 %v4673_v2  ;;  %v3326_v1 = vld [vmem:[%s5129_s29 + $0x4] sm:$0x8]  ;;  %v4740_v2 = vld [vmem:[%s5112_s13 + $0x460] ss:$8 sps:$4 sm:$0xff]  }
 0x260   : > { %2587 = vmatprep.subr.bf16.mxu1 %v4681_v5  ;;  %3271 = vmatprep.subr.bf16.mxu0 %v4684_v39  ;;  %v4062_v4 = vcombine.low %v3326_v1, %v5528_v52  ;;  %v4743_v5 = vld [vmem:[%s5112_s13 + $0x470] ss:$8 sps:$4 sm:$0xff]  }
 0x261   : > { %2454 = vmatprep.mubr.bf16.mxu1 %v4912_v49  ;;  %3134 = vmatprep.mubr.bf16.mxu0 %v4912_v49 }
 0x262   : > { %v3346_v39 = vrot.slane %v4062_v4, 3 }
 0x263   : > { %2588 = vmatpush1.bf16.msra.mxu1 %v4679_v6  ;;  %3272 = vmatpush1.bf16.msra.mxu0 %v4682_v7  ;;  %v3347_v6 = vrot.slane %v5572_v13, 3 }
 0x264   : > { %2589 = vmatprep.subr.bf16.mxu1 %v4687_v9  ;;  %3273 = vmatprep.subr.bf16.mxu0 %v4690_v10 }
 0x265   : > { %v3348_v7 = vsel %vm2499_vm10, %v3346_v39, %v3347_v6 }
 0x266   : > { %2455 = vmatmul.mubr.bf16.gmra.mrb[12].mxu1 %v2328_v28  ;;  %3135 = vmatmul.mubr.bf16.gmra.mrb[12].mxu0 %v3008_v63  ;;  %v4703_v28 = vld [vmem:[%s5112_s13 + $0x1d0] ss:$8 sps:$4 sm:$0xff]  }
 0x267   : > { %2590 = vmatpush1.bf16.msra.mxu1 %v4685_v11  ;;  %3274 = vmatpush1.bf16.msra.mxu0 %v4688_v14  ;;  %v4737_v63 = vld [vmem:[%s5112_s13 + $0x450] ss:$8 sps:$4 sm:$0xff]  }
 0x268   : > { %2591 = vmatprep.subr.bf16.mxu1 %v4693_v16  ;;  %3275 = vmatprep.subr.bf16.mxu0 %v4696_v20 }
 0x269   : > { %2617 = vmatprep.mubr.bf16.mxu1 %v4912_v49  ;;  %3301 = vmatprep.mubr.bf16.mxu0 %v4912_v49 }
 0x26b   : > { %2592 = vmatpush1.bf16.msra.mxu1 %v4691_v21  ;;  %3276 = vmatpush1.bf16.msra.mxu0 %v4694_v23 }
 0x26c   : > { %2593 = vmatprep.subr.bf16.mxu1 %v4699_v24  ;;  %3277 = vmatprep.subr.bf16.mxu0 %v4702_v3 }
 0x26f   : > { %2594 = vmatpush1.bf16.msra.mxu1 %v4697_v25  ;;  %3278 = vmatpush1.bf16.msra.mxu0 %v4700_v26 }
 0x270   : > { %2595 = vmatprep.subr.bf16.mxu1 %v4705_v15  ;;  %3279 = vmatprep.subr.bf16.mxu0 %v4708_v27 }
 0x273   : > { %2596 = vmatpush1.bf16.msra.mxu1 %v4703_v28  ;;  %3280 = vmatpush1.bf16.msra.mxu0 %v4706_v40 }
 0x274   : > { %2597 = vmatprep.subr.bf16.mxu1 %v4711_v32  ;;  %3281 = vmatprep.subr.bf16.mxu0 %v4714_v8 }
 0x277   : > { %2598 = vmatpush1.bf16.msra.mxu1 %v4709_v38  ;;  %3282 = vmatpush1.bf16.msra.mxu0 %v4712_v44 }
 0x278   : > { %2599 = vmatprep.subr.bf16.mxu1 %v4717_v45  ;;  %3283 = vmatprep.subr.bf16.mxu0 %v4720_v35 }
 0x27b   : > { %2600 = vmatpush1.bf16.msra.mxu1 %v4715_v48  ;;  %3284 = vmatpush1.bf16.msra.mxu0 %v4718_v17 }
 0x27c   : > { %4136 = vmatprep.subr.bf16.mxu1 %v4724_v51  ;;  %3431 = vmatprep.subr.bf16.mxu0 %v4724_v51 }
 0x27e   : > { %2618 = vmatmul.mubr.bf16.vlgmr.msra.gmra.mrb[0].mxu1 %v2502_v54  ;;  %3302 = vmatmul.mubr.bf16.vlgmr.msra.gmra.mrb[0].mxu0 %v3186_v18 }
 0x27f   : > { %4144 = vmatpush1.bf16.msra.mxu1 %v4722_v33  ;;  %3432 = vmatpush1.bf16.msra.mxu0 %v4722_v33 }
 0x280   : > { %4137 = vmatprep.subr.bf16.mxu1 %v4727_v55  ;;  %3433 = vmatprep.subr.bf16.mxu0 %v4727_v55 }
 0x281   : > { %2627 = vmatprep.mubr.bf16.mxu1 %v4912_v49  ;;  %3311 = vmatprep.mubr.bf16.mxu0 %v4912_v49 }
 0x283   : > { %4145 = vmatpush1.bf16.msra.mxu1 %v4725_v56  ;;  %3434 = vmatpush1.bf16.msra.mxu0 %v4725_v56 }
 0x284   : > { %4138 = vmatprep.subr.bf16.mxu1 %v4730_v57  ;;  %3435 = vmatprep.subr.bf16.mxu0 %v4730_v57 }
 0x286   : > { %2628 = vmatmul.mubr.bf16.gmra.mrb[16].mxu1 %v2501_v50  ;;  %3312 = vmatmul.mubr.bf16.gmra.mrb[16].mxu0 %v3185_v53 }
 0x287   : > { %4146 = vmatpush1.bf16.msra.mxu1 %v4728_v58  ;;  %3436 = vmatpush1.bf16.msra.mxu0 %v4728_v58 }
 0x288   : > { %4139 = vmatprep.subr.bf16.mxu1 %v4733_v59  ;;  %3437 = vmatprep.subr.bf16.mxu0 %v4733_v59 }
 0x289   : > { %3463 = vmatprep.mubr.bf16.mxu0 %v4912_v49  ;;  %3473 = vmatprep.mubr.bf16.mxu1 %v4912_v49  ;;  %v4745_v49 = vld [vmem:[%s5112_s13 + $0x474] ss:$8 sps:$4 sm:$0xff]  }
 0x28b   : > { %4147 = vmatpush1.bf16.msra.mxu1 %v4731_v60  ;;  %3438 = vmatpush1.bf16.msra.mxu0 %v4731_v60  ;;  %v1975_v60 = vld [vmem:[#allocation2 + $0x20] sm:$0x3f] }
 0x28c   : > { %4140 = vmatprep.subr.bf16.mxu1 %v4736_v41  ;;  %3439 = vmatprep.subr.bf16.mxu0 %v4736_v41 }
 0x28f   : > { %4148 = vmatpush1.bf16.msra.mxu1 %v4734_v61  ;;  %3440 = vmatpush1.bf16.msra.mxu0 %v4734_v61  ;;  %v1971_v61 = vld [vmem:[#allocation2] sm:$0xff] }
 0x290   : > { %4141 = vmatprep.subr.bf16.mxu1 %v4739_v62  ;;  %3441 = vmatprep.subr.bf16.mxu0 %v4739_v62 }
 0x293   : > { %4149 = vmatpush1.bf16.msra.mxu1 %v4737_v63  ;;  %3442 = vmatpush1.bf16.msra.mxu0 %v4737_v63 }
 0x294   : > { %4142 = vmatprep.subr.bf16.mxu1 %v4742_v0  ;;  %3443 = vmatprep.subr.bf16.mxu0 %v4742_v0  ;;  %v1976_v0 = vld [vmem:[#allocation2 + $0x28] sm:$0x3f] }
 0x297   : > { %4150 = vmatpush1.bf16.msra.mxu1 %v4740_v2  ;;  %3444 = vmatpush1.bf16.msra.mxu0 %v4740_v2 }
 0x298   : > { %4143 = vmatprep.subr.bf16.mxu1 %v4745_v49  ;;  %3445 = vmatprep.subr.bf16.mxu0 %v4745_v49  ;;  %v1972_v49 = vld [vmem:[#allocation2 + $0x8] sm:$0xff] }
 0x29b   : > { %4151 = vmatpush1.bf16.msra.mxu1 %v4743_v5  ;;  %3446 = vmatpush1.bf16.msra.mxu0 %v4743_v5 }
 0x29e   : > { %3474 = vmatmul.mubr.bf16.vlgmr.msra.gmra.mrb[20].mxu1 %v3347_v6  ;;  %3464 = vmatmul.mubr.bf16.vlgmr.msra.gmra.mrb[0].mxu0 %v3348_v7 }
 0x2f9   : > { %v2163_v9 = vpop.f32.mrb[4].mxu1  ;;  %v2806_v10 = vpop.f32.mrb[4].mxu0 }
 0x2fa   : > { %v2165_v11 = vpop.f32.mrb[5].mxu1  ;;  %v2808_v14 = vpop.f32.mrb[5].mxu0 }
 0x2fb   : > { %v2167_v52 = vpop.f32.mrb[6].mxu1  ;;  %v2810_v16 = vpop.f32.mrb[6].mxu0 }
 0x2fc   : > { %v2168_v20 = vpop.f32.mrb[7].mxu1  ;;  %v2811_v21 = vpop.f32.mrb[7].mxu0 }
 0x2fd   : > { %v1974_v20 = vld [vmem:[#allocation2 + $0x18] sm:$0xff] }
 0x319   : > { %v2299_v22 = vpop.f32.mrb[8].mxu1  ;;  %v2963_v3 = vpop.f32.mrb[8].mxu0 }
 0x31a   : > { %v2300_v23 = vadd.f32 %v2299_v22, %v2163_v9  ;;  %v2301_v24 = vpop.f32.mrb[9].mxu1  ;;  %v2965_v25 = vpop.f32.mrb[9].mxu0  ;;  %v1973_v9 = vld [vmem:[#allocation2 + $0x10] sm:$0xff] }
 0x31b   : > { %v2302_v13 = vadd.f32 %v2301_v24, %v2165_v11  ;;  %v2303_v26 = vpop.f32.mrb[10].mxu1  ;;  %v2967_v15 = vpop.f32.mrb[10].mxu0 }
 0x31c   : > { %v2304_v27 = vpop.f32.mrb[11].mxu1  ;;  %v2968_v28 = vpop.f32.mrb[11].mxu0 }
 0x339   : > { %v2456_v12 = vpop.f32.mrb[12].mxu1  ;;  %v3136_v31 = vpop.f32.mrb[12].mxu0 }
 0x33a   : > { %v2467_v29 = vadd.f32 %v2456_v12, %v2300_v23  ;;  %v2458_v30 = vpop.f32.mrb[13].mxu1  ;;  %v3138_v32 = vpop.f32.mrb[13].mxu0 }
 0x33b   : > { %v2468_v40 = vadd.f32 %v2458_v30, %v2302_v13  ;;  %v2460_v36 = vpop.f32.mrb[14].mxu1  ;;  %v3140_v8 = vpop.f32.mrb[14].mxu0 }
 0x33c   : > { %v2461_v38 = vpop.f32.mrb[15].mxu1  ;;  %v3141_v42 = vpop.f32.mrb[15].mxu0 }
 0x351   : > { %v2619_v43 = vpop.f32.mrb[0].mxu1 }
 0x352   : > { %v2621_v19 = vpop.f32.mrb[1].mxu1 }
 0x353   : > { %v2623_v44 = vpop.f32.mrb[2].mxu1 }
 0x354   : > { %v2625_v45 = vpop.f32.mrb[3].mxu1 }
 0x359   : > { %v2629_v46 = vpop.f32.mrb[16].mxu1  ;;  %v3313_v48 = vpop.f32.mrb[16].mxu0 }
 0x35a   : > { %v2640_v47 = vadd.f32 %v2629_v46, %v2467_v29  ;;  %v2631_v35 = vpop.f32.mrb[17].mxu1  ;;  %v3315_v50 = vpop.f32.mrb[17].mxu0 }
 0x35b   : > { %v2641_v37 = vadd.f32 %v2631_v35, %v2468_v40  ;;  %v2633_v17 = vpop.f32.mrb[18].mxu1  ;;  %v3317_v34 = vpop.f32.mrb[18].mxu0 }
 0x35c   : > { %v2817_v51 = vadd.f32 %v2806_v10, %v2640_v47  ;;  %v2634_v53 = vpop.f32.mrb[19].mxu1  ;;  %v3318_v33 = vpop.f32.mrb[19].mxu0 }
 0x35d   : > { %v2818_v54 = vadd.f32 %v2808_v14, %v2641_v37 }
 0x35e   : > { %v2974_v18 = vadd.f32 %v2963_v3, %v2817_v51 }
 0x35f   : > { %v2975_v55 = vadd.f32 %v2965_v25, %v2818_v54 }
 0x360   : > { %v3147_v56 = vadd.f32 %v3136_v31, %v2974_v18 }
 0x361   : > { %v3148_v57 = vadd.f32 %v3138_v32, %v2975_v55 }
 0x362   : > { %v3324_v58 = vadd.f32 %v3313_v48, %v3147_v56 }
 0x363   : > { %v3325_v59 = vadd.f32 %v3315_v50, %v3148_v57 }
 0x371   : > { %v3475_v41 = vpop.f32.mrb[20].mxu1  ;;  %v3465_v62 = vpop.f32.mrb[0].mxu0 }
 0x372   : > { %v3486_v63 = vadd.f32 %v3475_v41, %v3324_v58  ;;  %v3477_v1 = vpop.f32.mrb[21].mxu1  ;;  %v4152_v2 = vadd.f32 %v3465_v62, %v2619_v43  ;;  %v3467_v4 = vpop.f32.mrb[1].mxu0 }
 0x373   : > { %v3487_v5 = vadd.f32 %v3477_v1, %v3325_v59  ;;  %v3479_v39 = vpop.f32.mrb[22].mxu1  ;;  %v4153_v7 = vadd.f32 %v3467_v4, %v2621_v19  ;;  %v3469_v10 = vpop.f32.mrb[2].mxu0 }
 0x374   : > { %v3492_v6 = vadd.f32 %v3486_v63, %v1975_v60  ;;  %v3480_v11 = vpop.f32.mrb[23].mxu1  ;;  %v3488_v14 = vadd.f32 %v4152_v2, %v1971_v61  ;;  %v4154_v16 = vadd.f32 %v3469_v10, %v2623_v44  ;;  %v3471_v21 = vpop.f32.mrb[3].mxu0 }
 0x375   : > { %v3493_v52 = vadd.f32 %v3487_v5, %v1976_v0  ;;  %v3489_v22 = vadd.f32 %v4153_v7, %v1972_v49  ;;  %v4155_v23 = vadd.f32 %v3471_v21, %v2625_v45 }
 0x376   : > { %3498 = vst [vmem:[#allocation2 + $0x20] sm:$0x3f] %v3492_v6  ;;  %3494 = vst [vmem:[#allocation2] sm:$0xff] %v3488_v14  ;;  %v3490_v24 = vadd.f32 %v4154_v16, %v1973_v9 }
 0x377   : > { %3499 = vst [vmem:[#allocation2 + $0x28] sm:$0x3f] %v3493_v52  ;;  %3495 = vst [vmem:[#allocation2 + $0x8] sm:$0xff] %v3489_v22  ;;  %v3491_v3 = vadd.f32 %v4155_v23, %v1974_v20 }
 0x378   : > { %3496 = vst [vmem:[#allocation2 + $0x10] sm:$0xff] %v3490_v24 }
 0x379   : > { %3497 = vst [vmem:[#allocation2 + $0x18] sm:$0xff] %v3491_v3 }
 0x37a PF: > { %p4079_p13 = scmp.ne.s32.totalorder %s4887_s21, 4 }
 0x37b   : > { %v3512_v13 = vlaneseq (!%p4079_p13)  ;;  %v3510_v26 = vld [vmem:[#allocation5] sm:$0x3] (!%p4079_p13)  ;;  %v3528_v15 = vld [vmem:[#allocation7] sm:$0x3] (!%p4079_p13) }
 0x37c   : > { %3503 = sbr.rel (%p4079_p13) target bundleno = 909 (0x38d), region = 68 }
 0x37d   : > { %v3513_v25 = vshrl.u32 (!%p4079_p13), %v3512_v13, 7  ;;  %v3504_v27 = vld [vmem:[#allocation2] sm:$0xff] (!%p4079_p13) }
 0x37e   : > { %v3505_v29 = vld [vmem:[#allocation2 + $0x8] sm:$0xff] (!%p4079_p13)  ;;  %v3508_v38 = vld [vmem:[#allocation2 + $0x20] sm:$0x3f] (!%p4079_p13) }
 0x37f   : > { %v3514_v28 = vsub.s32 (!%p4079_p13), 0, %v3513_v25  ;;  %v3518_v12 = vsub.s32 (!%p4079_p13), 1, %v3513_v25  ;;  %v3506_v30 = vld [vmem:[#allocation2 + $0x10] sm:$0xff] (!%p4079_p13)  ;;  %v3509_v42 = vld [vmem:[#allocation2 + $0x28] sm:$0x3f] (!%p4079_p13) }
 0x380   : > { %v3507_v31 = vld [vmem:[#allocation2 + $0x18] sm:$0xff] (!%p4079_p13) }
 0x381   : > { %v3515_v40 = vrot.slane (!%p4079_p13), %v3510_v26, %v3514_v28  ;;  %v3519_v32 = vrot.slane (!%p4079_p13), %v3510_v26, %v3518_v12  ;;  %v3533_v36 = vrot.slane (!%p4079_p13), %v3528_v15, %v3514_v28  ;;  %v3537_v8 = vrot.slane (!%p4079_p13), %v3528_v15, %v3518_v12 }
 0x383   : > { %v3522_v43 = vmul.f32 %v3515_v40, %v3504_v27  ;;  %v3523_v19 = vmul.f32 %v3519_v32, %v3505_v29  ;;  %v3524_v44 = vmul.f32 %v3515_v40, %v3506_v30  ;;  %v3525_v45 = vmul.f32 %v3519_v32, %v3507_v31 }
 0x384   : > { %v3526_v46 = vmul.f32 %v3515_v40, %v3508_v38  ;;  %v3527_v47 = vmul.f32 %v3519_v32, %v3509_v42 }
 0x385   : > { %v3540_v35 = vadd.f32 %v3533_v36, %v3522_v43  ;;  %v3541_v48 = vadd.f32 %v3537_v8, %v3523_v19  ;;  %v3542_v37 = vadd.f32 %v3533_v36, %v3524_v44  ;;  %v3543_v50 = vadd.f32 %v3537_v8, %v3525_v45 }
 0x386   : > { %v3544_v17 = vadd.f32 %v3533_v36, %v3526_v46  ;;  %v3545_v51 = vadd.f32 %v3537_v8, %v3527_v47 }
 0x387   : > { %v3546_v34 = vmax.f32 %v3540_v35, 0.0  ;;  %v3547_v53 = vmax.f32 %v3541_v48, 0.0  ;;  %v3548_v54 = vmax.f32 %v3542_v37, 0.0  ;;  %v3549_v33 = vmax.f32 %v3543_v50, 0.0 }
 0x388   : > { %v3550_v18 = vmax.f32 %v3544_v17, 0.0  ;;  %v3551_v55 = vmax.f32 %v3545_v51, 0.0 }
 0x389   : > { %v4085_v56 = vpack.c.bf16 %v3547_v53, %v3546_v34  ;;  %v4086_v57 = vpack.c.bf16 %v3549_v33, %v3548_v54 }
 0x38a   : > { %v4087_v58 = vpack.c.bf16 %v3551_v55, %v3550_v18 }
 0x38b   : > { %3572 = vst [vmem:[%s5134_s14] sm:$0xff] %v4085_v56  ;;  %3573 = vst [vmem:[%s5134_s14 + $0x8] sm:$0xff] %v4086_v57 }
 0x38c   : > { %3574 = vst [vmem:[%s5134_s14 + $0x10] sm:$0x77] %v4087_v58 }
 0x38d PF: > { %s19_s25 = sadd.s32 1, %s4903_s25   ;;  %s5670_s18 = smov %s4879_s19 }
 0x38e   : > { %p16_p3 = scmp.ge.s32.totalorder %s19_s25, 12   ;;  %s5671_s19 = smov %s4883_s20 }
 0x38f   : > { %s5672_s20 = smov %s5072_s11  ;;  %s5673_s21 = smov %s4895_s23 }
 0x390   : > { %s5674_s22 = smov %s4899_s24  ;;  %s5675_s23 = smov %s5678_s12 }
 0x391   : > { %s5676_s24 = smov %s5682_s10  ;;  %18 = sbr.rel (!%p16_p3) target bundleno = 8 (0x8), region = 112 }
 0x398   :  { %3605 = vsyncpa [#allocation4], 1 }
 0x399   :  { %3607 = vsyncpa [#allocation4 + $0x1], 1 }
 0x39a   :  { %3608 = vsyncpa [#allocation6], 1 }

</bundles_post_ra>
